<compile_context>
chip_gen: v5e
topology: v5e:2x2
jax: 0.10.0
libtpu: 0.0.40
codegen_flags: <defaults>
</compile_context>

<pallas_src>
import jax
import jax.numpy as jnp
from jax.experimental import pallas as pl
from jax.experimental.pallas import tpu as pltpu

H = 7          # logical LSTM hidden size (PyTorch)
HP = 8         # padded hidden size used in-kernel (lane-aligned gate blocks)
G = 4 * HP     # packed gate width [i, f, g, o]
ENC_IN = 7     # encoder input feature size
DEC_IN = 6     # decoder input feature size
OUT_DIM = 6    # final linear output size


def _make_kernel(B, T_enc, T_dec):
    n_e = T_enc * B
    n_d = T_dec * B

    def kernel(x_ref, p_ref, out_ref):
        # ---- unpack the two packed operands with static slices ----
        enc_x = x_ref[0:n_e, :]                         # (T_enc*B, HP) time-major, col 7 = 1 (bias feat)
        dec_x = x_ref[n_e:n_e + n_d, :]                 # (T_dec*B, HP) time-major, col 6 = 1, col 7 = 0
        h = x_ref[n_e + n_d:n_e + n_d + B, :]           # (B, HP) initial hidden (pad lane = 0)
        c = x_ref[n_e + n_d + B:n_e + n_d + 2 * B, :]   # (B, HP) initial cell   (pad lane = 0)

        w_ih_e = p_ref[0 * HP:1 * HP, :]    # (HP, G); row 7 = encoder b_ih + b_hh
        w_hh_e = p_ref[1 * HP:2 * HP, :]    # (HP, G); pad row/cols zero
        w_ih_d = p_ref[2 * HP:3 * HP, :]    # (HP, G); row 6 = decoder b_ih + b_hh, row 7 = 0
        w_hh_d = p_ref[3 * HP:4 * HP, :]    # (HP, G)
        w_out = p_ref[4 * HP:5 * HP, :]     # (HP, G); cols >= OUT_DIM zero, pad row zero
        b_out = p_ref[5 * HP:5 * HP + 1, :]  # (1, G)

        # ---- hoisted input projections: one MXU matmul per phase, bias folded in ----
        proj_e = jnp.dot(enc_x, w_ih_e, preferred_element_type=jnp.float32)  # (n_e, G)
        proj_d = jnp.dot(dec_x, w_ih_d, preferred_element_type=jnp.float32)  # (n_d, G)

        # Pre-broadcast W_hh rows once per phase: the recurrent matvec becomes HP unrolled
        # VPU broadcast-multiply-adds (no MXU round-trip on the serial dependence chain).
        we_rows = [jnp.broadcast_to(w_hh_e[k:k + 1, :], (B, G)) for k in range(HP)]
        wd_rows = [jnp.broadcast_to(w_hh_d[k:k + 1, :], (B, G)) for k in range(HP)]

        # Lane mask (hoisted once): 0.5 on the i/f/o gate lanes, 1.0 on the g lanes.
        lane = jax.lax.broadcasted_iota(jnp.int32, (B, G), 1)
        gate_scale = jnp.where((lane >= 2 * HP) & (lane < 3 * HP),
                               jnp.float32(1.0), jnp.float32(0.5))

        def rec_matvec(hh, w_rows):
            acc = hh[:, 0:1] * w_rows[0]
            for k in range(1, HP):
                acc = acc + hh[:, k:k + 1] * w_rows[k]
            return acc

        def cell(px, hh, cc, w_rows):
            # PyTorch gate order [i, f, g, o].  One tanh over the whole (B, G) gates vreg:
            # sigmoid(x) = 0.5 * (1 + tanh(x/2)); g lanes are left unscaled -> plain tanh.
            gates = px + rec_matvec(hh, w_rows)
            a = jnp.tanh(gates * gate_scale)
            i = 0.5 + 0.5 * a[:, 0 * HP:1 * HP]
            f = 0.5 + 0.5 * a[:, 1 * HP:2 * HP]
            g = a[:, 2 * HP:3 * HP]
            o = 0.5 + 0.5 * a[:, 3 * HP:4 * HP]
            c_new = f * cc + i * g
            h_new = o * jnp.tanh(c_new)
            return h_new, c_new

        # ---- encoder: fully unrolled, keep only the final (h, c) ----
        for t in range(T_enc):
            h, c = cell(proj_e[t * B:(t + 1) * B, :], h, c, we_rows)

        # ---- decoder: keep h_t in vregs; no per-step output math or stores ----
        hs = []
        for t in range(T_dec):
            h, c = cell(proj_d[t * B:(t + 1) * B, :], h, c, wd_rows)
            hs.append(h)

        # ---- epilogue: ReLU + Linear(7 -> 6) as one matmul, single lane-dense store ----
        h_all = jnp.concatenate(hs, axis=0)                      # (T_dec*B, HP), time-major
        y = jnp.dot(jnp.maximum(h_all, 0.0), w_out,
                    preferred_element_type=jnp.float32) + b_out  # (T_dec*B, G)
        out_ref[...] = y

    return kernel


@jax.jit
def wheat_lstm_forward(inputs, inputs_, h0, c0, packed_params):
    """inputs: (B, T_enc, 7), inputs_: (B, T_dec, 6), h0/c0: (1, B, 7) -> (B, T_dec, 6)."""
    B, T_enc, _ = inputs.shape
    _, T_dec, _ = inputs_.shape

    # Augment features to HP=8: encoder gets a constant-1 bias feature in col 7;
    # decoder gets the constant-1 bias feature in col 6 and a zero pad in col 7.
    enc = jnp.concatenate(
        [inputs.astype(jnp.float32), jnp.ones((B, T_enc, HP - ENC_IN), jnp.float32)], axis=-1)
    dec = jnp.concatenate(
        [inputs_.astype(jnp.float32),
         jnp.ones((B, T_dec, 1), jnp.float32),
         jnp.zeros((B, T_dec, HP - DEC_IN - 1), jnp.float32)], axis=-1)
    # Time-major flattening in the wrapper (free on contiguous HBM data): each per-step
    # projection slice inside the kernel is then one contiguous (B, G) sublane block.
    enc_tm = enc.transpose(1, 0, 2).reshape(T_enc * B, HP)
    dec_tm = dec.transpose(1, 0, 2).reshape(T_dec * B, HP)
    h0p = jnp.pad(h0[0].astype(jnp.float32), ((0, 0), (0, HP - H)))  # pad lane = 0 (invariant)
    c0p = jnp.pad(c0[0].astype(jnp.float32), ((0, 0), (0, HP - H)))
    x_packed = jnp.concatenate([enc_tm, dec_tm, h0p, c0p], axis=0)   # one DMA for all data

    y = pl.pallas_call(
        _make_kernel(B, T_enc, T_dec),
        out_shape=jax.ShapeDtypeStruct((T_dec * B, G), jnp.float32),
        in_specs=[pl.BlockSpec(memory_space=pltpu.MemorySpace.VMEM)] * 2,
        out_specs=pl.BlockSpec(memory_space=pltpu.MemorySpace.VMEM),
    )(x_packed, packed_params)

    # time-major (T_dec*B, G) -> batch-first (B, T_dec, OUT_DIM)
    return y.reshape(T_dec, B, G)[:, :, :OUT_DIM].transpose(1, 0, 2)


def init_params(key):
    """Logical (unpadded) parameters, PyTorch-default ranges, stored pre-transposed (x @ W),
    biases combined (b_ih + b_hh), gate order [i, f, g, o]."""
    ks = jax.random.split(key, 10)
    bound = 1.0 / jnp.sqrt(jnp.float32(H))

    def u(k, shape):
        return jax.random.uniform(k, shape, jnp.float32, -bound, bound)

    w_ih_e = u(ks[0], (ENC_IN, 4 * H))
    w_hh_e = u(ks[1], (H, 4 * H))
    b_e = u(ks[2], (1, 4 * H)) + u(ks[3], (1, 4 * H))
    w_ih_d = u(ks[4], (DEC_IN, 4 * H))
    w_hh_d = u(ks[5], (H, 4 * H))
    b_d = u(ks[6], (1, 4 * H)) + u(ks[7], (1, 4 * H))
    w_out = u(ks[8], (H, OUT_DIM))
    b_out = u(ks[9], (1, OUT_DIM))
    return (w_ih_e, w_hh_e, b_e, w_ih_d, w_hh_d, b_d, w_out, b_out)


def pack_params(params):
    """Pack all weights/biases into one (48, 32) f32 buffer of 8-row, lane-padded blocks.

    Gate columns padded 7 -> 8 with zeros; W_hh / W_out pad rows zero; LSTM biases live in
    the weight row addressed by the constant-1 input feature (bias folding)."""
    (w_ih_e, w_hh_e, b_e, w_ih_d, w_hh_d, b_d, w_out, b_out) = params

    def pad_gates(w):  # (r, 4*H) -> (r, 4*HP), each gate block zero-padded to HP cols
        blocks = [jnp.pad(w[:, g * H:(g + 1) * H], ((0, 0), (0, HP - H))) for g in range(4)]
        return jnp.concatenate(blocks, axis=1)

    blk_ih_e = jnp.concatenate([pad_gates(w_ih_e), pad_gates(b_e)], axis=0)           # (8, 32)
    blk_hh_e = jnp.pad(pad_gates(w_hh_e), ((0, HP - H), (0, 0)))                      # (8, 32)
    blk_ih_d = jnp.concatenate([pad_gates(w_ih_d), pad_gates(b_d),
                                jnp.zeros((HP - DEC_IN - 1, G), jnp.float32)], axis=0)  # (8, 32)
    blk_hh_d = jnp.pad(pad_gates(w_hh_d), ((0, HP - H), (0, 0)))                      # (8, 32)
    blk_out = jnp.pad(w_out, ((0, HP - H), (0, G - OUT_DIM)))                         # (8, 32)
    blk_bout = jnp.pad(b_out, ((0, HP - 1), (0, G - OUT_DIM)))                        # (8, 32)
    return jnp.concatenate([blk_ih_e, blk_hh_e, blk_ih_d, blk_hh_d, blk_out, blk_bout], axis=0)


def reference_forward(inputs, inputs_, h0, c0, params):
    """Pure-JAX reference on the *logical* (unpadded) parameters with standard sigmoid/tanh.
    Validates the padding, bias folding, gate order and the tanh activation identity."""
    (w_ih_e, w_hh_e, b_e, w_ih_d, w_hh_d, b_d, w_out, b_out) = params

    def step(x, h, c, w_ih, w_hh, b):
        gates = x @ w_ih + h @ w_hh + b
        i = jax.nn.sigmoid(gates[:, 0 * H:1 * H])
        f = jax.nn.sigmoid(gates[:, 1 * H:2 * H])
        g = jnp.tanh(gates[:, 2 * H:3 * H])
        o = jax.nn.sigmoid(gates[:, 3 * H:4 * H])
        c = f * c + i * g
        h = o * jnp.tanh(c)
        return h, c

    h = h0[0].astype(jnp.float32)
    c = c0[0].astype(jnp.float32)
    for t in range(inputs.shape[1]):
        h, c = step(inputs[:, t, :].astype(jnp.float32), h, c, w_ih_e, w_hh_e, b_e)
    outs = []
    for t in range(inputs_.shape[1]):
        h, c = step(inputs_[:, t, :].astype(jnp.float32), h, c, w_ih_d, w_hh_d, b_d)
        outs.append(jnp.maximum(h, 0.0) @ w_out + b_out)
    return jnp.stack(outs, axis=1)


if __name__ == "__main__":
    key = jax.random.PRNGKey(0)
    k_in, k_in2, k_h0, k_c0, k_par = jax.random.split(key, 5)

    # B=8 fills the sublane dimension (throughput lever flagged in the perf review).
    B, T_ENC, T_DEC = 8, 8, 8
    inputs = jax.random.normal(k_in, (B, T_ENC, ENC_IN), jnp.float32)
    inputs_ = jax.random.normal(k_in2, (B, T_DEC, DEC_IN), jnp.float32)
    # torch.randn(1, B, 7) initial states, drawn deterministically here
    h0 = jax.random.normal(k_h0, (1, B, H), jnp.float32)
    c0 = jax.random.normal(k_c0, (1, B, H), jnp.float32)

    params = init_params(k_par)
    packed = pack_params(params)

    out = wheat_lstm_forward(inputs, inputs_, h0, c0, packed)
    jax.block_until_ready(out)
    assert out.shape == (B, T_DEC, OUT_DIM), out.shape
    assert out.dtype == jnp.float32

    ref = reference_forward(inputs, inputs_, h0, c0, params)
    max_err = float(jnp.max(jnp.abs(out - ref)))
    assert max_err < 1e-3, f"kernel/reference mismatch: {max_err}"

    print("KERNEL_OK")
</pallas_src>

<mosaic_0001>
module attributes {stable_mosaic.version = 11 : i64} {
  func.func @kernel(%arg0: memref<144x8xf32, #tpu.memory_space<vmem>>, %arg1: memref<48x32xf32, #tpu.memory_space<vmem>>, %arg2: memref<64x32xf32, #tpu.memory_space<vmem>>) attributes {dimension_semantics = [], scalar_prefetch = 0 : i64, scratch_operands = 0 : i64, tpu.core_type = #tpu.core_type<tc>} {
    %c0 = arith.constant 0 : index
    %c0_0 = arith.constant 0 : index
    %0 = vector.load %arg0[%c0, %c0_0] : memref<144x8xf32, #tpu.memory_space<vmem>>, vector<64x8xf32>
    %c64 = arith.constant 64 : index
    %c0_1 = arith.constant 0 : index
    %1 = vector.load %arg0[%c64, %c0_1] : memref<144x8xf32, #tpu.memory_space<vmem>>, vector<64x8xf32>
    %c128 = arith.constant 128 : index
    %c0_2 = arith.constant 0 : index
    %2 = vector.load %arg0[%c128, %c0_2] : memref<144x8xf32, #tpu.memory_space<vmem>>, vector<8x8xf32>
    %c136 = arith.constant 136 : index
    %c0_3 = arith.constant 0 : index
    %3 = vector.load %arg0[%c136, %c0_3] : memref<144x8xf32, #tpu.memory_space<vmem>>, vector<8x8xf32>
    %c0_4 = arith.constant 0 : index
    %c0_5 = arith.constant 0 : index
    %4 = vector.load %arg1[%c0_4, %c0_5] : memref<48x32xf32, #tpu.memory_space<vmem>>, vector<8x32xf32>
    %c8 = arith.constant 8 : index
    %c0_6 = arith.constant 0 : index
    %5 = vector.load %arg1[%c8, %c0_6] : memref<48x32xf32, #tpu.memory_space<vmem>>, vector<8x32xf32>
    %c16 = arith.constant 16 : index
    %c0_7 = arith.constant 0 : index
    %6 = vector.load %arg1[%c16, %c0_7] : memref<48x32xf32, #tpu.memory_space<vmem>>, vector<8x32xf32>
    %c24 = arith.constant 24 : index
    %c0_8 = arith.constant 0 : index
    %7 = vector.load %arg1[%c24, %c0_8] : memref<48x32xf32, #tpu.memory_space<vmem>>, vector<8x32xf32>
    %c32 = arith.constant 32 : index
    %c0_9 = arith.constant 0 : index
    %8 = vector.load %arg1[%c32, %c0_9] : memref<48x32xf32, #tpu.memory_space<vmem>>, vector<8x32xf32>
    %c40 = arith.constant 40 : index
    %c0_10 = arith.constant 0 : index
    %9 = vector.load %arg1[%c40, %c0_10] : memref<48x32xf32, #tpu.memory_space<vmem>>, vector<1x32xf32>
    %cst = arith.constant dense<0.000000e+00> : vector<64x32xf32>
    %10 = tpu.matmul %0, %4, %cst {dimension_numbers = #tpu.dot_dimension_numbers<[1], [0], [0], [1], [0, 0, 1, 1], [], []>} : vector<64x8xf32>, vector<8x32xf32>, vector<64x32xf32> -> vector<64x32xf32>
    %cst_11 = arith.constant dense<0.000000e+00> : vector<64x32xf32>
    %11 = tpu.matmul %1, %6, %cst_11 {dimension_numbers = #tpu.dot_dimension_numbers<[1], [0], [0], [1], [0, 0, 1, 1], [], []>} : vector<64x8xf32>, vector<8x32xf32>, vector<64x32xf32> -> vector<64x32xf32>
    %12 = vector.extract_strided_slice %5 {offsets = [0, 0], sizes = [1, 32], strides = [1, 1]} : vector<8x32xf32> to vector<1x32xf32>
    %13 = vector.shape_cast %12 : vector<1x32xf32> to vector<1x32xf32>
    %14 = vector.broadcast %13 : vector<1x32xf32> to vector<8x32xf32>
    %15 = vector.extract_strided_slice %5 {offsets = [1, 0], sizes = [1, 32], strides = [1, 1]} : vector<8x32xf32> to vector<1x32xf32>
    %16 = vector.shape_cast %15 : vector<1x32xf32> to vector<1x32xf32>
    %17 = vector.broadcast %16 : vector<1x32xf32> to vector<8x32xf32>
    %18 = vector.extract_strided_slice %5 {offsets = [2, 0], sizes = [1, 32], strides = [1, 1]} : vector<8x32xf32> to vector<1x32xf32>
    %19 = vector.shape_cast %18 : vector<1x32xf32> to vector<1x32xf32>
    %20 = vector.broadcast %19 : vector<1x32xf32> to vector<8x32xf32>
    %21 = vector.extract_strided_slice %5 {offsets = [3, 0], sizes = [1, 32], strides = [1, 1]} : vector<8x32xf32> to vector<1x32xf32>
    %22 = vector.shape_cast %21 : vector<1x32xf32> to vector<1x32xf32>
    %23 = vector.broadcast %22 : vector<1x32xf32> to vector<8x32xf32>
    %24 = vector.extract_strided_slice %5 {offsets = [4, 0], sizes = [1, 32], strides = [1, 1]} : vector<8x32xf32> to vector<1x32xf32>
    %25 = vector.shape_cast %24 : vector<1x32xf32> to vector<1x32xf32>
    %26 = vector.broadcast %25 : vector<1x32xf32> to vector<8x32xf32>
    %27 = vector.extract_strided_slice %5 {offsets = [5, 0], sizes = [1, 32], strides = [1, 1]} : vector<8x32xf32> to vector<1x32xf32>
    %28 = vector.shape_cast %27 : vector<1x32xf32> to vector<1x32xf32>
    %29 = vector.broadcast %28 : vector<1x32xf32> to vector<8x32xf32>
    %30 = vector.extract_strided_slice %5 {offsets = [6, 0], sizes = [1, 32], strides = [1, 1]} : vector<8x32xf32> to vector<1x32xf32>
    %31 = vector.shape_cast %30 : vector<1x32xf32> to vector<1x32xf32>
    %32 = vector.broadcast %31 : vector<1x32xf32> to vector<8x32xf32>
    %33 = vector.extract_strided_slice %5 {offsets = [7, 0], sizes = [1, 32], strides = [1, 1]} : vector<8x32xf32> to vector<1x32xf32>
    %34 = vector.shape_cast %33 : vector<1x32xf32> to vector<1x32xf32>
    %35 = vector.broadcast %34 : vector<1x32xf32> to vector<8x32xf32>
    %36 = vector.extract_strided_slice %7 {offsets = [0, 0], sizes = [1, 32], strides = [1, 1]} : vector<8x32xf32> to vector<1x32xf32>
    %37 = vector.shape_cast %36 : vector<1x32xf32> to vector<1x32xf32>
    %38 = vector.broadcast %37 : vector<1x32xf32> to vector<8x32xf32>
    %39 = vector.extract_strided_slice %7 {offsets = [1, 0], sizes = [1, 32], strides = [1, 1]} : vector<8x32xf32> to vector<1x32xf32>
    %40 = vector.shape_cast %39 : vector<1x32xf32> to vector<1x32xf32>
    %41 = vector.broadcast %40 : vector<1x32xf32> to vector<8x32xf32>
    %42 = vector.extract_strided_slice %7 {offsets = [2, 0], sizes = [1, 32], strides = [1, 1]} : vector<8x32xf32> to vector<1x32xf32>
    %43 = vector.shape_cast %42 : vector<1x32xf32> to vector<1x32xf32>
    %44 = vector.broadcast %43 : vector<1x32xf32> to vector<8x32xf32>
    %45 = vector.extract_strided_slice %7 {offsets = [3, 0], sizes = [1, 32], strides = [1, 1]} : vector<8x32xf32> to vector<1x32xf32>
    %46 = vector.shape_cast %45 : vector<1x32xf32> to vector<1x32xf32>
    %47 = vector.broadcast %46 : vector<1x32xf32> to vector<8x32xf32>
    %48 = vector.extract_strided_slice %7 {offsets = [4, 0], sizes = [1, 32], strides = [1, 1]} : vector<8x32xf32> to vector<1x32xf32>
    %49 = vector.shape_cast %48 : vector<1x32xf32> to vector<1x32xf32>
    %50 = vector.broadcast %49 : vector<1x32xf32> to vector<8x32xf32>
    %51 = vector.extract_strided_slice %7 {offsets = [5, 0], sizes = [1, 32], strides = [1, 1]} : vector<8x32xf32> to vector<1x32xf32>
    %52 = vector.shape_cast %51 : vector<1x32xf32> to vector<1x32xf32>
    %53 = vector.broadcast %52 : vector<1x32xf32> to vector<8x32xf32>
    %54 = vector.extract_strided_slice %7 {offsets = [6, 0], sizes = [1, 32], strides = [1, 1]} : vector<8x32xf32> to vector<1x32xf32>
    %55 = vector.shape_cast %54 : vector<1x32xf32> to vector<1x32xf32>
    %56 = vector.broadcast %55 : vector<1x32xf32> to vector<8x32xf32>
    %57 = vector.extract_strided_slice %7 {offsets = [7, 0], sizes = [1, 32], strides = [1, 1]} : vector<8x32xf32> to vector<1x32xf32>
    %58 = vector.shape_cast %57 : vector<1x32xf32> to vector<1x32xf32>
    %59 = vector.broadcast %58 : vector<1x32xf32> to vector<8x32xf32>
    %60 = tpu.iota {dimensions = array<i32: 1>} : vector<8x32xi32>
    %c16_i32 = arith.constant 16 : i32
    %61 = vector.broadcast %c16_i32 : i32 to vector<8x32xi32>
    %62 = arith.cmpi sge, %60, %61 : vector<8x32xi32>
    %c24_i32 = arith.constant 24 : i32
    %63 = vector.broadcast %c24_i32 : i32 to vector<8x32xi32>
    %64 = arith.cmpi slt, %60, %63 : vector<8x32xi32>
    %65 = arith.andi %62, %64 : vector<8x32xi1>
    %cst_12 = arith.constant 1.000000e+00 : f32
    %cst_13 = arith.constant 5.000000e-01 : f32
    %66 = vector.broadcast %cst_12 : f32 to vector<8x32xf32>
    %67 = vector.broadcast %cst_13 : f32 to vector<8x32xf32>
    %68 = arith.select %65, %66, %67 : vector<8x32xi1>, vector<8x32xf32>
    %69 = vector.extract_strided_slice %10 {offsets = [0, 0], sizes = [8, 32], strides = [1, 1]} : vector<64x32xf32> to vector<8x32xf32>
    %70 = vector.extract_strided_slice %2 {offsets = [0, 0], sizes = [8, 1], strides = [1, 1]} : vector<8x8xf32> to vector<8x1xf32>
    %71 = vector.broadcast %70 : vector<8x1xf32> to vector<8x32xf32>
    %72 = arith.mulf %71, %14 : vector<8x32xf32>
    %73 = vector.extract_strided_slice %2 {offsets = [0, 1], sizes = [8, 1], strides = [1, 1]} : vector<8x8xf32> to vector<8x1xf32>
    %74 = vector.broadcast %73 : vector<8x1xf32> to vector<8x32xf32>
    %75 = arith.mulf %74, %17 : vector<8x32xf32>
    %76 = arith.addf %72, %75 : vector<8x32xf32>
    %77 = vector.extract_strided_slice %2 {offsets = [0, 2], sizes = [8, 1], strides = [1, 1]} : vector<8x8xf32> to vector<8x1xf32>
    %78 = vector.broadcast %77 : vector<8x1xf32> to vector<8x32xf32>
    %79 = arith.mulf %78, %20 : vector<8x32xf32>
    %80 = arith.addf %76, %79 : vector<8x32xf32>
    %81 = vector.extract_strided_slice %2 {offsets = [0, 3], sizes = [8, 1], strides = [1, 1]} : vector<8x8xf32> to vector<8x1xf32>
    %82 = vector.broadcast %81 : vector<8x1xf32> to vector<8x32xf32>
    %83 = arith.mulf %82, %23 : vector<8x32xf32>
    %84 = arith.addf %80, %83 : vector<8x32xf32>
    %85 = vector.extract_strided_slice %2 {offsets = [0, 4], sizes = [8, 1], strides = [1, 1]} : vector<8x8xf32> to vector<8x1xf32>
    %86 = vector.broadcast %85 : vector<8x1xf32> to vector<8x32xf32>
    %87 = arith.mulf %86, %26 : vector<8x32xf32>
    %88 = arith.addf %84, %87 : vector<8x32xf32>
    %89 = vector.extract_strided_slice %2 {offsets = [0, 5], sizes = [8, 1], strides = [1, 1]} : vector<8x8xf32> to vector<8x1xf32>
    %90 = vector.broadcast %89 : vector<8x1xf32> to vector<8x32xf32>
    %91 = arith.mulf %90, %29 : vector<8x32xf32>
    %92 = arith.addf %88, %91 : vector<8x32xf32>
    %93 = vector.extract_strided_slice %2 {offsets = [0, 6], sizes = [8, 1], strides = [1, 1]} : vector<8x8xf32> to vector<8x1xf32>
    %94 = vector.broadcast %93 : vector<8x1xf32> to vector<8x32xf32>
    %95 = arith.mulf %94, %32 : vector<8x32xf32>
    %96 = arith.addf %92, %95 : vector<8x32xf32>
    %97 = vector.extract_strided_slice %2 {offsets = [0, 7], sizes = [8, 1], strides = [1, 1]} : vector<8x8xf32> to vector<8x1xf32>
    %98 = vector.broadcast %97 : vector<8x1xf32> to vector<8x32xf32>
    %99 = arith.mulf %98, %35 : vector<8x32xf32>
    %100 = arith.addf %96, %99 : vector<8x32xf32>
    %101 = arith.addf %69, %100 : vector<8x32xf32>
    %102 = arith.mulf %101, %68 : vector<8x32xf32>
    %103 = math.tanh %102 : vector<8x32xf32>
    %104 = vector.extract_strided_slice %103 {offsets = [0, 0], sizes = [8, 8], strides = [1, 1]} : vector<8x32xf32> to vector<8x8xf32>
    %cst_14 = arith.constant 5.000000e-01 : f32
    %105 = vector.broadcast %cst_14 : f32 to vector<8x8xf32>
    %106 = arith.mulf %105, %104 : vector<8x8xf32>
    %cst_15 = arith.constant 5.000000e-01 : f32
    %107 = vector.broadcast %cst_15 : f32 to vector<8x8xf32>
    %108 = arith.addf %107, %106 : vector<8x8xf32>
    %109 = vector.extract_strided_slice %103 {offsets = [0, 8], sizes = [8, 8], strides = [1, 1]} : vector<8x32xf32> to vector<8x8xf32>
    %cst_16 = arith.constant 5.000000e-01 : f32
    %110 = vector.broadcast %cst_16 : f32 to vector<8x8xf32>
    %111 = arith.mulf %110, %109 : vector<8x8xf32>
    %cst_17 = arith.constant 5.000000e-01 : f32
    %112 = vector.broadcast %cst_17 : f32 to vector<8x8xf32>
    %113 = arith.addf %112, %111 : vector<8x8xf32>
    %114 = vector.extract_strided_slice %103 {offsets = [0, 16], sizes = [8, 8], strides = [1, 1]} : vector<8x32xf32> to vector<8x8xf32>
    %115 = vector.extract_strided_slice %103 {offsets = [0, 24], sizes = [8, 8], strides = [1, 1]} : vector<8x32xf32> to vector<8x8xf32>
    %cst_18 = arith.constant 5.000000e-01 : f32
    %116 = vector.broadcast %cst_18 : f32 to vector<8x8xf32>
    %117 = arith.mulf %116, %115 : vector<8x8xf32>
    %cst_19 = arith.constant 5.000000e-01 : f32
    %118 = vector.broadcast %cst_19 : f32 to vector<8x8xf32>
    %119 = arith.addf %118, %117 : vector<8x8xf32>
    %120 = arith.mulf %113, %3 : vector<8x8xf32>
    %121 = arith.mulf %108, %114 : vector<8x8xf32>
    %122 = arith.addf %120, %121 : vector<8x8xf32>
    %123 = math.tanh %122 : vector<8x8xf32>
    %124 = arith.mulf %119, %123 : vector<8x8xf32>
    %125 = vector.extract_strided_slice %10 {offsets = [8, 0], sizes = [8, 32], strides = [1, 1]} : vector<64x32xf32> to vector<8x32xf32>
    %126 = vector.extract_strided_slice %124 {offsets = [0, 0], sizes = [8, 1], strides = [1, 1]} : vector<8x8xf32> to vector<8x1xf32>
    %127 = vector.broadcast %126 : vector<8x1xf32> to vector<8x32xf32>
    %128 = arith.mulf %127, %14 : vector<8x32xf32>
    %129 = vector.extract_strided_slice %124 {offsets = [0, 1], sizes = [8, 1], strides = [1, 1]} : vector<8x8xf32> to vector<8x1xf32>
    %130 = vector.broadcast %129 : vector<8x1xf32> to vector<8x32xf32>
    %131 = arith.mulf %130, %17 : vector<8x32xf32>
    %132 = arith.addf %128, %131 : vector<8x32xf32>
    %133 = vector.extract_strided_slice %124 {offsets = [0, 2], sizes = [8, 1], strides = [1, 1]} : vector<8x8xf32> to vector<8x1xf32>
    %134 = vector.broadcast %133 : vector<8x1xf32> to vector<8x32xf32>
    %135 = arith.mulf %134, %20 : vector<8x32xf32>
    %136 = arith.addf %132, %135 : vector<8x32xf32>
    %137 = vector.extract_strided_slice %124 {offsets = [0, 3], sizes = [8, 1], strides = [1, 1]} : vector<8x8xf32> to vector<8x1xf32>
    %138 = vector.broadcast %137 : vector<8x1xf32> to vector<8x32xf32>
    %139 = arith.mulf %138, %23 : vector<8x32xf32>
    %140 = arith.addf %136, %139 : vector<8x32xf32>
    %141 = vector.extract_strided_slice %124 {offsets = [0, 4], sizes = [8, 1], strides = [1, 1]} : vector<8x8xf32> to vector<8x1xf32>
    %142 = vector.broadcast %141 : vector<8x1xf32> to vector<8x32xf32>
    %143 = arith.mulf %142, %26 : vector<8x32xf32>
    %144 = arith.addf %140, %143 : vector<8x32xf32>
    %145 = vector.extract_strided_slice %124 {offsets = [0, 5], sizes = [8, 1], strides = [1, 1]} : vector<8x8xf32> to vector<8x1xf32>
    %146 = vector.broadcast %145 : vector<8x1xf32> to vector<8x32xf32>
    %147 = arith.mulf %146, %29 : vector<8x32xf32>
    %148 = arith.addf %144, %147 : vector<8x32xf32>
    %149 = vector.extract_strided_slice %124 {offsets = [0, 6], sizes = [8, 1], strides = [1, 1]} : vector<8x8xf32> to vector<8x1xf32>
    %150 = vector.broadcast %149 : vector<8x1xf32> to vector<8x32xf32>
    %151 = arith.mulf %150, %32 : vector<8x32xf32>
    %152 = arith.addf %148, %151 : vector<8x32xf32>
    %153 = vector.extract_strided_slice %124 {offsets = [0, 7], sizes = [8, 1], strides = [1, 1]} : vector<8x8xf32> to vector<8x1xf32>
    %154 = vector.broadcast %153 : vector<8x1xf32> to vector<8x32xf32>
    %155 = arith.mulf %154, %35 : vector<8x32xf32>
    %156 = arith.addf %152, %155 : vector<8x32xf32>
    %157 = arith.addf %125, %156 : vector<8x32xf32>
    %158 = arith.mulf %157, %68 : vector<8x32xf32>
    %159 = math.tanh %158 : vector<8x32xf32>
    %160 = vector.extract_strided_slice %159 {offsets = [0, 0], sizes = [8, 8], strides = [1, 1]} : vector<8x32xf32> to vector<8x8xf32>
    %cst_20 = arith.constant 5.000000e-01 : f32
    %161 = vector.broadcast %cst_20 : f32 to vector<8x8xf32>
    %162 = arith.mulf %161, %160 : vector<8x8xf32>
    %cst_21 = arith.constant 5.000000e-01 : f32
    %163 = vector.broadcast %cst_21 : f32 to vector<8x8xf32>
    %164 = arith.addf %163, %162 : vector<8x8xf32>
    %165 = vector.extract_strided_slice %159 {offsets = [0, 8], sizes = [8, 8], strides = [1, 1]} : vector<8x32xf32> to vector<8x8xf32>
    %cst_22 = arith.constant 5.000000e-01 : f32
    %166 = vector.broadcast %cst_22 : f32 to vector<8x8xf32>
    %167 = arith.mulf %166, %165 : vector<8x8xf32>
    %cst_23 = arith.constant 5.000000e-01 : f32
    %168 = vector.broadcast %cst_23 : f32 to vector<8x8xf32>
    %169 = arith.addf %168, %167 : vector<8x8xf32>
    %170 = vector.extract_strided_slice %159 {offsets = [0, 16], sizes = [8, 8], strides = [1, 1]} : vector<8x32xf32> to vector<8x8xf32>
    %171 = vector.extract_strided_slice %159 {offsets = [0, 24], sizes = [8, 8], strides = [1, 1]} : vector<8x32xf32> to vector<8x8xf32>
    %cst_24 = arith.constant 5.000000e-01 : f32
    %172 = vector.broadcast %cst_24 : f32 to vector<8x8xf32>
    %173 = arith.mulf %172, %171 : vector<8x8xf32>
    %cst_25 = arith.constant 5.000000e-01 : f32
    %174 = vector.broadcast %cst_25 : f32 to vector<8x8xf32>
    %175 = arith.addf %174, %173 : vector<8x8xf32>
    %176 = arith.mulf %169, %122 : vector<8x8xf32>
    %177 = arith.mulf %164, %170 : vector<8x8xf32>
    %178 = arith.addf %176, %177 : vector<8x8xf32>
    %179 = math.tanh %178 : vector<8x8xf32>
    %180 = arith.mulf %175, %179 : vector<8x8xf32>
    %181 = vector.extract_strided_slice %10 {offsets = [16, 0], sizes = [8, 32], strides = [1, 1]} : vector<64x32xf32> to vector<8x32xf32>
    %182 = vector.extract_strided_slice %180 {offsets = [0, 0], sizes = [8, 1], strides = [1, 1]} : vector<8x8xf32> to vector<8x1xf32>
    %183 = vector.broadcast %182 : vector<8x1xf32> to vector<8x32xf32>
    %184 = arith.mulf %183, %14 : vector<8x32xf32>
    %185 = vector.extract_strided_slice %180 {offsets = [0, 1], sizes = [8, 1], strides = [1, 1]} : vector<8x8xf32> to vector<8x1xf32>
    %186 = vector.broadcast %185 : vector<8x1xf32> to vector<8x32xf32>
    %187 = arith.mulf %186, %17 : vector<8x32xf32>
    %188 = arith.addf %184, %187 : vector<8x32xf32>
    %189 = vector.extract_strided_slice %180 {offsets = [0, 2], sizes = [8, 1], strides = [1, 1]} : vector<8x8xf32> to vector<8x1xf32>
    %190 = vector.broadcast %189 : vector<8x1xf32> to vector<8x32xf32>
    %191 = arith.mulf %190, %20 : vector<8x32xf32>
    %192 = arith.addf %188, %191 : vector<8x32xf32>
    %193 = vector.extract_strided_slice %180 {offsets = [0, 3], sizes = [8, 1], strides = [1, 1]} : vector<8x8xf32> to vector<8x1xf32>
    %194 = vector.broadcast %193 : vector<8x1xf32> to vector<8x32xf32>
    %195 = arith.mulf %194, %23 : vector<8x32xf32>
    %196 = arith.addf %192, %195 : vector<8x32xf32>
    %197 = vector.extract_strided_slice %180 {offsets = [0, 4], sizes = [8, 1], strides = [1, 1]} : vector<8x8xf32> to vector<8x1xf32>
    %198 = vector.broadcast %197 : vector<8x1xf32> to vector<8x32xf32>
    %199 = arith.mulf %198, %26 : vector<8x32xf32>
    %200 = arith.addf %196, %199 : vector<8x32xf32>
    %201 = vector.extract_strided_slice %180 {offsets = [0, 5], sizes = [8, 1], strides = [1, 1]} : vector<8x8xf32> to vector<8x1xf32>
    %202 = vector.broadcast %201 : vector<8x1xf32> to vector<8x32xf32>
    %203 = arith.mulf %202, %29 : vector<8x32xf32>
    %204 = arith.addf %200, %203 : vector<8x32xf32>
    %205 = vector.extract_strided_slice %180 {offsets = [0, 6], sizes = [8, 1], strides = [1, 1]} : vector<8x8xf32> to vector<8x1xf32>
    %206 = vector.broadcast %205 : vector<8x1xf32> to vector<8x32xf32>
    %207 = arith.mulf %206, %32 : vector<8x32xf32>
    %208 = arith.addf %204, %207 : vector<8x32xf32>
    %209 = vector.extract_strided_slice %180 {offsets = [0, 7], sizes = [8, 1], strides = [1, 1]} : vector<8x8xf32> to vector<8x1xf32>
    %210 = vector.broadcast %209 : vector<8x1xf32> to vector<8x32xf32>
    %211 = arith.mulf %210, %35 : vector<8x32xf32>
    %212 = arith.addf %208, %211 : vector<8x32xf32>
    %213 = arith.addf %181, %212 : vector<8x32xf32>
    %214 = arith.mulf %213, %68 : vector<8x32xf32>
    %215 = math.tanh %214 : vector<8x32xf32>
    %216 = vector.extract_strided_slice %215 {offsets = [0, 0], sizes = [8, 8], strides = [1, 1]} : vector<8x32xf32> to vector<8x8xf32>
    %cst_26 = arith.constant 5.000000e-01 : f32
    %217 = vector.broadcast %cst_26 : f32 to vector<8x8xf32>
    %218 = arith.mulf %217, %216 : vector<8x8xf32>
    %cst_27 = arith.constant 5.000000e-01 : f32
    %219 = vector.broadcast %cst_27 : f32 to vector<8x8xf32>
    %220 = arith.addf %219, %218 : vector<8x8xf32>
    %221 = vector.extract_strided_slice %215 {offsets = [0, 8], sizes = [8, 8], strides = [1, 1]} : vector<8x32xf32> to vector<8x8xf32>
    %cst_28 = arith.constant 5.000000e-01 : f32
    %222 = vector.broadcast %cst_28 : f32 to vector<8x8xf32>
    %223 = arith.mulf %222, %221 : vector<8x8xf32>
    %cst_29 = arith.constant 5.000000e-01 : f32
    %224 = vector.broadcast %cst_29 : f32 to vector<8x8xf32>
    %225 = arith.addf %224, %223 : vector<8x8xf32>
    %226 = vector.extract_strided_slice %215 {offsets = [0, 16], sizes = [8, 8], strides = [1, 1]} : vector<8x32xf32> to vector<8x8xf32>
    %227 = vector.extract_strided_slice %215 {offsets = [0, 24], sizes = [8, 8], strides = [1, 1]} : vector<8x32xf32> to vector<8x8xf32>
    %cst_30 = arith.constant 5.000000e-01 : f32
    %228 = vector.broadcast %cst_30 : f32 to vector<8x8xf32>
    %229 = arith.mulf %228, %227 : vector<8x8xf32>
    %cst_31 = arith.constant 5.000000e-01 : f32
    %230 = vector.broadcast %cst_31 : f32 to vector<8x8xf32>
    %231 = arith.addf %230, %229 : vector<8x8xf32>
    %232 = arith.mulf %225, %178 : vector<8x8xf32>
    %233 = arith.mulf %220, %226 : vector<8x8xf32>
    %234 = arith.addf %232, %233 : vector<8x8xf32>
    %235 = math.tanh %234 : vector<8x8xf32>
    %236 = arith.mulf %231, %235 : vector<8x8xf32>
    %237 = vector.extract_strided_slice %10 {offsets = [24, 0], sizes = [8, 32], strides = [1, 1]} : vector<64x32xf32> to vector<8x32xf32>
    %238 = vector.extract_strided_slice %236 {offsets = [0, 0], sizes = [8, 1], strides = [1, 1]} : vector<8x8xf32> to vector<8x1xf32>
    %239 = vector.broadcast %238 : vector<8x1xf32> to vector<8x32xf32>
    %240 = arith.mulf %239, %14 : vector<8x32xf32>
    %241 = vector.extract_strided_slice %236 {offsets = [0, 1], sizes = [8, 1], strides = [1, 1]} : vector<8x8xf32> to vector<8x1xf32>
    %242 = vector.broadcast %241 : vector<8x1xf32> to vector<8x32xf32>
    %243 = arith.mulf %242, %17 : vector<8x32xf32>
    %244 = arith.addf %240, %243 : vector<8x32xf32>
    %245 = vector.extract_strided_slice %236 {offsets = [0, 2], sizes = [8, 1], strides = [1, 1]} : vector<8x8xf32> to vector<8x1xf32>
    %246 = vector.broadcast %245 : vector<8x1xf32> to vector<8x32xf32>
    %247 = arith.mulf %246, %20 : vector<8x32xf32>
    %248 = arith.addf %244, %247 : vector<8x32xf32>
    %249 = vector.extract_strided_slice %236 {offsets = [0, 3], sizes = [8, 1], strides = [1, 1]} : vector<8x8xf32> to vector<8x1xf32>
    %250 = vector.broadcast %249 : vector<8x1xf32> to vector<8x32xf32>
    %251 = arith.mulf %250, %23 : vector<8x32xf32>
    %252 = arith.addf %248, %251 : vector<8x32xf32>
    %253 = vector.extract_strided_slice %236 {offsets = [0, 4], sizes = [8, 1], strides = [1, 1]} : vector<8x8xf32> to vector<8x1xf32>
    %254 = vector.broadcast %253 : vector<8x1xf32> to vector<8x32xf32>
    %255 = arith.mulf %254, %26 : vector<8x32xf32>
    %256 = arith.addf %252, %255 : vector<8x32xf32>
    %257 = vector.extract_strided_slice %236 {offsets = [0, 5], sizes = [8, 1], strides = [1, 1]} : vector<8x8xf32> to vector<8x1xf32>
    %258 = vector.broadcast %257 : vector<8x1xf32> to vector<8x32xf32>
    %259 = arith.mulf %258, %29 : vector<8x32xf32>
    %260 = arith.addf %256, %259 : vector<8x32xf32>
    %261 = vector.extract_strided_slice %236 {offsets = [0, 6], sizes = [8, 1], strides = [1, 1]} : vector<8x8xf32> to vector<8x1xf32>
    %262 = vector.broadcast %261 : vector<8x1xf32> to vector<8x32xf32>
    %263 = arith.mulf %262, %32 : vector<8x32xf32>
    %264 = arith.addf %260, %263 : vector<8x32xf32>
    %265 = vector.extract_strided_slice %236 {offsets = [0, 7], sizes = [8, 1], strides = [1, 1]} : vector<8x8xf32> to vector<8x1xf32>
    %266 = vector.broadcast %265 : vector<8x1xf32> to vector<8x32xf32>
    %267 = arith.mulf %266, %35 : vector<8x32xf32>
    %268 = arith.addf %264, %267 : vector<8x32xf32>
    %269 = arith.addf %237, %268 : vector<8x32xf32>
    %270 = arith.mulf %269, %68 : vector<8x32xf32>
    %271 = math.tanh %270 : vector<8x32xf32>
    %272 = vector.extract_strided_slice %271 {offsets = [0, 0], sizes = [8, 8], strides = [1, 1]} : vector<8x32xf32> to vector<8x8xf32>
    %cst_32 = arith.constant 5.000000e-01 : f32
    %273 = vector.broadcast %cst_32 : f32 to vector<8x8xf32>
    %274 = arith.mulf %273, %272 : vector<8x8xf32>
    %cst_33 = arith.constant 5.000000e-01 : f32
    %275 = vector.broadcast %cst_33 : f32 to vector<8x8xf32>
    %276 = arith.addf %275, %274 : vector<8x8xf32>
    %277 = vector.extract_strided_slice %271 {offsets = [0, 8], sizes = [8, 8], strides = [1, 1]} : vector<8x32xf32> to vector<8x8xf32>
    %cst_34 = arith.constant 5.000000e-01 : f32
    %278 = vector.broadcast %cst_34 : f32 to vector<8x8xf32>
    %279 = arith.mulf %278, %277 : vector<8x8xf32>
    %cst_35 = arith.constant 5.000000e-01 : f32
    %280 = vector.broadcast %cst_35 : f32 to vector<8x8xf32>
    %281 = arith.addf %280, %279 : vector<8x8xf32>
    %282 = vector.extract_strided_slice %271 {offsets = [0, 16], sizes = [8, 8], strides = [1, 1]} : vector<8x32xf32> to vector<8x8xf32>
    %283 = vector.extract_strided_slice %271 {offsets = [0, 24], sizes = [8, 8], strides = [1, 1]} : vector<8x32xf32> to vector<8x8xf32>
    %cst_36 = arith.constant 5.000000e-01 : f32
    %284 = vector.broadcast %cst_36 : f32 to vector<8x8xf32>
    %285 = arith.mulf %284, %283 : vector<8x8xf32>
    %cst_37 = arith.constant 5.000000e-01 : f32
    %286 = vector.broadcast %cst_37 : f32 to vector<8x8xf32>
    %287 = arith.addf %286, %285 : vector<8x8xf32>
    %288 = arith.mulf %281, %234 : vector<8x8xf32>
    %289 = arith.mulf %276, %282 : vector<8x8xf32>
    %290 = arith.addf %288, %289 : vector<8x8xf32>
    %291 = math.tanh %290 : vector<8x8xf32>
    %292 = arith.mulf %287, %291 : vector<8x8xf32>
    %293 = vector.extract_strided_slice %10 {offsets = [32, 0], sizes = [8, 32], strides = [1, 1]} : vector<64x32xf32> to vector<8x32xf32>
    %294 = vector.extract_strided_slice %292 {offsets = [0, 0], sizes = [8, 1], strides = [1, 1]} : vector<8x8xf32> to vector<8x1xf32>
    %295 = vector.broadcast %294 : vector<8x1xf32> to vector<8x32xf32>
    %296 = arith.mulf %295, %14 : vector<8x32xf32>
    %297 = vector.extract_strided_slice %292 {offsets = [0, 1], sizes = [8, 1], strides = [1, 1]} : vector<8x8xf32> to vector<8x1xf32>
    %298 = vector.broadcast %297 : vector<8x1xf32> to vector<8x32xf32>
    %299 = arith.mulf %298, %17 : vector<8x32xf32>
    %300 = arith.addf %296, %299 : vector<8x32xf32>
    %301 = vector.extract_strided_slice %292 {offsets = [0, 2], sizes = [8, 1], strides = [1, 1]} : vector<8x8xf32> to vector<8x1xf32>
    %302 = vector.broadcast %301 : vector<8x1xf32> to vector<8x32xf32>
    %303 = arith.mulf %302, %20 : vector<8x32xf32>
    %304 = arith.addf %300, %303 : vector<8x32xf32>
    %305 = vector.extract_strided_slice %292 {offsets = [0, 3], sizes = [8, 1], strides = [1, 1]} : vector<8x8xf32> to vector<8x1xf32>
    %306 = vector.broadcast %305 : vector<8x1xf32> to vector<8x32xf32>
    %307 = arith.mulf %306, %23 : vector<8x32xf32>
    %308 = arith.addf %304, %307 : vector<8x32xf32>
    %309 = vector.extract_strided_slice %292 {offsets = [0, 4], sizes = [8, 1], strides = [1, 1]} : vector<8x8xf32> to vector<8x1xf32>
    %310 = vector.broadcast %309 : vector<8x1xf32> to vector<8x32xf32>
    %311 = arith.mulf %310, %26 : vector<8x32xf32>
    %312 = arith.addf %308, %311 : vector<8x32xf32>
    %313 = vector.extract_strided_slice %292 {offsets = [0, 5], sizes = [8, 1], strides = [1, 1]} : vector<8x8xf32> to vector<8x1xf32>
    %314 = vector.broadcast %313 : vector<8x1xf32> to vector<8x32xf32>
    %315 = arith.mulf %314, %29 : vector<8x32xf32>
    %316 = arith.addf %312, %315 : vector<8x32xf32>
    %317 = vector.extract_strided_slice %292 {offsets = [0, 6], sizes = [8, 1], strides = [1, 1]} : vector<8x8xf32> to vector<8x1xf32>
    %318 = vector.broadcast %317 : vector<8x1xf32> to vector<8x32xf32>
    %319 = arith.mulf %318, %32 : vector<8x32xf32>
    %320 = arith.addf %316, %319 : vector<8x32xf32>
    %321 = vector.extract_strided_slice %292 {offsets = [0, 7], sizes = [8, 1], strides = [1, 1]} : vector<8x8xf32> to vector<8x1xf32>
    %322 = vector.broadcast %321 : vector<8x1xf32> to vector<8x32xf32>
    %323 = arith.mulf %322, %35 : vector<8x32xf32>
    %324 = arith.addf %320, %323 : vector<8x32xf32>
    %325 = arith.addf %293, %324 : vector<8x32xf32>
    %326 = arith.mulf %325, %68 : vector<8x32xf32>
    %327 = math.tanh %326 : vector<8x32xf32>
    %328 = vector.extract_strided_slice %327 {offsets = [0, 0], sizes = [8, 8], strides = [1, 1]} : vector<8x32xf32> to vector<8x8xf32>
    %cst_38 = arith.constant 5.000000e-01 : f32
    %329 = vector.broadcast %cst_38 : f32 to vector<8x8xf32>
    %330 = arith.mulf %329, %328 : vector<8x8xf32>
    %cst_39 = arith.constant 5.000000e-01 : f32
    %331 = vector.broadcast %cst_39 : f32 to vector<8x8xf32>
    %332 = arith.addf %331, %330 : vector<8x8xf32>
    %333 = vector.extract_strided_slice %327 {offsets = [0, 8], sizes = [8, 8], strides = [1, 1]} : vector<8x32xf32> to vector<8x8xf32>
    %cst_40 = arith.constant 5.000000e-01 : f32
    %334 = vector.broadcast %cst_40 : f32 to vector<8x8xf32>
    %335 = arith.mulf %334, %333 : vector<8x8xf32>
    %cst_41 = arith.constant 5.000000e-01 : f32
    %336 = vector.broadcast %cst_41 : f32 to vector<8x8xf32>
    %337 = arith.addf %336, %335 : vector<8x8xf32>
    %338 = vector.extract_strided_slice %327 {offsets = [0, 16], sizes = [8, 8], strides = [1, 1]} : vector<8x32xf32> to vector<8x8xf32>
    %339 = vector.extract_strided_slice %327 {offsets = [0, 24], sizes = [8, 8], strides = [1, 1]} : vector<8x32xf32> to vector<8x8xf32>
    %cst_42 = arith.constant 5.000000e-01 : f32
    %340 = vector.broadcast %cst_42 : f32 to vector<8x8xf32>
    %341 = arith.mulf %340, %339 : vector<8x8xf32>
    %cst_43 = arith.constant 5.000000e-01 : f32
    %342 = vector.broadcast %cst_43 : f32 to vector<8x8xf32>
    %343 = arith.addf %342, %341 : vector<8x8xf32>
    %344 = arith.mulf %337, %290 : vector<8x8xf32>
    %345 = arith.mulf %332, %338 : vector<8x8xf32>
    %346 = arith.addf %344, %345 : vector<8x8xf32>
    %347 = math.tanh %346 : vector<8x8xf32>
    %348 = arith.mulf %343, %347 : vector<8x8xf32>
    %349 = vector.extract_strided_slice %10 {offsets = [40, 0], sizes = [8, 32], strides = [1, 1]} : vector<64x32xf32> to vector<8x32xf32>
    %350 = vector.extract_strided_slice %348 {offsets = [0, 0], sizes = [8, 1], strides = [1, 1]} : vector<8x8xf32> to vector<8x1xf32>
    %351 = vector.broadcast %350 : vector<8x1xf32> to vector<8x32xf32>
    %352 = arith.mulf %351, %14 : vector<8x32xf32>
    %353 = vector.extract_strided_slice %348 {offsets = [0, 1], sizes = [8, 1], strides = [1, 1]} : vector<8x8xf32> to vector<8x1xf32>
    %354 = vector.broadcast %353 : vector<8x1xf32> to vector<8x32xf32>
    %355 = arith.mulf %354, %17 : vector<8x32xf32>
    %356 = arith.addf %352, %355 : vector<8x32xf32>
    %357 = vector.extract_strided_slice %348 {offsets = [0, 2], sizes = [8, 1], strides = [1, 1]} : vector<8x8xf32> to vector<8x1xf32>
    %358 = vector.broadcast %357 : vector<8x1xf32> to vector<8x32xf32>
    %359 = arith.mulf %358, %20 : vector<8x32xf32>
    %360 = arith.addf %356, %359 : vector<8x32xf32>
    %361 = vector.extract_strided_slice %348 {offsets = [0, 3], sizes = [8, 1], strides = [1, 1]} : vector<8x8xf32> to vector<8x1xf32>
    %362 = vector.broadcast %361 : vector<8x1xf32> to vector<8x32xf32>
    %363 = arith.mulf %362, %23 : vector<8x32xf32>
    %364 = arith.addf %360, %363 : vector<8x32xf32>
    %365 = vector.extract_strided_slice %348 {offsets = [0, 4], sizes = [8, 1], strides = [1, 1]} : vector<8x8xf32> to vector<8x1xf32>
    %366 = vector.broadcast %365 : vector<8x1xf32> to vector<8x32xf32>
    %367 = arith.mulf %366, %26 : vector<8x32xf32>
    %368 = arith.addf %364, %367 : vector<8x32xf32>
    %369 = vector.extract_strided_slice %348 {offsets = [0, 5], sizes = [8, 1], strides = [1, 1]} : vector<8x8xf32> to vector<8x1xf32>
    %370 = vector.broadcast %369 : vector<8x1xf32> to vector<8x32xf32>
    %371 = arith.mulf %370, %29 : vector<8x32xf32>
    %372 = arith.addf %368, %371 : vector<8x32xf32>
    %373 = vector.extract_strided_slice %348 {offsets = [0, 6], sizes = [8, 1], strides = [1, 1]} : vector<8x8xf32> to vector<8x1xf32>
    %374 = vector.broadcast %373 : vector<8x1xf32> to vector<8x32xf32>
    %375 = arith.mulf %374, %32 : vector<8x32xf32>
    %376 = arith.addf %372, %375 : vector<8x32xf32>
    %377 = vector.extract_strided_slice %348 {offsets = [0, 7], sizes = [8, 1], strides = [1, 1]} : vector<8x8xf32> to vector<8x1xf32>
    %378 = vector.broadcast %377 : vector<8x1xf32> to vector<8x32xf32>
    %379 = arith.mulf %378, %35 : vector<8x32xf32>
    %380 = arith.addf %376, %379 : vector<8x32xf32>
    %381 = arith.addf %349, %380 : vector<8x32xf32>
    %382 = arith.mulf %381, %68 : vector<8x32xf32>
    %383 = math.tanh %382 : vector<8x32xf32>
    %384 = vector.extract_strided_slice %383 {offsets = [0, 0], sizes = [8, 8], strides = [1, 1]} : vector<8x32xf32> to vector<8x8xf32>
    %cst_44 = arith.constant 5.000000e-01 : f32
    %385 = vector.broadcast %cst_44 : f32 to vector<8x8xf32>
    %386 = arith.mulf %385, %384 : vector<8x8xf32>
    %cst_45 = arith.constant 5.000000e-01 : f32
    %387 = vector.broadcast %cst_45 : f32 to vector<8x8xf32>
    %388 = arith.addf %387, %386 : vector<8x8xf32>
    %389 = vector.extract_strided_slice %383 {offsets = [0, 8], sizes = [8, 8], strides = [1, 1]} : vector<8x32xf32> to vector<8x8xf32>
    %cst_46 = arith.constant 5.000000e-01 : f32
    %390 = vector.broadcast %cst_46 : f32 to vector<8x8xf32>
    %391 = arith.mulf %390, %389 : vector<8x8xf32>
    %cst_47 = arith.constant 5.000000e-01 : f32
    %392 = vector.broadcast %cst_47 : f32 to vector<8x8xf32>
    %393 = arith.addf %392, %391 : vector<8x8xf32>
    %394 = vector.extract_strided_slice %383 {offsets = [0, 16], sizes = [8, 8], strides = [1, 1]} : vector<8x32xf32> to vector<8x8xf32>
    %395 = vector.extract_strided_slice %383 {offsets = [0, 24], sizes = [8, 8], strides = [1, 1]} : vector<8x32xf32> to vector<8x8xf32>
    %cst_48 = arith.constant 5.000000e-01 : f32
    %396 = vector.broadcast %cst_48 : f32 to vector<8x8xf32>
    %397 = arith.mulf %396, %395 : vector<8x8xf32>
    %cst_49 = arith.constant 5.000000e-01 : f32
    %398 = vector.broadcast %cst_49 : f32 to vector<8x8xf32>
    %399 = arith.addf %398, %397 : vector<8x8xf32>
    %400 = arith.mulf %393, %346 : vector<8x8xf32>
    %401 = arith.mulf %388, %394 : vector<8x8xf32>
    %402 = arith.addf %400, %401 : vector<8x8xf32>
    %403 = math.tanh %402 : vector<8x8xf32>
    %404 = arith.mulf %399, %403 : vector<8x8xf32>
    %405 = vector.extract_strided_slice %10 {offsets = [48, 0], sizes = [8, 32], strides = [1, 1]} : vector<64x32xf32> to vector<8x32xf32>
    %406 = vector.extract_strided_slice %404 {offsets = [0, 0], sizes = [8, 1], strides = [1, 1]} : vector<8x8xf32> to vector<8x1xf32>
    %407 = vector.broadcast %406 : vector<8x1xf32> to vector<8x32xf32>
    %408 = arith.mulf %407, %14 : vector<8x32xf32>
    %409 = vector.extract_strided_slice %404 {offsets = [0, 1], sizes = [8, 1], strides = [1, 1]} : vector<8x8xf32> to vector<8x1xf32>
    %410 = vector.broadcast %409 : vector<8x1xf32> to vector<8x32xf32>
    %411 = arith.mulf %410, %17 : vector<8x32xf32>
    %412 = arith.addf %408, %411 : vector<8x32xf32>
    %413 = vector.extract_strided_slice %404 {offsets = [0, 2], sizes = [8, 1], strides = [1, 1]} : vector<8x8xf32> to vector<8x1xf32>
    %414 = vector.broadcast %413 : vector<8x1xf32> to vector<8x32xf32>
    %415 = arith.mulf %414, %20 : vector<8x32xf32>
    %416 = arith.addf %412, %415 : vector<8x32xf32>
    %417 = vector.extract_strided_slice %404 {offsets = [0, 3], sizes = [8, 1], strides = [1, 1]} : vector<8x8xf32> to vector<8x1xf32>
    %418 = vector.broadcast %417 : vector<8x1xf32> to vector<8x32xf32>
    %419 = arith.mulf %418, %23 : vector<8x32xf32>
    %420 = arith.addf %416, %419 : vector<8x32xf32>
    %421 = vector.extract_strided_slice %404 {offsets = [0, 4], sizes = [8, 1], strides = [1, 1]} : vector<8x8xf32> to vector<8x1xf32>
    %422 = vector.broadcast %421 : vector<8x1xf32> to vector<8x32xf32>
    %423 = arith.mulf %422, %26 : vector<8x32xf32>
    %424 = arith.addf %420, %423 : vector<8x32xf32>
    %425 = vector.extract_strided_slice %404 {offsets = [0, 5], sizes = [8, 1], strides = [1, 1]} : vector<8x8xf32> to vector<8x1xf32>
    %426 = vector.broadcast %425 : vector<8x1xf32> to vector<8x32xf32>
    %427 = arith.mulf %426, %29 : vector<8x32xf32>
    %428 = arith.addf %424, %427 : vector<8x32xf32>
    %429 = vector.extract_strided_slice %404 {offsets = [0, 6], sizes = [8, 1], strides = [1, 1]} : vector<8x8xf32> to vector<8x1xf32>
    %430 = vector.broadcast %429 : vector<8x1xf32> to vector<8x32xf32>
    %431 = arith.mulf %430, %32 : vector<8x32xf32>
    %432 = arith.addf %428, %431 : vector<8x32xf32>
    %433 = vector.extract_strided_slice %404 {offsets = [0, 7], sizes = [8, 1], strides = [1, 1]} : vector<8x8xf32> to vector<8x1xf32>
    %434 = vector.broadcast %433 : vector<8x1xf32> to vector<8x32xf32>
    %435 = arith.mulf %434, %35 : vector<8x32xf32>
    %436 = arith.addf %432, %435 : vector<8x32xf32>
    %437 = arith.addf %405, %436 : vector<8x32xf32>
    %438 = arith.mulf %437, %68 : vector<8x32xf32>
    %439 = math.tanh %438 : vector<8x32xf32>
    %440 = vector.extract_strided_slice %439 {offsets = [0, 0], sizes = [8, 8], strides = [1, 1]} : vector<8x32xf32> to vector<8x8xf32>
    %cst_50 = arith.constant 5.000000e-01 : f32
    %441 = vector.broadcast %cst_50 : f32 to vector<8x8xf32>
    %442 = arith.mulf %441, %440 : vector<8x8xf32>
    %cst_51 = arith.constant 5.000000e-01 : f32
    %443 = vector.broadcast %cst_51 : f32 to vector<8x8xf32>
    %444 = arith.addf %443, %442 : vector<8x8xf32>
    %445 = vector.extract_strided_slice %439 {offsets = [0, 8], sizes = [8, 8], strides = [1, 1]} : vector<8x32xf32> to vector<8x8xf32>
    %cst_52 = arith.constant 5.000000e-01 : f32
    %446 = vector.broadcast %cst_52 : f32 to vector<8x8xf32>
    %447 = arith.mulf %446, %445 : vector<8x8xf32>
    %cst_53 = arith.constant 5.000000e-01 : f32
    %448 = vector.broadcast %cst_53 : f32 to vector<8x8xf32>
    %449 = arith.addf %448, %447 : vector<8x8xf32>
    %450 = vector.extract_strided_slice %439 {offsets = [0, 16], sizes = [8, 8], strides = [1, 1]} : vector<8x32xf32> to vector<8x8xf32>
    %451 = vector.extract_strided_slice %439 {offsets = [0, 24], sizes = [8, 8], strides = [1, 1]} : vector<8x32xf32> to vector<8x8xf32>
    %cst_54 = arith.constant 5.000000e-01 : f32
    %452 = vector.broadcast %cst_54 : f32 to vector<8x8xf32>
    %453 = arith.mulf %452, %451 : vector<8x8xf32>
    %cst_55 = arith.constant 5.000000e-01 : f32
    %454 = vector.broadcast %cst_55 : f32 to vector<8x8xf32>
    %455 = arith.addf %454, %453 : vector<8x8xf32>
    %456 = arith.mulf %449, %402 : vector<8x8xf32>
    %457 = arith.mulf %444, %450 : vector<8x8xf32>
    %458 = arith.addf %456, %457 : vector<8x8xf32>
    %459 = math.tanh %458 : vector<8x8xf32>
    %460 = arith.mulf %455, %459 : vector<8x8xf32>
    %461 = vector.extract_strided_slice %10 {offsets = [56, 0], sizes = [8, 32], strides = [1, 1]} : vector<64x32xf32> to vector<8x32xf32>
    %462 = vector.extract_strided_slice %460 {offsets = [0, 0], sizes = [8, 1], strides = [1, 1]} : vector<8x8xf32> to vector<8x1xf32>
    %463 = vector.broadcast %462 : vector<8x1xf32> to vector<8x32xf32>
    %464 = arith.mulf %463, %14 : vector<8x32xf32>
    %465 = vector.extract_strided_slice %460 {offsets = [0, 1], sizes = [8, 1], strides = [1, 1]} : vector<8x8xf32> to vector<8x1xf32>
    %466 = vector.broadcast %465 : vector<8x1xf32> to vector<8x32xf32>
    %467 = arith.mulf %466, %17 : vector<8x32xf32>
    %468 = arith.addf %464, %467 : vector<8x32xf32>
    %469 = vector.extract_strided_slice %460 {offsets = [0, 2], sizes = [8, 1], strides = [1, 1]} : vector<8x8xf32> to vector<8x1xf32>
    %470 = vector.broadcast %469 : vector<8x1xf32> to vector<8x32xf32>
    %471 = arith.mulf %470, %20 : vector<8x32xf32>
    %472 = arith.addf %468, %471 : vector<8x32xf32>
    %473 = vector.extract_strided_slice %460 {offsets = [0, 3], sizes = [8, 1], strides = [1, 1]} : vector<8x8xf32> to vector<8x1xf32>
    %474 = vector.broadcast %473 : vector<8x1xf32> to vector<8x32xf32>
    %475 = arith.mulf %474, %23 : vector<8x32xf32>
    %476 = arith.addf %472, %475 : vector<8x32xf32>
    %477 = vector.extract_strided_slice %460 {offsets = [0, 4], sizes = [8, 1], strides = [1, 1]} : vector<8x8xf32> to vector<8x1xf32>
    %478 = vector.broadcast %477 : vector<8x1xf32> to vector<8x32xf32>
    %479 = arith.mulf %478, %26 : vector<8x32xf32>
    %480 = arith.addf %476, %479 : vector<8x32xf32>
    %481 = vector.extract_strided_slice %460 {offsets = [0, 5], sizes = [8, 1], strides = [1, 1]} : vector<8x8xf32> to vector<8x1xf32>
    %482 = vector.broadcast %481 : vector<8x1xf32> to vector<8x32xf32>
    %483 = arith.mulf %482, %29 : vector<8x32xf32>
    %484 = arith.addf %480, %483 : vector<8x32xf32>
    %485 = vector.extract_strided_slice %460 {offsets = [0, 6], sizes = [8, 1], strides = [1, 1]} : vector<8x8xf32> to vector<8x1xf32>
    %486 = vector.broadcast %485 : vector<8x1xf32> to vector<8x32xf32>
    %487 = arith.mulf %486, %32 : vector<8x32xf32>
    %488 = arith.addf %484, %487 : vector<8x32xf32>
    %489 = vector.extract_strided_slice %460 {offsets = [0, 7], sizes = [8, 1], strides = [1, 1]} : vector<8x8xf32> to vector<8x1xf32>
    %490 = vector.broadcast %489 : vector<8x1xf32> to vector<8x32xf32>
    %491 = arith.mulf %490, %35 : vector<8x32xf32>
    %492 = arith.addf %488, %491 : vector<8x32xf32>
    %493 = arith.addf %461, %492 : vector<8x32xf32>
    %494 = arith.mulf %493, %68 : vector<8x32xf32>
    %495 = math.tanh %494 : vector<8x32xf32>
    %496 = vector.extract_strided_slice %495 {offsets = [0, 0], sizes = [8, 8], strides = [1, 1]} : vector<8x32xf32> to vector<8x8xf32>
    %cst_56 = arith.constant 5.000000e-01 : f32
    %497 = vector.broadcast %cst_56 : f32 to vector<8x8xf32>
    %498 = arith.mulf %497, %496 : vector<8x8xf32>
    %cst_57 = arith.constant 5.000000e-01 : f32
    %499 = vector.broadcast %cst_57 : f32 to vector<8x8xf32>
    %500 = arith.addf %499, %498 : vector<8x8xf32>
    %501 = vector.extract_strided_slice %495 {offsets = [0, 8], sizes = [8, 8], strides = [1, 1]} : vector<8x32xf32> to vector<8x8xf32>
    %cst_58 = arith.constant 5.000000e-01 : f32
    %502 = vector.broadcast %cst_58 : f32 to vector<8x8xf32>
    %503 = arith.mulf %502, %501 : vector<8x8xf32>
    %cst_59 = arith.constant 5.000000e-01 : f32
    %504 = vector.broadcast %cst_59 : f32 to vector<8x8xf32>
    %505 = arith.addf %504, %503 : vector<8x8xf32>
    %506 = vector.extract_strided_slice %495 {offsets = [0, 16], sizes = [8, 8], strides = [1, 1]} : vector<8x32xf32> to vector<8x8xf32>
    %507 = vector.extract_strided_slice %495 {offsets = [0, 24], sizes = [8, 8], strides = [1, 1]} : vector<8x32xf32> to vector<8x8xf32>
    %cst_60 = arith.constant 5.000000e-01 : f32
    %508 = vector.broadcast %cst_60 : f32 to vector<8x8xf32>
    %509 = arith.mulf %508, %507 : vector<8x8xf32>
    %cst_61 = arith.constant 5.000000e-01 : f32
    %510 = vector.broadcast %cst_61 : f32 to vector<8x8xf32>
    %511 = arith.addf %510, %509 : vector<8x8xf32>
    %512 = arith.mulf %505, %458 : vector<8x8xf32>
    %513 = arith.mulf %500, %506 : vector<8x8xf32>
    %514 = arith.addf %512, %513 : vector<8x8xf32>
    %515 = math.tanh %514 : vector<8x8xf32>
    %516 = arith.mulf %511, %515 : vector<8x8xf32>
    %517 = vector.extract_strided_slice %11 {offsets = [0, 0], sizes = [8, 32], strides = [1, 1]} : vector<64x32xf32> to vector<8x32xf32>
    %518 = vector.extract_strided_slice %516 {offsets = [0, 0], sizes = [8, 1], strides = [1, 1]} : vector<8x8xf32> to vector<8x1xf32>
    %519 = vector.broadcast %518 : vector<8x1xf32> to vector<8x32xf32>
    %520 = arith.mulf %519, %38 : vector<8x32xf32>
    %521 = vector.extract_strided_slice %516 {offsets = [0, 1], sizes = [8, 1], strides = [1, 1]} : vector<8x8xf32> to vector<8x1xf32>
    %522 = vector.broadcast %521 : vector<8x1xf32> to vector<8x32xf32>
    %523 = arith.mulf %522, %41 : vector<8x32xf32>
    %524 = arith.addf %520, %523 : vector<8x32xf32>
    %525 = vector.extract_strided_slice %516 {offsets = [0, 2], sizes = [8, 1], strides = [1, 1]} : vector<8x8xf32> to vector<8x1xf32>
    %526 = vector.broadcast %525 : vector<8x1xf32> to vector<8x32xf32>
    %527 = arith.mulf %526, %44 : vector<8x32xf32>
    %528 = arith.addf %524, %527 : vector<8x32xf32>
    %529 = vector.extract_strided_slice %516 {offsets = [0, 3], sizes = [8, 1], strides = [1, 1]} : vector<8x8xf32> to vector<8x1xf32>
    %530 = vector.broadcast %529 : vector<8x1xf32> to vector<8x32xf32>
    %531 = arith.mulf %530, %47 : vector<8x32xf32>
    %532 = arith.addf %528, %531 : vector<8x32xf32>
    %533 = vector.extract_strided_slice %516 {offsets = [0, 4], sizes = [8, 1], strides = [1, 1]} : vector<8x8xf32> to vector<8x1xf32>
    %534 = vector.broadcast %533 : vector<8x1xf32> to vector<8x32xf32>
    %535 = arith.mulf %534, %50 : vector<8x32xf32>
    %536 = arith.addf %532, %535 : vector<8x32xf32>
    %537 = vector.extract_strided_slice %516 {offsets = [0, 5], sizes = [8, 1], strides = [1, 1]} : vector<8x8xf32> to vector<8x1xf32>
    %538 = vector.broadcast %537 : vector<8x1xf32> to vector<8x32xf32>
    %539 = arith.mulf %538, %53 : vector<8x32xf32>
    %540 = arith.addf %536, %539 : vector<8x32xf32>
    %541 = vector.extract_strided_slice %516 {offsets = [0, 6], sizes = [8, 1], strides = [1, 1]} : vector<8x8xf32> to vector<8x1xf32>
    %542 = vector.broadcast %541 : vector<8x1xf32> to vector<8x32xf32>
    %543 = arith.mulf %542, %56 : vector<8x32xf32>
    %544 = arith.addf %540, %543 : vector<8x32xf32>
    %545 = vector.extract_strided_slice %516 {offsets = [0, 7], sizes = [8, 1], strides = [1, 1]} : vector<8x8xf32> to vector<8x1xf32>
    %546 = vector.broadcast %545 : vector<8x1xf32> to vector<8x32xf32>
    %547 = arith.mulf %546, %59 : vector<8x32xf32>
    %548 = arith.addf %544, %547 : vector<8x32xf32>
    %549 = arith.addf %517, %548 : vector<8x32xf32>
    %550 = arith.mulf %549, %68 : vector<8x32xf32>
    %551 = math.tanh %550 : vector<8x32xf32>
    %552 = vector.extract_strided_slice %551 {offsets = [0, 0], sizes = [8, 8], strides = [1, 1]} : vector<8x32xf32> to vector<8x8xf32>
    %cst_62 = arith.constant 5.000000e-01 : f32
    %553 = vector.broadcast %cst_62 : f32 to vector<8x8xf32>
    %554 = arith.mulf %553, %552 : vector<8x8xf32>
    %cst_63 = arith.constant 5.000000e-01 : f32
    %555 = vector.broadcast %cst_63 : f32 to vector<8x8xf32>
    %556 = arith.addf %555, %554 : vector<8x8xf32>
    %557 = vector.extract_strided_slice %551 {offsets = [0, 8], sizes = [8, 8], strides = [1, 1]} : vector<8x32xf32> to vector<8x8xf32>
    %cst_64 = arith.constant 5.000000e-01 : f32
    %558 = vector.broadcast %cst_64 : f32 to vector<8x8xf32>
    %559 = arith.mulf %558, %557 : vector<8x8xf32>
    %cst_65 = arith.constant 5.000000e-01 : f32
    %560 = vector.broadcast %cst_65 : f32 to vector<8x8xf32>
    %561 = arith.addf %560, %559 : vector<8x8xf32>
    %562 = vector.extract_strided_slice %551 {offsets = [0, 16], sizes = [8, 8], strides = [1, 1]} : vector<8x32xf32> to vector<8x8xf32>
    %563 = vector.extract_strided_slice %551 {offsets = [0, 24], sizes = [8, 8], strides = [1, 1]} : vector<8x32xf32> to vector<8x8xf32>
    %cst_66 = arith.constant 5.000000e-01 : f32
    %564 = vector.broadcast %cst_66 : f32 to vector<8x8xf32>
    %565 = arith.mulf %564, %563 : vector<8x8xf32>
    %cst_67 = arith.constant 5.000000e-01 : f32
    %566 = vector.broadcast %cst_67 : f32 to vector<8x8xf32>
    %567 = arith.addf %566, %565 : vector<8x8xf32>
    %568 = arith.mulf %561, %514 : vector<8x8xf32>
    %569 = arith.mulf %556, %562 : vector<8x8xf32>
    %570 = arith.addf %568, %569 : vector<8x8xf32>
    %571 = math.tanh %570 : vector<8x8xf32>
    %572 = arith.mulf %567, %571 : vector<8x8xf32>
    %573 = vector.extract_strided_slice %11 {offsets = [8, 0], sizes = [8, 32], strides = [1, 1]} : vector<64x32xf32> to vector<8x32xf32>
    %574 = vector.extract_strided_slice %572 {offsets = [0, 0], sizes = [8, 1], strides = [1, 1]} : vector<8x8xf32> to vector<8x1xf32>
    %575 = vector.broadcast %574 : vector<8x1xf32> to vector<8x32xf32>
    %576 = arith.mulf %575, %38 : vector<8x32xf32>
    %577 = vector.extract_strided_slice %572 {offsets = [0, 1], sizes = [8, 1], strides = [1, 1]} : vector<8x8xf32> to vector<8x1xf32>
    %578 = vector.broadcast %577 : vector<8x1xf32> to vector<8x32xf32>
    %579 = arith.mulf %578, %41 : vector<8x32xf32>
    %580 = arith.addf %576, %579 : vector<8x32xf32>
    %581 = vector.extract_strided_slice %572 {offsets = [0, 2], sizes = [8, 1], strides = [1, 1]} : vector<8x8xf32> to vector<8x1xf32>
    %582 = vector.broadcast %581 : vector<8x1xf32> to vector<8x32xf32>
    %583 = arith.mulf %582, %44 : vector<8x32xf32>
    %584 = arith.addf %580, %583 : vector<8x32xf32>
    %585 = vector.extract_strided_slice %572 {offsets = [0, 3], sizes = [8, 1], strides = [1, 1]} : vector<8x8xf32> to vector<8x1xf32>
    %586 = vector.broadcast %585 : vector<8x1xf32> to vector<8x32xf32>
    %587 = arith.mulf %586, %47 : vector<8x32xf32>
    %588 = arith.addf %584, %587 : vector<8x32xf32>
    %589 = vector.extract_strided_slice %572 {offsets = [0, 4], sizes = [8, 1], strides = [1, 1]} : vector<8x8xf32> to vector<8x1xf32>
    %590 = vector.broadcast %589 : vector<8x1xf32> to vector<8x32xf32>
    %591 = arith.mulf %590, %50 : vector<8x32xf32>
    %592 = arith.addf %588, %591 : vector<8x32xf32>
    %593 = vector.extract_strided_slice %572 {offsets = [0, 5], sizes = [8, 1], strides = [1, 1]} : vector<8x8xf32> to vector<8x1xf32>
    %594 = vector.broadcast %593 : vector<8x1xf32> to vector<8x32xf32>
    %595 = arith.mulf %594, %53 : vector<8x32xf32>
    %596 = arith.addf %592, %595 : vector<8x32xf32>
    %597 = vector.extract_strided_slice %572 {offsets = [0, 6], sizes = [8, 1], strides = [1, 1]} : vector<8x8xf32> to vector<8x1xf32>
    %598 = vector.broadcast %597 : vector<8x1xf32> to vector<8x32xf32>
    %599 = arith.mulf %598, %56 : vector<8x32xf32>
    %600 = arith.addf %596, %599 : vector<8x32xf32>
    %601 = vector.extract_strided_slice %572 {offsets = [0, 7], sizes = [8, 1], strides = [1, 1]} : vector<8x8xf32> to vector<8x1xf32>
    %602 = vector.broadcast %601 : vector<8x1xf32> to vector<8x32xf32>
    %603 = arith.mulf %602, %59 : vector<8x32xf32>
    %604 = arith.addf %600, %603 : vector<8x32xf32>
    %605 = arith.addf %573, %604 : vector<8x32xf32>
    %606 = arith.mulf %605, %68 : vector<8x32xf32>
    %607 = math.tanh %606 : vector<8x32xf32>
    %608 = vector.extract_strided_slice %607 {offsets = [0, 0], sizes = [8, 8], strides = [1, 1]} : vector<8x32xf32> to vector<8x8xf32>
    %cst_68 = arith.constant 5.000000e-01 : f32
    %609 = vector.broadcast %cst_68 : f32 to vector<8x8xf32>
    %610 = arith.mulf %609, %608 : vector<8x8xf32>
    %cst_69 = arith.constant 5.000000e-01 : f32
    %611 = vector.broadcast %cst_69 : f32 to vector<8x8xf32>
    %612 = arith.addf %611, %610 : vector<8x8xf32>
    %613 = vector.extract_strided_slice %607 {offsets = [0, 8], sizes = [8, 8], strides = [1, 1]} : vector<8x32xf32> to vector<8x8xf32>
    %cst_70 = arith.constant 5.000000e-01 : f32
    %614 = vector.broadcast %cst_70 : f32 to vector<8x8xf32>
    %615 = arith.mulf %614, %613 : vector<8x8xf32>
    %cst_71 = arith.constant 5.000000e-01 : f32
    %616 = vector.broadcast %cst_71 : f32 to vector<8x8xf32>
    %617 = arith.addf %616, %615 : vector<8x8xf32>
    %618 = vector.extract_strided_slice %607 {offsets = [0, 16], sizes = [8, 8], strides = [1, 1]} : vector<8x32xf32> to vector<8x8xf32>
    %619 = vector.extract_strided_slice %607 {offsets = [0, 24], sizes = [8, 8], strides = [1, 1]} : vector<8x32xf32> to vector<8x8xf32>
    %cst_72 = arith.constant 5.000000e-01 : f32
    %620 = vector.broadcast %cst_72 : f32 to vector<8x8xf32>
    %621 = arith.mulf %620, %619 : vector<8x8xf32>
    %cst_73 = arith.constant 5.000000e-01 : f32
    %622 = vector.broadcast %cst_73 : f32 to vector<8x8xf32>
    %623 = arith.addf %622, %621 : vector<8x8xf32>
    %624 = arith.mulf %617, %570 : vector<8x8xf32>
    %625 = arith.mulf %612, %618 : vector<8x8xf32>
    %626 = arith.addf %624, %625 : vector<8x8xf32>
    %627 = math.tanh %626 : vector<8x8xf32>
    %628 = arith.mulf %623, %627 : vector<8x8xf32>
    %629 = vector.extract_strided_slice %11 {offsets = [16, 0], sizes = [8, 32], strides = [1, 1]} : vector<64x32xf32> to vector<8x32xf32>
    %630 = vector.extract_strided_slice %628 {offsets = [0, 0], sizes = [8, 1], strides = [1, 1]} : vector<8x8xf32> to vector<8x1xf32>
    %631 = vector.broadcast %630 : vector<8x1xf32> to vector<8x32xf32>
    %632 = arith.mulf %631, %38 : vector<8x32xf32>
    %633 = vector.extract_strided_slice %628 {offsets = [0, 1], sizes = [8, 1], strides = [1, 1]} : vector<8x8xf32> to vector<8x1xf32>
    %634 = vector.broadcast %633 : vector<8x1xf32> to vector<8x32xf32>
    %635 = arith.mulf %634, %41 : vector<8x32xf32>
    %636 = arith.addf %632, %635 : vector<8x32xf32>
    %637 = vector.extract_strided_slice %628 {offsets = [0, 2], sizes = [8, 1], strides = [1, 1]} : vector<8x8xf32> to vector<8x1xf32>
    %638 = vector.broadcast %637 : vector<8x1xf32> to vector<8x32xf32>
    %639 = arith.mulf %638, %44 : vector<8x32xf32>
    %640 = arith.addf %636, %639 : vector<8x32xf32>
    %641 = vector.extract_strided_slice %628 {offsets = [0, 3], sizes = [8, 1], strides = [1, 1]} : vector<8x8xf32> to vector<8x1xf32>
    %642 = vector.broadcast %641 : vector<8x1xf32> to vector<8x32xf32>
    %643 = arith.mulf %642, %47 : vector<8x32xf32>
    %644 = arith.addf %640, %643 : vector<8x32xf32>
    %645 = vector.extract_strided_slice %628 {offsets = [0, 4], sizes = [8, 1], strides = [1, 1]} : vector<8x8xf32> to vector<8x1xf32>
    %646 = vector.broadcast %645 : vector<8x1xf32> to vector<8x32xf32>
    %647 = arith.mulf %646, %50 : vector<8x32xf32>
    %648 = arith.addf %644, %647 : vector<8x32xf32>
    %649 = vector.extract_strided_slice %628 {offsets = [0, 5], sizes = [8, 1], strides = [1, 1]} : vector<8x8xf32> to vector<8x1xf32>
    %650 = vector.broadcast %649 : vector<8x1xf32> to vector<8x32xf32>
    %651 = arith.mulf %650, %53 : vector<8x32xf32>
    %652 = arith.addf %648, %651 : vector<8x32xf32>
    %653 = vector.extract_strided_slice %628 {offsets = [0, 6], sizes = [8, 1], strides = [1, 1]} : vector<8x8xf32> to vector<8x1xf32>
    %654 = vector.broadcast %653 : vector<8x1xf32> to vector<8x32xf32>
    %655 = arith.mulf %654, %56 : vector<8x32xf32>
    %656 = arith.addf %652, %655 : vector<8x32xf32>
    %657 = vector.extract_strided_slice %628 {offsets = [0, 7], sizes = [8, 1], strides = [1, 1]} : vector<8x8xf32> to vector<8x1xf32>
    %658 = vector.broadcast %657 : vector<8x1xf32> to vector<8x32xf32>
    %659 = arith.mulf %658, %59 : vector<8x32xf32>
    %660 = arith.addf %656, %659 : vector<8x32xf32>
    %661 = arith.addf %629, %660 : vector<8x32xf32>
    %662 = arith.mulf %661, %68 : vector<8x32xf32>
    %663 = math.tanh %662 : vector<8x32xf32>
    %664 = vector.extract_strided_slice %663 {offsets = [0, 0], sizes = [8, 8], strides = [1, 1]} : vector<8x32xf32> to vector<8x8xf32>
    %cst_74 = arith.constant 5.000000e-01 : f32
    %665 = vector.broadcast %cst_74 : f32 to vector<8x8xf32>
    %666 = arith.mulf %665, %664 : vector<8x8xf32>
    %cst_75 = arith.constant 5.000000e-01 : f32
    %667 = vector.broadcast %cst_75 : f32 to vector<8x8xf32>
    %668 = arith.addf %667, %666 : vector<8x8xf32>
    %669 = vector.extract_strided_slice %663 {offsets = [0, 8], sizes = [8, 8], strides = [1, 1]} : vector<8x32xf32> to vector<8x8xf32>
    %cst_76 = arith.constant 5.000000e-01 : f32
    %670 = vector.broadcast %cst_76 : f32 to vector<8x8xf32>
    %671 = arith.mulf %670, %669 : vector<8x8xf32>
    %cst_77 = arith.constant 5.000000e-01 : f32
    %672 = vector.broadcast %cst_77 : f32 to vector<8x8xf32>
    %673 = arith.addf %672, %671 : vector<8x8xf32>
    %674 = vector.extract_strided_slice %663 {offsets = [0, 16], sizes = [8, 8], strides = [1, 1]} : vector<8x32xf32> to vector<8x8xf32>
    %675 = vector.extract_strided_slice %663 {offsets = [0, 24], sizes = [8, 8], strides = [1, 1]} : vector<8x32xf32> to vector<8x8xf32>
    %cst_78 = arith.constant 5.000000e-01 : f32
    %676 = vector.broadcast %cst_78 : f32 to vector<8x8xf32>
    %677 = arith.mulf %676, %675 : vector<8x8xf32>
    %cst_79 = arith.constant 5.000000e-01 : f32
    %678 = vector.broadcast %cst_79 : f32 to vector<8x8xf32>
    %679 = arith.addf %678, %677 : vector<8x8xf32>
    %680 = arith.mulf %673, %626 : vector<8x8xf32>
    %681 = arith.mulf %668, %674 : vector<8x8xf32>
    %682 = arith.addf %680, %681 : vector<8x8xf32>
    %683 = math.tanh %682 : vector<8x8xf32>
    %684 = arith.mulf %679, %683 : vector<8x8xf32>
    %685 = vector.extract_strided_slice %11 {offsets = [24, 0], sizes = [8, 32], strides = [1, 1]} : vector<64x32xf32> to vector<8x32xf32>
    %686 = vector.extract_strided_slice %684 {offsets = [0, 0], sizes = [8, 1], strides = [1, 1]} : vector<8x8xf32> to vector<8x1xf32>
    %687 = vector.broadcast %686 : vector<8x1xf32> to vector<8x32xf32>
    %688 = arith.mulf %687, %38 : vector<8x32xf32>
    %689 = vector.extract_strided_slice %684 {offsets = [0, 1], sizes = [8, 1], strides = [1, 1]} : vector<8x8xf32> to vector<8x1xf32>
    %690 = vector.broadcast %689 : vector<8x1xf32> to vector<8x32xf32>
    %691 = arith.mulf %690, %41 : vector<8x32xf32>
    %692 = arith.addf %688, %691 : vector<8x32xf32>
    %693 = vector.extract_strided_slice %684 {offsets = [0, 2], sizes = [8, 1], strides = [1, 1]} : vector<8x8xf32> to vector<8x1xf32>
    %694 = vector.broadcast %693 : vector<8x1xf32> to vector<8x32xf32>
    %695 = arith.mulf %694, %44 : vector<8x32xf32>
    %696 = arith.addf %692, %695 : vector<8x32xf32>
    %697 = vector.extract_strided_slice %684 {offsets = [0, 3], sizes = [8, 1], strides = [1, 1]} : vector<8x8xf32> to vector<8x1xf32>
    %698 = vector.broadcast %697 : vector<8x1xf32> to vector<8x32xf32>
    %699 = arith.mulf %698, %47 : vector<8x32xf32>
    %700 = arith.addf %696, %699 : vector<8x32xf32>
    %701 = vector.extract_strided_slice %684 {offsets = [0, 4], sizes = [8, 1], strides = [1, 1]} : vector<8x8xf32> to vector<8x1xf32>
    %702 = vector.broadcast %701 : vector<8x1xf32> to vector<8x32xf32>
    %703 = arith.mulf %702, %50 : vector<8x32xf32>
    %704 = arith.addf %700, %703 : vector<8x32xf32>
    %705 = vector.extract_strided_slice %684 {offsets = [0, 5], sizes = [8, 1], strides = [1, 1]} : vector<8x8xf32> to vector<8x1xf32>
    %706 = vector.broadcast %705 : vector<8x1xf32> to vector<8x32xf32>
    %707 = arith.mulf %706, %53 : vector<8x32xf32>
    %708 = arith.addf %704, %707 : vector<8x32xf32>
    %709 = vector.extract_strided_slice %684 {offsets = [0, 6], sizes = [8, 1], strides = [1, 1]} : vector<8x8xf32> to vector<8x1xf32>
    %710 = vector.broadcast %709 : vector<8x1xf32> to vector<8x32xf32>
    %711 = arith.mulf %710, %56 : vector<8x32xf32>
    %712 = arith.addf %708, %711 : vector<8x32xf32>
    %713 = vector.extract_strided_slice %684 {offsets = [0, 7], sizes = [8, 1], strides = [1, 1]} : vector<8x8xf32> to vector<8x1xf32>
    %714 = vector.broadcast %713 : vector<8x1xf32> to vector<8x32xf32>
    %715 = arith.mulf %714, %59 : vector<8x32xf32>
    %716 = arith.addf %712, %715 : vector<8x32xf32>
    %717 = arith.addf %685, %716 : vector<8x32xf32>
    %718 = arith.mulf %717, %68 : vector<8x32xf32>
    %719 = math.tanh %718 : vector<8x32xf32>
    %720 = vector.extract_strided_slice %719 {offsets = [0, 0], sizes = [8, 8], strides = [1, 1]} : vector<8x32xf32> to vector<8x8xf32>
    %cst_80 = arith.constant 5.000000e-01 : f32
    %721 = vector.broadcast %cst_80 : f32 to vector<8x8xf32>
    %722 = arith.mulf %721, %720 : vector<8x8xf32>
    %cst_81 = arith.constant 5.000000e-01 : f32
    %723 = vector.broadcast %cst_81 : f32 to vector<8x8xf32>
    %724 = arith.addf %723, %722 : vector<8x8xf32>
    %725 = vector.extract_strided_slice %719 {offsets = [0, 8], sizes = [8, 8], strides = [1, 1]} : vector<8x32xf32> to vector<8x8xf32>
    %cst_82 = arith.constant 5.000000e-01 : f32
    %726 = vector.broadcast %cst_82 : f32 to vector<8x8xf32>
    %727 = arith.mulf %726, %725 : vector<8x8xf32>
    %cst_83 = arith.constant 5.000000e-01 : f32
    %728 = vector.broadcast %cst_83 : f32 to vector<8x8xf32>
    %729 = arith.addf %728, %727 : vector<8x8xf32>
    %730 = vector.extract_strided_slice %719 {offsets = [0, 16], sizes = [8, 8], strides = [1, 1]} : vector<8x32xf32> to vector<8x8xf32>
    %731 = vector.extract_strided_slice %719 {offsets = [0, 24], sizes = [8, 8], strides = [1, 1]} : vector<8x32xf32> to vector<8x8xf32>
    %cst_84 = arith.constant 5.000000e-01 : f32
    %732 = vector.broadcast %cst_84 : f32 to vector<8x8xf32>
    %733 = arith.mulf %732, %731 : vector<8x8xf32>
    %cst_85 = arith.constant 5.000000e-01 : f32
    %734 = vector.broadcast %cst_85 : f32 to vector<8x8xf32>
    %735 = arith.addf %734, %733 : vector<8x8xf32>
    %736 = arith.mulf %729, %682 : vector<8x8xf32>
    %737 = arith.mulf %724, %730 : vector<8x8xf32>
    %738 = arith.addf %736, %737 : vector<8x8xf32>
    %739 = math.tanh %738 : vector<8x8xf32>
    %740 = arith.mulf %735, %739 : vector<8x8xf32>
    %741 = vector.extract_strided_slice %11 {offsets = [32, 0], sizes = [8, 32], strides = [1, 1]} : vector<64x32xf32> to vector<8x32xf32>
    %742 = vector.extract_strided_slice %740 {offsets = [0, 0], sizes = [8, 1], strides = [1, 1]} : vector<8x8xf32> to vector<8x1xf32>
    %743 = vector.broadcast %742 : vector<8x1xf32> to vector<8x32xf32>
    %744 = arith.mulf %743, %38 : vector<8x32xf32>
    %745 = vector.extract_strided_slice %740 {offsets = [0, 1], sizes = [8, 1], strides = [1, 1]} : vector<8x8xf32> to vector<8x1xf32>
    %746 = vector.broadcast %745 : vector<8x1xf32> to vector<8x32xf32>
    %747 = arith.mulf %746, %41 : vector<8x32xf32>
    %748 = arith.addf %744, %747 : vector<8x32xf32>
    %749 = vector.extract_strided_slice %740 {offsets = [0, 2], sizes = [8, 1], strides = [1, 1]} : vector<8x8xf32> to vector<8x1xf32>
    %750 = vector.broadcast %749 : vector<8x1xf32> to vector<8x32xf32>
    %751 = arith.mulf %750, %44 : vector<8x32xf32>
    %752 = arith.addf %748, %751 : vector<8x32xf32>
    %753 = vector.extract_strided_slice %740 {offsets = [0, 3], sizes = [8, 1], strides = [1, 1]} : vector<8x8xf32> to vector<8x1xf32>
    %754 = vector.broadcast %753 : vector<8x1xf32> to vector<8x32xf32>
    %755 = arith.mulf %754, %47 : vector<8x32xf32>
    %756 = arith.addf %752, %755 : vector<8x32xf32>
    %757 = vector.extract_strided_slice %740 {offsets = [0, 4], sizes = [8, 1], strides = [1, 1]} : vector<8x8xf32> to vector<8x1xf32>
    %758 = vector.broadcast %757 : vector<8x1xf32> to vector<8x32xf32>
    %759 = arith.mulf %758, %50 : vector<8x32xf32>
    %760 = arith.addf %756, %759 : vector<8x32xf32>
    %761 = vector.extract_strided_slice %740 {offsets = [0, 5], sizes = [8, 1], strides = [1, 1]} : vector<8x8xf32> to vector<8x1xf32>
    %762 = vector.broadcast %761 : vector<8x1xf32> to vector<8x32xf32>
    %763 = arith.mulf %762, %53 : vector<8x32xf32>
    %764 = arith.addf %760, %763 : vector<8x32xf32>
    %765 = vector.extract_strided_slice %740 {offsets = [0, 6], sizes = [8, 1], strides = [1, 1]} : vector<8x8xf32> to vector<8x1xf32>
    %766 = vector.broadcast %765 : vector<8x1xf32> to vector<8x32xf32>
    %767 = arith.mulf %766, %56 : vector<8x32xf32>
    %768 = arith.addf %764, %767 : vector<8x32xf32>
    %769 = vector.extract_strided_slice %740 {offsets = [0, 7], sizes = [8, 1], strides = [1, 1]} : vector<8x8xf32> to vector<8x1xf32>
    %770 = vector.broadcast %769 : vector<8x1xf32> to vector<8x32xf32>
    %771 = arith.mulf %770, %59 : vector<8x32xf32>
    %772 = arith.addf %768, %771 : vector<8x32xf32>
    %773 = arith.addf %741, %772 : vector<8x32xf32>
    %774 = arith.mulf %773, %68 : vector<8x32xf32>
    %775 = math.tanh %774 : vector<8x32xf32>
    %776 = vector.extract_strided_slice %775 {offsets = [0, 0], sizes = [8, 8], strides = [1, 1]} : vector<8x32xf32> to vector<8x8xf32>
    %cst_86 = arith.constant 5.000000e-01 : f32
    %777 = vector.broadcast %cst_86 : f32 to vector<8x8xf32>
    %778 = arith.mulf %777, %776 : vector<8x8xf32>
    %cst_87 = arith.constant 5.000000e-01 : f32
    %779 = vector.broadcast %cst_87 : f32 to vector<8x8xf32>
    %780 = arith.addf %779, %778 : vector<8x8xf32>
    %781 = vector.extract_strided_slice %775 {offsets = [0, 8], sizes = [8, 8], strides = [1, 1]} : vector<8x32xf32> to vector<8x8xf32>
    %cst_88 = arith.constant 5.000000e-01 : f32
    %782 = vector.broadcast %cst_88 : f32 to vector<8x8xf32>
    %783 = arith.mulf %782, %781 : vector<8x8xf32>
    %cst_89 = arith.constant 5.000000e-01 : f32
    %784 = vector.broadcast %cst_89 : f32 to vector<8x8xf32>
    %785 = arith.addf %784, %783 : vector<8x8xf32>
    %786 = vector.extract_strided_slice %775 {offsets = [0, 16], sizes = [8, 8], strides = [1, 1]} : vector<8x32xf32> to vector<8x8xf32>
    %787 = vector.extract_strided_slice %775 {offsets = [0, 24], sizes = [8, 8], strides = [1, 1]} : vector<8x32xf32> to vector<8x8xf32>
    %cst_90 = arith.constant 5.000000e-01 : f32
    %788 = vector.broadcast %cst_90 : f32 to vector<8x8xf32>
    %789 = arith.mulf %788, %787 : vector<8x8xf32>
    %cst_91 = arith.constant 5.000000e-01 : f32
    %790 = vector.broadcast %cst_91 : f32 to vector<8x8xf32>
    %791 = arith.addf %790, %789 : vector<8x8xf32>
    %792 = arith.mulf %785, %738 : vector<8x8xf32>
    %793 = arith.mulf %780, %786 : vector<8x8xf32>
    %794 = arith.addf %792, %793 : vector<8x8xf32>
    %795 = math.tanh %794 : vector<8x8xf32>
    %796 = arith.mulf %791, %795 : vector<8x8xf32>
    %797 = vector.extract_strided_slice %11 {offsets = [40, 0], sizes = [8, 32], strides = [1, 1]} : vector<64x32xf32> to vector<8x32xf32>
    %798 = vector.extract_strided_slice %796 {offsets = [0, 0], sizes = [8, 1], strides = [1, 1]} : vector<8x8xf32> to vector<8x1xf32>
    %799 = vector.broadcast %798 : vector<8x1xf32> to vector<8x32xf32>
    %800 = arith.mulf %799, %38 : vector<8x32xf32>
    %801 = vector.extract_strided_slice %796 {offsets = [0, 1], sizes = [8, 1], strides = [1, 1]} : vector<8x8xf32> to vector<8x1xf32>
    %802 = vector.broadcast %801 : vector<8x1xf32> to vector<8x32xf32>
    %803 = arith.mulf %802, %41 : vector<8x32xf32>
    %804 = arith.addf %800, %803 : vector<8x32xf32>
    %805 = vector.extract_strided_slice %796 {offsets = [0, 2], sizes = [8, 1], strides = [1, 1]} : vector<8x8xf32> to vector<8x1xf32>
    %806 = vector.broadcast %805 : vector<8x1xf32> to vector<8x32xf32>
    %807 = arith.mulf %806, %44 : vector<8x32xf32>
    %808 = arith.addf %804, %807 : vector<8x32xf32>
    %809 = vector.extract_strided_slice %796 {offsets = [0, 3], sizes = [8, 1], strides = [1, 1]} : vector<8x8xf32> to vector<8x1xf32>
    %810 = vector.broadcast %809 : vector<8x1xf32> to vector<8x32xf32>
    %811 = arith.mulf %810, %47 : vector<8x32xf32>
    %812 = arith.addf %808, %811 : vector<8x32xf32>
    %813 = vector.extract_strided_slice %796 {offsets = [0, 4], sizes = [8, 1], strides = [1, 1]} : vector<8x8xf32> to vector<8x1xf32>
    %814 = vector.broadcast %813 : vector<8x1xf32> to vector<8x32xf32>
    %815 = arith.mulf %814, %50 : vector<8x32xf32>
    %816 = arith.addf %812, %815 : vector<8x32xf32>
    %817 = vector.extract_strided_slice %796 {offsets = [0, 5], sizes = [8, 1], strides = [1, 1]} : vector<8x8xf32> to vector<8x1xf32>
    %818 = vector.broadcast %817 : vector<8x1xf32> to vector<8x32xf32>
    %819 = arith.mulf %818, %53 : vector<8x32xf32>
    %820 = arith.addf %816, %819 : vector<8x32xf32>
    %821 = vector.extract_strided_slice %796 {offsets = [0, 6], sizes = [8, 1], strides = [1, 1]} : vector<8x8xf32> to vector<8x1xf32>
    %822 = vector.broadcast %821 : vector<8x1xf32> to vector<8x32xf32>
    %823 = arith.mulf %822, %56 : vector<8x32xf32>
    %824 = arith.addf %820, %823 : vector<8x32xf32>
    %825 = vector.extract_strided_slice %796 {offsets = [0, 7], sizes = [8, 1], strides = [1, 1]} : vector<8x8xf32> to vector<8x1xf32>
    %826 = vector.broadcast %825 : vector<8x1xf32> to vector<8x32xf32>
    %827 = arith.mulf %826, %59 : vector<8x32xf32>
    %828 = arith.addf %824, %827 : vector<8x32xf32>
    %829 = arith.addf %797, %828 : vector<8x32xf32>
    %830 = arith.mulf %829, %68 : vector<8x32xf32>
    %831 = math.tanh %830 : vector<8x32xf32>
    %832 = vector.extract_strided_slice %831 {offsets = [0, 0], sizes = [8, 8], strides = [1, 1]} : vector<8x32xf32> to vector<8x8xf32>
    %cst_92 = arith.constant 5.000000e-01 : f32
    %833 = vector.broadcast %cst_92 : f32 to vector<8x8xf32>
    %834 = arith.mulf %833, %832 : vector<8x8xf32>
    %cst_93 = arith.constant 5.000000e-01 : f32
    %835 = vector.broadcast %cst_93 : f32 to vector<8x8xf32>
    %836 = arith.addf %835, %834 : vector<8x8xf32>
    %837 = vector.extract_strided_slice %831 {offsets = [0, 8], sizes = [8, 8], strides = [1, 1]} : vector<8x32xf32> to vector<8x8xf32>
    %cst_94 = arith.constant 5.000000e-01 : f32
    %838 = vector.broadcast %cst_94 : f32 to vector<8x8xf32>
    %839 = arith.mulf %838, %837 : vector<8x8xf32>
    %cst_95 = arith.constant 5.000000e-01 : f32
    %840 = vector.broadcast %cst_95 : f32 to vector<8x8xf32>
    %841 = arith.addf %840, %839 : vector<8x8xf32>
    %842 = vector.extract_strided_slice %831 {offsets = [0, 16], sizes = [8, 8], strides = [1, 1]} : vector<8x32xf32> to vector<8x8xf32>
    %843 = vector.extract_strided_slice %831 {offsets = [0, 24], sizes = [8, 8], strides = [1, 1]} : vector<8x32xf32> to vector<8x8xf32>
    %cst_96 = arith.constant 5.000000e-01 : f32
    %844 = vector.broadcast %cst_96 : f32 to vector<8x8xf32>
    %845 = arith.mulf %844, %843 : vector<8x8xf32>
    %cst_97 = arith.constant 5.000000e-01 : f32
    %846 = vector.broadcast %cst_97 : f32 to vector<8x8xf32>
    %847 = arith.addf %846, %845 : vector<8x8xf32>
    %848 = arith.mulf %841, %794 : vector<8x8xf32>
    %849 = arith.mulf %836, %842 : vector<8x8xf32>
    %850 = arith.addf %848, %849 : vector<8x8xf32>
    %851 = math.tanh %850 : vector<8x8xf32>
    %852 = arith.mulf %847, %851 : vector<8x8xf32>
    %853 = vector.extract_strided_slice %11 {offsets = [48, 0], sizes = [8, 32], strides = [1, 1]} : vector<64x32xf32> to vector<8x32xf32>
    %854 = vector.extract_strided_slice %852 {offsets = [0, 0], sizes = [8, 1], strides = [1, 1]} : vector<8x8xf32> to vector<8x1xf32>
    %855 = vector.broadcast %854 : vector<8x1xf32> to vector<8x32xf32>
    %856 = arith.mulf %855, %38 : vector<8x32xf32>
    %857 = vector.extract_strided_slice %852 {offsets = [0, 1], sizes = [8, 1], strides = [1, 1]} : vector<8x8xf32> to vector<8x1xf32>
    %858 = vector.broadcast %857 : vector<8x1xf32> to vector<8x32xf32>
    %859 = arith.mulf %858, %41 : vector<8x32xf32>
    %860 = arith.addf %856, %859 : vector<8x32xf32>
    %861 = vector.extract_strided_slice %852 {offsets = [0, 2], sizes = [8, 1], strides = [1, 1]} : vector<8x8xf32> to vector<8x1xf32>
    %862 = vector.broadcast %861 : vector<8x1xf32> to vector<8x32xf32>
    %863 = arith.mulf %862, %44 : vector<8x32xf32>
    %864 = arith.addf %860, %863 : vector<8x32xf32>
    %865 = vector.extract_strided_slice %852 {offsets = [0, 3], sizes = [8, 1], strides = [1, 1]} : vector<8x8xf32> to vector<8x1xf32>
    %866 = vector.broadcast %865 : vector<8x1xf32> to vector<8x32xf32>
    %867 = arith.mulf %866, %47 : vector<8x32xf32>
    %868 = arith.addf %864, %867 : vector<8x32xf32>
    %869 = vector.extract_strided_slice %852 {offsets = [0, 4], sizes = [8, 1], strides = [1, 1]} : vector<8x8xf32> to vector<8x1xf32>
    %870 = vector.broadcast %869 : vector<8x1xf32> to vector<8x32xf32>
    %871 = arith.mulf %870, %50 : vector<8x32xf32>
    %872 = arith.addf %868, %871 : vector<8x32xf32>
    %873 = vector.extract_strided_slice %852 {offsets = [0, 5], sizes = [8, 1], strides = [1, 1]} : vector<8x8xf32> to vector<8x1xf32>
    %874 = vector.broadcast %873 : vector<8x1xf32> to vector<8x32xf32>
    %875 = arith.mulf %874, %53 : vector<8x32xf32>
    %876 = arith.addf %872, %875 : vector<8x32xf32>
    %877 = vector.extract_strided_slice %852 {offsets = [0, 6], sizes = [8, 1], strides = [1, 1]} : vector<8x8xf32> to vector<8x1xf32>
    %878 = vector.broadcast %877 : vector<8x1xf32> to vector<8x32xf32>
    %879 = arith.mulf %878, %56 : vector<8x32xf32>
    %880 = arith.addf %876, %879 : vector<8x32xf32>
    %881 = vector.extract_strided_slice %852 {offsets = [0, 7], sizes = [8, 1], strides = [1, 1]} : vector<8x8xf32> to vector<8x1xf32>
    %882 = vector.broadcast %881 : vector<8x1xf32> to vector<8x32xf32>
    %883 = arith.mulf %882, %59 : vector<8x32xf32>
    %884 = arith.addf %880, %883 : vector<8x32xf32>
    %885 = arith.addf %853, %884 : vector<8x32xf32>
    %886 = arith.mulf %885, %68 : vector<8x32xf32>
    %887 = math.tanh %886 : vector<8x32xf32>
    %888 = vector.extract_strided_slice %887 {offsets = [0, 0], sizes = [8, 8], strides = [1, 1]} : vector<8x32xf32> to vector<8x8xf32>
    %cst_98 = arith.constant 5.000000e-01 : f32
    %889 = vector.broadcast %cst_98 : f32 to vector<8x8xf32>
    %890 = arith.mulf %889, %888 : vector<8x8xf32>
    %cst_99 = arith.constant 5.000000e-01 : f32
    %891 = vector.broadcast %cst_99 : f32 to vector<8x8xf32>
    %892 = arith.addf %891, %890 : vector<8x8xf32>
    %893 = vector.extract_strided_slice %887 {offsets = [0, 8], sizes = [8, 8], strides = [1, 1]} : vector<8x32xf32> to vector<8x8xf32>
    %cst_100 = arith.constant 5.000000e-01 : f32
    %894 = vector.broadcast %cst_100 : f32 to vector<8x8xf32>
    %895 = arith.mulf %894, %893 : vector<8x8xf32>
    %cst_101 = arith.constant 5.000000e-01 : f32
    %896 = vector.broadcast %cst_101 : f32 to vector<8x8xf32>
    %897 = arith.addf %896, %895 : vector<8x8xf32>
    %898 = vector.extract_strided_slice %887 {offsets = [0, 16], sizes = [8, 8], strides = [1, 1]} : vector<8x32xf32> to vector<8x8xf32>
    %899 = vector.extract_strided_slice %887 {offsets = [0, 24], sizes = [8, 8], strides = [1, 1]} : vector<8x32xf32> to vector<8x8xf32>
    %cst_102 = arith.constant 5.000000e-01 : f32
    %900 = vector.broadcast %cst_102 : f32 to vector<8x8xf32>
    %901 = arith.mulf %900, %899 : vector<8x8xf32>
    %cst_103 = arith.constant 5.000000e-01 : f32
    %902 = vector.broadcast %cst_103 : f32 to vector<8x8xf32>
    %903 = arith.addf %902, %901 : vector<8x8xf32>
    %904 = arith.mulf %897, %850 : vector<8x8xf32>
    %905 = arith.mulf %892, %898 : vector<8x8xf32>
    %906 = arith.addf %904, %905 : vector<8x8xf32>
    %907 = math.tanh %906 : vector<8x8xf32>
    %908 = arith.mulf %903, %907 : vector<8x8xf32>
    %909 = vector.extract_strided_slice %11 {offsets = [56, 0], sizes = [8, 32], strides = [1, 1]} : vector<64x32xf32> to vector<8x32xf32>
    %910 = vector.extract_strided_slice %908 {offsets = [0, 0], sizes = [8, 1], strides = [1, 1]} : vector<8x8xf32> to vector<8x1xf32>
    %911 = vector.broadcast %910 : vector<8x1xf32> to vector<8x32xf32>
    %912 = arith.mulf %911, %38 : vector<8x32xf32>
    %913 = vector.extract_strided_slice %908 {offsets = [0, 1], sizes = [8, 1], strides = [1, 1]} : vector<8x8xf32> to vector<8x1xf32>
    %914 = vector.broadcast %913 : vector<8x1xf32> to vector<8x32xf32>
    %915 = arith.mulf %914, %41 : vector<8x32xf32>
    %916 = arith.addf %912, %915 : vector<8x32xf32>
    %917 = vector.extract_strided_slice %908 {offsets = [0, 2], sizes = [8, 1], strides = [1, 1]} : vector<8x8xf32> to vector<8x1xf32>
    %918 = vector.broadcast %917 : vector<8x1xf32> to vector<8x32xf32>
    %919 = arith.mulf %918, %44 : vector<8x32xf32>
    %920 = arith.addf %916, %919 : vector<8x32xf32>
    %921 = vector.extract_strided_slice %908 {offsets = [0, 3], sizes = [8, 1], strides = [1, 1]} : vector<8x8xf32> to vector<8x1xf32>
    %922 = vector.broadcast %921 : vector<8x1xf32> to vector<8x32xf32>
    %923 = arith.mulf %922, %47 : vector<8x32xf32>
    %924 = arith.addf %920, %923 : vector<8x32xf32>
    %925 = vector.extract_strided_slice %908 {offsets = [0, 4], sizes = [8, 1], strides = [1, 1]} : vector<8x8xf32> to vector<8x1xf32>
    %926 = vector.broadcast %925 : vector<8x1xf32> to vector<8x32xf32>
    %927 = arith.mulf %926, %50 : vector<8x32xf32>
    %928 = arith.addf %924, %927 : vector<8x32xf32>
    %929 = vector.extract_strided_slice %908 {offsets = [0, 5], sizes = [8, 1], strides = [1, 1]} : vector<8x8xf32> to vector<8x1xf32>
    %930 = vector.broadcast %929 : vector<8x1xf32> to vector<8x32xf32>
    %931 = arith.mulf %930, %53 : vector<8x32xf32>
    %932 = arith.addf %928, %931 : vector<8x32xf32>
    %933 = vector.extract_strided_slice %908 {offsets = [0, 6], sizes = [8, 1], strides = [1, 1]} : vector<8x8xf32> to vector<8x1xf32>
    %934 = vector.broadcast %933 : vector<8x1xf32> to vector<8x32xf32>
    %935 = arith.mulf %934, %56 : vector<8x32xf32>
    %936 = arith.addf %932, %935 : vector<8x32xf32>
    %937 = vector.extract_strided_slice %908 {offsets = [0, 7], sizes = [8, 1], strides = [1, 1]} : vector<8x8xf32> to vector<8x1xf32>
    %938 = vector.broadcast %937 : vector<8x1xf32> to vector<8x32xf32>
    %939 = arith.mulf %938, %59 : vector<8x32xf32>
    %940 = arith.addf %936, %939 : vector<8x32xf32>
    %941 = arith.addf %909, %940 : vector<8x32xf32>
    %942 = arith.mulf %941, %68 : vector<8x32xf32>
    %943 = math.tanh %942 : vector<8x32xf32>
    %944 = vector.extract_strided_slice %943 {offsets = [0, 0], sizes = [8, 8], strides = [1, 1]} : vector<8x32xf32> to vector<8x8xf32>
    %cst_104 = arith.constant 5.000000e-01 : f32
    %945 = vector.broadcast %cst_104 : f32 to vector<8x8xf32>
    %946 = arith.mulf %945, %944 : vector<8x8xf32>
    %cst_105 = arith.constant 5.000000e-01 : f32
    %947 = vector.broadcast %cst_105 : f32 to vector<8x8xf32>
    %948 = arith.addf %947, %946 : vector<8x8xf32>
    %949 = vector.extract_strided_slice %943 {offsets = [0, 8], sizes = [8, 8], strides = [1, 1]} : vector<8x32xf32> to vector<8x8xf32>
    %cst_106 = arith.constant 5.000000e-01 : f32
    %950 = vector.broadcast %cst_106 : f32 to vector<8x8xf32>
    %951 = arith.mulf %950, %949 : vector<8x8xf32>
    %cst_107 = arith.constant 5.000000e-01 : f32
    %952 = vector.broadcast %cst_107 : f32 to vector<8x8xf32>
    %953 = arith.addf %952, %951 : vector<8x8xf32>
    %954 = vector.extract_strided_slice %943 {offsets = [0, 16], sizes = [8, 8], strides = [1, 1]} : vector<8x32xf32> to vector<8x8xf32>
    %955 = vector.extract_strided_slice %943 {offsets = [0, 24], sizes = [8, 8], strides = [1, 1]} : vector<8x32xf32> to vector<8x8xf32>
    %cst_108 = arith.constant 5.000000e-01 : f32
    %956 = vector.broadcast %cst_108 : f32 to vector<8x8xf32>
    %957 = arith.mulf %956, %955 : vector<8x8xf32>
    %cst_109 = arith.constant 5.000000e-01 : f32
    %958 = vector.broadcast %cst_109 : f32 to vector<8x8xf32>
    %959 = arith.addf %958, %957 : vector<8x8xf32>
    %960 = arith.mulf %953, %906 : vector<8x8xf32>
    %961 = arith.mulf %948, %954 : vector<8x8xf32>
    %962 = arith.addf %960, %961 : vector<8x8xf32>
    %963 = math.tanh %962 : vector<8x8xf32>
    %964 = arith.mulf %959, %963 : vector<8x8xf32>
    %965 = tpu.concatenate %572, %628, %684, %740, %796, %852, %908, %964 in 0 : vector<8x8xf32>, vector<8x8xf32>, vector<8x8xf32>, vector<8x8xf32>, vector<8x8xf32>, vector<8x8xf32>, vector<8x8xf32>, vector<8x8xf32> -> vector<64x8xf32>
    %cst_110 = arith.constant 0.000000e+00 : f32
    %966 = vector.broadcast %cst_110 : f32 to vector<64x8xf32>
    %967 = arith.maximumf %965, %966 : vector<64x8xf32>
    %cst_111 = arith.constant dense<0.000000e+00> : vector<64x32xf32>
    %968 = tpu.matmul %967, %8, %cst_111 {dimension_numbers = #tpu.dot_dimension_numbers<[1], [0], [0], [1], [0, 0, 1, 1], [], []>} : vector<64x8xf32>, vector<8x32xf32>, vector<64x32xf32> -> vector<64x32xf32>
    %969 = vector.broadcast %9 : vector<1x32xf32> to vector<64x32xf32>
    %970 = arith.addf %968, %969 : vector<64x32xf32>
    %c0_112 = arith.constant 0 : index
    %c0_113 = arith.constant 0 : index
    %971 = vector.load %arg2[%c0_112, %c0_113] : memref<64x32xf32, #tpu.memory_space<vmem>>, vector<64x32xf32>
    tpu.vector_store %arg2[%c0_112, %c0_113], %970 {strides = array<i32>} : memref<64x32xf32, #tpu.memory_space<vmem>>, vector<64x32xf32>,
    return
  }
}

</mosaic_0001>

<bundles_post_ra>
// kernel: wheat_lstm_forward.1
= control target key start
LH: loop header
LB: loop body
LE: loop exit
PB: predicated region body
PF: predicated region fallthrough
CT: control target
= control target key end

     0   :  { %v1657_v0 = vmov 0   ;;  %v1658_v1 = vmov 2   ;;  %vm35_vm0 = vcmask 64512   ;;  %v1659_v5 = vmov 4   ;;  %s1665_s17 = smov 8   ;;  %s1667_s20 = smov 112   ;;  %s2266_s0 = inlined_call_operand.vmem [shape: f32[144,8], index: 0, kind: input, shape index: {}]   ;;  %s2267_s1 = inlined_call_operand.vmem [shape: f32[48,32], index: 1, kind: input, shape index: {}]   ;;  %s2268_s2 = inlined_call_operand.vmem [shape: f32[64,32], index: 2, kind: output, shape index: {}]  }
   0x1   :  { %1463 = vset.pattern.permute.xlu0 %v1657_v0  ;;  %1465 = vset.pattern.permute.xlu1 %v1658_v1  ;;  %v27_v2 = vld [vmem:[%s2266_s0 + $0x80] sm:$0xff]  ;;  %v1660_v6 = vmov 1   ;;  %v1661_v7 = vmov 3   ;;  %v1662_v8 = vmov 5   ;;  %v1663_v9 = vmov 6   ;;  %v28_v11 = vld [vmem:[%s2266_s0 + $0x88] sm:$0xff] }
   0x2   :  { %v29_v3 = vld [vmem:[%s2267_s1] sm:$0xff]  ;;  %190 = vperm.xlu0 %1463, %v27_v2   ;;  %201 = vperm.xlu1 %1465, %v27_v2   ;;  %v1664_v10 = vmov 7   ;;  %v30_v15 = vld [vmem:[%s2267_s1 + $0x8] sm:$0xff]  ;;  %v182_v25 = vlaneseq  ;;  %v1666_v47 = vmov 0.5   ;;  %s1668_s21 = smov 16   ;;  %v1669_v61 = vmov 25  }
   0x3   :  { %75 = vmatpush.msra.mxu0 %v29_v3  ;;  %v11_v4 = vld [vmem:[%s2266_s0] sm:$0xff]  ;;  %1467 = vset.pattern.permute.xlu2 %v1659_v5  ;;  %v1710_v16 = vperm.slane %v30_v15, 0  ;;  %v1712_v17 = vperm.slane %v30_v15, 1  ;;  %v1714_v19 = vperm.slane %v30_v15, 2  ;;  %v1718_v24 = vperm.slane %v30_v15, 3  ;;  %v12_v0 = vld [vmem:[%s2266_s0 + $0x8] sm:$0xff] }
   0x4   :  { %1415 = vmatmul.msk.f32.vlgmr.msra.gmra.mxu0 %vm35_vm0, %v11_v4  ;;  %213 = vperm.xlu2 %1467, %v27_v2   ;;  %v1721_v27 = vperm.slane %v30_v15, 4  ;;  %v1724_v31 = vperm.slane %v30_v15, 5  ;;  %v1726_v32 = vperm.slane %v30_v15, 6  ;;  %v183_v33 = vand.u32 127, %v182_v25 }
   0x5   :  { %1439 = vmatpush.msra.mxu3 %v29_v3  ;;  %v1729_v36 = vperm.slane %v30_v15, 7  ;;  %v1670_v62 = vmov 24   ;;  %v1671_v63 = vmov 26   ;;  %v1672_v3 = vmov 31  }
   0x6   :  { %vm184_vm1 = vcmp.ge.s32.totalorder %v183_v33, 16  ;;  %vm185_vm2 = vcmp.lt.s32.totalorder %v183_v33, 24  ;;  %v1673_v4 = vmov 28   ;;  %v1674_v5 = vmov 27  }
   0x7   :  { %vm186_vm3 = vmand %vm184_vm1, %vm185_vm2  ;;  %vm1402_vm4 = vcmask 261120  }
   0x8   :  { %v1734_v48 = vsel %vm186_vm3, 1.0, %v1666_v47 }
   0xa   :  { %1464 = vset.pattern.permute.xlu0 %v1660_v6  ;;  %1466 = vset.pattern.permute.xlu1 %v1661_v7  ;;  %v1675_v6 = vmov 30   ;;  %v1676_v7 = vmov 29  }
   0xb   :  { %195 = vperm.xlu0 %1464, %v27_v2   ;;  %207 = vperm.xlu1 %1466, %v27_v2  }
   0xc   :  { %1468 = vset.pattern.permute.xlu2 %v1662_v8  ;;  %1416 = vmatmul.msk.f32.gmra.mxu0 %vm35_vm0, %v12_v0 }
   0xd   :  { %219 = vperm.xlu2 %1468, %v27_v2  }
  0x13   :  { %1469 = vset.pattern.permute.xlu1 %v1663_v9  ;;  %1473 = vset.pattern.permute.xlu0 %v1671_v63 }
  0x14   :  { %225 = vperm.xlu1 %1469, %v27_v2  }
  0x15   :  { %1470 = vset.pattern.permute.xlu2 %v1664_v10 }
  0x16   :  { %231 = vperm.xlu2 %1470, %v27_v2  }
  0x1c   :  { %242 = vrot.lane.b32.xlu1 %v28_v11, %s1665_s17 }
  0x1d   :  { %1471 = vset.pattern.permute.xlu1 %v1670_v62 }
  0x1e   :  { %1472 = vset.pattern.permute.xlu2 %v1669_v61 }
  0x5e   :  { %v214_v12 = vpop.permute.xlu2 %213 }
  0x5f   :  { %v216_v34 = vmul.f32 %v214_v12, %v1721_v27 }
  0x67   :  { %v220_v18 = vpop.permute.xlu2 %219 }
  0x68   :  { %v222_v39 = vmul.f32 %v220_v18, %v1724_v31 }
  0x70   :  { %v232_v37 = vpop.permute.xlu2 %231 }
  0x71   :  { %v234_v43 = vmul.f32 %v232_v37, %v1729_v36 }
  0x74   :  { %v191_v13 = vpop.permute.xlu0 %190  ;;  %v202_v14 = vpop.permute.xlu1 %201 }
  0x75   :  { %v193_v22 = vmul.f32 %v191_v13, %v1710_v16  ;;  %v204_v26 = vmul.f32 %v202_v14, %v1714_v19 }
  0x7d   :  { %v196_v20 = vpop.permute.xlu0 %195  ;;  %v208_v21 = vpop.permute.xlu1 %207 }
  0x7e   :  { %v198_v23 = vmul.f32 %v196_v20, %v1712_v17  ;;  %v210_v30 = vmul.f32 %v208_v21, %v1718_v24 }
  0x80   :  { %v199_v28 = vadd.f32 %v198_v23, %v193_v22 }
  0x81   :  { %v77_v45 = vpop.f32.mrf.mxu0 }
  0x82   :  { %v205_v29 = vadd.f32 %v204_v26, %v199_v28 }
  0x84   :  { %v211_v35 = vadd.f32 %v210_v30, %v205_v29 }
  0x86   :  { %v217_v38 = vadd.f32 %v216_v34, %v211_v35  ;;  %v226_v40 = vpop.permute.xlu1 %225 }
  0x87   :  { %v228_v41 = vmul.f32 %v226_v40, %v1726_v32 }
  0x88   :  { %v223_v42 = vadd.f32 %v222_v39, %v217_v38 }
  0x89   :  { %v80_v38 = vpop.f32.mrf.mxu0 }
  0x8a   :  { %v229_v44 = vadd.f32 %v228_v41, %v223_v42 }
  0x8c   :  { %v235_v46 = vadd.f32 %v234_v43, %v229_v44 }
  0x8e   :  { %v236_v49 = vadd.f32 %v235_v46, %v77_v45  ;;  %v243_v56 = vpop.permute.xlu1 %242 }
  0x90   :  { %v237_v50 = vmul.f32 %v236_v49, %v1734_v48 }
  0x92   :  { %1593 = vtanh.f32 %v237_v50 }
  0x98   :  { %v1594_v51 = vpop.eup %1593 }
  0x99   :  { %247 = vrot.lane.b32.xlu0 %v1594_v51, %s1667_s20  ;;  %v239_v52 = vmul.f32 0.5, %v1594_v51 }
  0x9b   :  { %v240_v53 = vadd.f32 0.5, %v239_v52  ;;  %v13_v52 = vld [vmem:[%s2266_s0 + $0x10] sm:$0xff] }
  0x9c   :  { %1417 = vmatmul.msk.f32.gmra.mxu0 %vm35_vm0, %v13_v52 }
  0x9d   :  { %v245_v57 = vmul.f32 %v243_v56, %v240_v53 }
 0x10b   :  { %v248_v54 = vpop.permute.xlu0 %247 }
 0x10c   :  { %v250_v55 = vmul.f32 %v248_v54, %v240_v53 }
 0x10e   :  { %252 = vrot.lane.b32.xlu2 %v250_v55, %s1665_s17 }
 0x168   :  { %v253_v58 = vpop.permute.xlu2 %252 }
 0x169   :  { %v1739_v59 = vadd.f32 %v253_v58, %v245_v57 }
 0x16b   :  { %1595 = vtanh.f32 %v1739_v59 }
 0x171   :  { %v1596_v60 = vpop.eup %1595 }
 0x172   :  { %258 = vrot.lane.b32.xlu0 %v1596_v60, %s1668_s21 }
 0x1e4   :  { %v259_v1 = vpop.permute.xlu0 %258 }
 0x1e5   :  { %v261_v2 = vmul.f32 %v259_v1, %v240_v53 }
 0x1e7   :  { %275 = vperm.xlu0 %1473, %v261_v2   ;;  %269 = vperm.xlu2 %1472, %v261_v2  }
 0x1e8   :  { %264 = vperm.xlu1 %1471, %v261_v2  }
 0x1ef   :  { %1478 = vset.pattern.permute.xlu0 %v1672_v3  ;;  %1475 = vset.pattern.permute.xlu2 %v1673_v4 }
 0x1f0   :  { %1474 = vset.pattern.permute.xlu1 %v1674_v5  ;;  %305 = vperm.xlu0 %1478, %v261_v2  }
 0x1f1   :  { %287 = vperm.xlu2 %1475, %v261_v2   ;;  %281 = vperm.xlu1 %1474, %v261_v2  }
 0x1f8   :  { %1480 = vset.pattern.permute.xlu0 %v1669_v61 }
 0x1f9   :  { %1477 = vset.pattern.permute.xlu2 %v1675_v6  ;;  %1476 = vset.pattern.permute.xlu1 %v1676_v7 }
 0x1fa   :  { %299 = vperm.xlu2 %1477, %v261_v2   ;;  %293 = vperm.xlu1 %1476, %v261_v2  }
 0x202   :  { %1479 = vset.pattern.permute.xlu2 %v1670_v62  ;;  %1481 = vset.pattern.permute.xlu1 %v1671_v63 }
 0x241   :  { %v270_v8 = vpop.permute.xlu2 %269 }
 0x242   :  { %v272_v11 = vmul.f32 %v270_v8, %v1712_v17 }
 0x24b   :  { %v288_v12 = vpop.permute.xlu2 %287 }
 0x24c   :  { %v290_v23 = vmul.f32 %v288_v12, %v1721_v27 }
 0x254   :  { %v300_v25 = vpop.permute.xlu2 %299 }
 0x255   :  { %v302_v33 = vmul.f32 %v300_v25, %v1726_v32  ;;  %v83_v25 = vpop.f32.mrf.mxu0 }
 0x259   :  { %v276_v13 = vpop.permute.xlu0 %275 }
 0x25a   :  { %v265_v9 = vpop.permute.xlu1 %264  ;;  %v278_v18 = vmul.f32 %v276_v13, %v1714_v19 }
 0x25b   :  { %v267_v10 = vmul.f32 %v265_v9, %v1710_v16 }
 0x25d   :  { %v273_v14 = vadd.f32 %v272_v11, %v267_v10 }
 0x25f   :  { %v279_v21 = vadd.f32 %v278_v18, %v273_v14 }
 0x262   :  { %v306_v30 = vpop.permute.xlu0 %305 }
 0x263   :  { %v282_v15 = vpop.permute.xlu1 %281  ;;  %v308_v35 = vmul.f32 %v306_v30, %v1729_v36 }
 0x264   :  { %v284_v20 = vmul.f32 %v282_v15, %v1718_v24 }
 0x266   :  { %v285_v22 = vadd.f32 %v284_v20, %v279_v21 }
 0x268   :  { %v291_v28 = vadd.f32 %v290_v23, %v285_v22 }
 0x26c   :  { %v294_v26 = vpop.permute.xlu1 %293 }
 0x26d   :  { %v296_v29 = vmul.f32 %v294_v26, %v1724_v31 }
 0x26f   :  { %v297_v34 = vadd.f32 %v296_v29, %v291_v28 }
 0x271   :  { %v303_v37 = vadd.f32 %v302_v33, %v297_v34 }
 0x273   :  { %v309_v39 = vadd.f32 %v308_v35, %v303_v37 }
 0x275   :  { %v310_v40 = vadd.f32 %v309_v39, %v80_v38 }
 0x277   :  { %v311_v41 = vmul.f32 %v310_v40, %v1734_v48 }
 0x279   :  { %1597 = vtanh.f32 %v311_v41 }
 0x27f   :  { %v1598_v42 = vpop.eup %1597 }
 0x280   :  { %317 = vrot.lane.b32.xlu1 %v1598_v42, %s1667_s20  ;;  %v313_v43 = vmul.f32 0.5, %v1598_v42  ;;  %v14_v42 = vld [vmem:[%s2266_s0 + $0x18] sm:$0xff] }
 0x281   :  { %1418 = vmatmul.msk.f32.gmra.mxu0 %vm35_vm0, %v14_v42 }
 0x282   :  { %v314_v44 = vadd.f32 0.5, %v313_v43 }
 0x284   :  { %v315_v47 = vmul.f32 %v314_v44, %v1739_v59 }
 0x2f2   :  { %v318_v45 = vpop.permute.xlu1 %317 }
 0x2f3   :  { %v320_v46 = vmul.f32 %v318_v45, %v314_v44 }
 0x2f5   :  { %322 = vrot.lane.b32.xlu2 %v320_v46, %s1665_s17 }
 0x34f   :  { %v323_v49 = vpop.permute.xlu2 %322 }
 0x350   :  { %v325_v50 = vadd.f32 %v323_v49, %v315_v47 }
 0x352   :  { %1599 = vtanh.f32 %v325_v50 }
 0x358   :  { %v1600_v51 = vpop.eup %1599 }
 0x359   :  { %328 = vrot.lane.b32.xlu1 %v1600_v51, %s1668_s21 }
 0x3cb   :  { %v329_v53 = vpop.permute.xlu1 %328 }
 0x3cc   :  { %v331_v54 = vmul.f32 %v329_v53, %v314_v44 }
 0x3ce   :  { %345 = vperm.xlu1 %1481, %v331_v54   ;;  %339 = vperm.xlu0 %1480, %v331_v54  }
 0x3cf   :  { %334 = vperm.xlu2 %1479, %v331_v54  }
 0x3d6   :  { %1483 = vset.pattern.permute.xlu1 %v1673_v4  ;;  %1485 = vset.pattern.permute.xlu0 %v1675_v6 }
 0x3d7   :  { %1482 = vset.pattern.permute.xlu2 %v1674_v5  ;;  %357 = vperm.xlu1 %1483, %v331_v54  }
 0x3d8   :  { %369 = vperm.xlu0 %1485, %v331_v54   ;;  %351 = vperm.xlu2 %1482, %v331_v54  }
 0x3df   :  { %1486 = vset.pattern.permute.xlu1 %v1672_v3 }
 0x3e0   :  { %1484 = vset.pattern.permute.xlu2 %v1676_v7  ;;  %375 = vperm.xlu1 %1486, %v331_v54  }
 0x3e1   :  { %363 = vperm.xlu2 %1484, %v331_v54   ;;  %1487 = vset.pattern.permute.xlu0 %v1670_v62 }
 0x3e8   :  { %1488 = vset.pattern.permute.xlu1 %v1669_v61 }
 0x3e9   :  { %1489 = vset.pattern.permute.xlu2 %v1671_v63 }
 0x429   :  { %v335_v55 = vpop.permute.xlu2 %334 }
 0x42a   :  { %v337_v59 = vmul.f32 %v335_v55, %v1710_v16 }
 0x432   :  { %v352_v56 = vpop.permute.xlu2 %351 }
 0x433   :  { %v354_v8 = vmul.f32 %v352_v56, %v1718_v24 }
 0x43b   :  { %v364_v10 = vpop.permute.xlu2 %363 }
 0x43c   :  { %v366_v14 = vmul.f32 %v364_v10, %v1724_v31 }
 0x440   :  { %v346_v57 = vpop.permute.xlu1 %345  ;;  %v340_v58 = vpop.permute.xlu0 %339 }
 0x441   :  { %v342_v60 = vmul.f32 %v340_v58, %v1712_v17  ;;  %v348_v1 = vmul.f32 %v346_v57, %v1714_v19 }
 0x443   :  { %v343_v0 = vadd.f32 %v342_v60, %v337_v59 }
 0x445   :  { %v349_v2 = vadd.f32 %v348_v1, %v343_v0 }
 0x447   :  { %v355_v11 = vadd.f32 %v354_v8, %v349_v2 }
 0x449   :  { %v358_v9 = vpop.permute.xlu1 %357 }
 0x44a   :  { %v360_v12 = vmul.f32 %v358_v9, %v1721_v27  ;;  %v370_v15 = vpop.permute.xlu0 %369 }
 0x44b   :  { %v372_v20 = vmul.f32 %v370_v15, %v1726_v32 }
 0x44c   :  { %v361_v13 = vadd.f32 %v360_v12, %v355_v11  ;;  %v86_v12 = vpop.f32.mrf.mxu0 }
 0x44e   :  { %v367_v18 = vadd.f32 %v366_v14, %v361_v13 }
 0x450   :  { %v373_v22 = vadd.f32 %v372_v20, %v367_v18 }
 0x452   :  { %v376_v21 = vpop.permute.xlu1 %375 }
 0x453   :  { %v378_v23 = vmul.f32 %v376_v21, %v1729_v36 }
 0x455   :  { %v379_v26 = vadd.f32 %v378_v23, %v373_v22 }
 0x457   :  { %v380_v28 = vadd.f32 %v379_v26, %v83_v25 }
 0x459   :  { %v381_v29 = vmul.f32 %v380_v28, %v1734_v48 }
 0x45b   :  { %1601 = vtanh.f32 %v381_v29 }
 0x461   :  { %v1602_v30 = vpop.eup %1601 }
 0x462   :  { %387 = vrot.lane.b32.xlu2 %v1602_v30, %s1667_s20  ;;  %v383_v33 = vmul.f32 0.5, %v1602_v30  ;;  %v15_v30 = vld [vmem:[%s2266_s0 + $0x20] sm:$0xff] }
 0x463   :  { %1419 = vmatmul.msk.f32.gmra.mxu0 %vm35_vm0, %v15_v30 }
 0x464   :  { %v384_v34 = vadd.f32 0.5, %v383_v33 }
 0x466   :  { %v385_v38 = vmul.f32 %v384_v34, %v325_v50 }
 0x4bc   :  { %v388_v35 = vpop.permute.xlu2 %387 }
 0x4bd   :  { %v390_v37 = vmul.f32 %v388_v35, %v384_v34 }
 0x4bf   :  { %392 = vrot.lane.b32.xlu1 %v390_v37, %s1665_s17 }
 0x531   :  { %v393_v39 = vpop.permute.xlu1 %392 }
 0x532   :  { %v395_v40 = vadd.f32 %v393_v39, %v385_v38 }
 0x534   :  { %1603 = vtanh.f32 %v395_v40 }
 0x53a   :  { %v1604_v41 = vpop.eup %1603 }
 0x53b   :  { %398 = vrot.lane.b32.xlu2 %v1604_v41, %s1668_s21 }
 0x595   :  { %v399_v43 = vpop.permute.xlu2 %398 }
 0x596   :  { %v401_v44 = vmul.f32 %v399_v43, %v384_v34 }
 0x598   :  { %415 = vperm.xlu2 %1489, %v401_v44   ;;  %409 = vperm.xlu1 %1488, %v401_v44  }
 0x599   :  { %404 = vperm.xlu0 %1487, %v401_v44  }
 0x5a0   :  { %1491 = vset.pattern.permute.xlu2 %v1673_v4  ;;  %1490 = vset.pattern.permute.xlu1 %v1674_v5 }
 0x5a1   :  { %1492 = vset.pattern.permute.xlu0 %v1676_v7  ;;  %427 = vperm.xlu2 %1491, %v401_v44  }
 0x5a2   :  { %421 = vperm.xlu1 %1490, %v401_v44   ;;  %433 = vperm.xlu0 %1492, %v401_v44  }
 0x5a9   :  { %1494 = vset.pattern.permute.xlu2 %v1672_v3 }
 0x5aa   :  { %1493 = vset.pattern.permute.xlu1 %v1675_v6  ;;  %445 = vperm.xlu2 %1494, %v401_v44  }
 0x5ab   :  { %439 = vperm.xlu1 %1493, %v401_v44   ;;  %1497 = vset.pattern.permute.xlu0 %v1671_v63 }
 0x5b2   :  { %1496 = vset.pattern.permute.xlu2 %v1669_v61 }
 0x5b3   :  { %1495 = vset.pattern.permute.xlu1 %v1670_v62 }
 0x5f2   :  { %v416_v45 = vpop.permute.xlu2 %415 }
 0x5f3   :  { %v418_v52 = vmul.f32 %v416_v45, %v1714_v19 }
 0x5fb   :  { %v428_v53 = vpop.permute.xlu2 %427 }
 0x5fc   :  { %v430_v58 = vmul.f32 %v428_v53, %v1721_v27 }
 0x604   :  { %v446_v1 = vpop.permute.xlu2 %445 }
 0x605   :  { %v448_v10 = vmul.f32 %v446_v1, %v1729_v36 }
 0x60a   :  { %v410_v46 = vpop.permute.xlu1 %409 }
 0x60b   :  { %v405_v47 = vpop.permute.xlu0 %404  ;;  %v412_v49 = vmul.f32 %v410_v46, %v1712_v17 }
 0x60c   :  { %v407_v50 = vmul.f32 %v405_v47, %v1710_v16 }
 0x60e   :  { %v413_v51 = vadd.f32 %v412_v49, %v407_v50 }
 0x610   :  { %v419_v55 = vadd.f32 %v418_v52, %v413_v51 }
 0x614   :  { %v422_v54 = vpop.permute.xlu1 %421  ;;  %v434_v59 = vpop.permute.xlu0 %433 }
 0x615   :  { %v424_v56 = vmul.f32 %v422_v54, %v1718_v24  ;;  %v436_v0 = vmul.f32 %v434_v59, %v1724_v31  ;;  %v89_v59 = vpop.f32.mrf.mxu0 }
 0x617   :  { %v425_v57 = vadd.f32 %v424_v56, %v419_v55 }
 0x619   :  { %v431_v60 = vadd.f32 %v430_v58, %v425_v57 }
 0x61b   :  { %v437_v8 = vadd.f32 %v436_v0, %v431_v60 }
 0x61d   :  { %v440_v2 = vpop.permute.xlu1 %439 }
 0x61e   :  { %v442_v9 = vmul.f32 %v440_v2, %v1726_v32 }
 0x620   :  { %v443_v11 = vadd.f32 %v442_v9, %v437_v8 }
 0x622   :  { %v449_v13 = vadd.f32 %v448_v10, %v443_v11 }
 0x624   :  { %v450_v14 = vadd.f32 %v449_v13, %v86_v12 }
 0x626   :  { %v451_v15 = vmul.f32 %v450_v14, %v1734_v48 }
 0x628   :  { %1605 = vtanh.f32 %v451_v15 }
 0x62e   :  { %v1606_v18 = vpop.eup %1605 }
 0x62f   :  { %457 = vrot.lane.b32.xlu1 %v1606_v18, %s1667_s20  ;;  %v453_v20 = vmul.f32 0.5, %v1606_v18  ;;  %v16_v18 = vld [vmem:[%s2266_s0 + $0x28] sm:$0xff] }
 0x630   :  { %1420 = vmatmul.msk.f32.gmra.mxu0 %vm35_vm0, %v16_v18 }
 0x631   :  { %v454_v21 = vadd.f32 0.5, %v453_v20 }
 0x633   :  { %v455_v25 = vmul.f32 %v454_v21, %v395_v40 }
 0x6a1   :  { %v458_v22 = vpop.permute.xlu1 %457 }
 0x6a2   :  { %v460_v23 = vmul.f32 %v458_v22, %v454_v21 }
 0x6a4   :  { %462 = vrot.lane.b32.xlu2 %v460_v23, %s1665_s17 }
 0x6fe   :  { %v463_v26 = vpop.permute.xlu2 %462 }
 0x6ff   :  { %v465_v28 = vadd.f32 %v463_v26, %v455_v25 }
 0x701   :  { %1607 = vtanh.f32 %v465_v28 }
 0x707   :  { %v1608_v29 = vpop.eup %1607 }
 0x708   :  { %468 = vrot.lane.b32.xlu0 %v1608_v29, %s1668_s21 }
 0x77a   :  { %v469_v33 = vpop.permute.xlu0 %468 }
 0x77b   :  { %v471_v34 = vmul.f32 %v469_v33, %v454_v21 }
 0x77d   :  { %485 = vperm.xlu0 %1497, %v471_v34   ;;  %479 = vperm.xlu2 %1496, %v471_v34  }
 0x77e   :  { %474 = vperm.xlu1 %1495, %v471_v34  }
 0x785   :  { %1502 = vset.pattern.permute.xlu0 %v1672_v3  ;;  %1499 = vset.pattern.permute.xlu2 %v1673_v4 }
 0x786   :  { %1498 = vset.pattern.permute.xlu1 %v1674_v5  ;;  %515 = vperm.xlu0 %1502, %v471_v34  }
 0x787   :  { %497 = vperm.xlu2 %1499, %v471_v34   ;;  %491 = vperm.xlu1 %1498, %v471_v34  }
 0x78e   :  { %1504 = vset.pattern.permute.xlu0 %v1669_v61 }
 0x78f   :  { %1501 = vset.pattern.permute.xlu2 %v1675_v6  ;;  %1500 = vset.pattern.permute.xlu1 %v1676_v7 }
 0x790   :  { %509 = vperm.xlu2 %1501, %v471_v34   ;;  %503 = vperm.xlu1 %1500, %v471_v34  }
 0x798   :  { %1503 = vset.pattern.permute.xlu2 %v1670_v62  ;;  %1505 = vset.pattern.permute.xlu1 %v1671_v63 }
 0x7d7   :  { %v480_v35 = vpop.permute.xlu2 %479 }
 0x7d8   :  { %v482_v39 = vmul.f32 %v480_v35, %v1712_v17 }
 0x7e1   :  { %v498_v40 = vpop.permute.xlu2 %497 }
 0x7e2   :  { %v500_v49 = vmul.f32 %v498_v40, %v1721_v27 }
 0x7ea   :  { %v510_v50 = vpop.permute.xlu2 %509 }
 0x7eb   :  { %v512_v55 = vmul.f32 %v510_v50, %v1726_v32  ;;  %v92_v50 = vpop.f32.mrf.mxu0 }
 0x7ef   :  { %v486_v41 = vpop.permute.xlu0 %485 }
 0x7f0   :  { %v475_v37 = vpop.permute.xlu1 %474  ;;  %v488_v44 = vmul.f32 %v486_v41, %v1714_v19 }
 0x7f1   :  { %v477_v38 = vmul.f32 %v475_v37, %v1710_v16 }
 0x7f3   :  { %v483_v42 = vadd.f32 %v482_v39, %v477_v38 }
 0x7f5   :  { %v489_v46 = vadd.f32 %v488_v44, %v483_v42 }
 0x7f8   :  { %v516_v54 = vpop.permute.xlu0 %515 }
 0x7f9   :  { %v492_v43 = vpop.permute.xlu1 %491  ;;  %v518_v57 = vmul.f32 %v516_v54, %v1729_v36 }
 0x7fa   :  { %v494_v45 = vmul.f32 %v492_v43, %v1718_v24 }
 0x7fc   :  { %v495_v47 = vadd.f32 %v494_v45, %v489_v46 }
 0x7fe   :  { %v501_v52 = vadd.f32 %v500_v49, %v495_v47 }
 0x802   :  { %v504_v51 = vpop.permute.xlu1 %503 }
 0x803   :  { %v506_v53 = vmul.f32 %v504_v51, %v1724_v31 }
 0x805   :  { %v507_v56 = vadd.f32 %v506_v53, %v501_v52 }
 0x807   :  { %v513_v58 = vadd.f32 %v512_v55, %v507_v56 }
 0x809   :  { %v519_v60 = vadd.f32 %v518_v57, %v513_v58 }
 0x80b   :  { %v520_v0 = vadd.f32 %v519_v60, %v89_v59 }
 0x80d   :  { %v521_v1 = vmul.f32 %v520_v0, %v1734_v48 }
 0x80f   :  { %1609 = vtanh.f32 %v521_v1 }
 0x815   :  { %v1610_v2 = vpop.eup %1609 }
 0x816   :  { %527 = vrot.lane.b32.xlu1 %v1610_v2, %s1667_s20  ;;  %v523_v8 = vmul.f32 0.5, %v1610_v2  ;;  %v17_v2 = vld [vmem:[%s2266_s0 + $0x30] sm:$0xff] }
 0x817   :  { %1421 = vmatmul.msk.f32.vlgmr.msra.gmra.mxu3 %vm35_vm0, %v17_v2 }
 0x818   :  { %v524_v9 = vadd.f32 0.5, %v523_v8 }
 0x81a   :  { %v525_v12 = vmul.f32 %v524_v9, %v465_v28 }
 0x888   :  { %v528_v10 = vpop.permute.xlu1 %527 }
 0x889   :  { %v530_v11 = vmul.f32 %v528_v10, %v524_v9 }
 0x88b   :  { %532 = vrot.lane.b32.xlu2 %v530_v11, %s1665_s17 }
 0x8e5   :  { %v533_v13 = vpop.permute.xlu2 %532 }
 0x8e6   :  { %v535_v14 = vadd.f32 %v533_v13, %v525_v12 }
 0x8e8   :  { %1611 = vtanh.f32 %v535_v14 }
 0x8ee   :  { %v1612_v15 = vpop.eup %1611 }
 0x8ef   :  { %538 = vrot.lane.b32.xlu1 %v1612_v15, %s1668_s21 }
 0x961   :  { %v539_v20 = vpop.permute.xlu1 %538 }
 0x962   :  { %v541_v21 = vmul.f32 %v539_v20, %v524_v9 }
 0x964   :  { %555 = vperm.xlu1 %1505, %v541_v21   ;;  %549 = vperm.xlu0 %1504, %v541_v21  }
 0x965   :  { %544 = vperm.xlu2 %1503, %v541_v21  }
 0x96c   :  { %1507 = vset.pattern.permute.xlu1 %v1673_v4  ;;  %1509 = vset.pattern.permute.xlu0 %v1675_v6 }
 0x96d   :  { %1506 = vset.pattern.permute.xlu2 %v1674_v5  ;;  %567 = vperm.xlu1 %1507, %v541_v21  }
 0x96e   :  { %579 = vperm.xlu0 %1509, %v541_v21   ;;  %561 = vperm.xlu2 %1506, %v541_v21  }
 0x975   :  { %1510 = vset.pattern.permute.xlu1 %v1672_v3 }
 0x976   :  { %1508 = vset.pattern.permute.xlu2 %v1676_v7  ;;  %585 = vperm.xlu1 %1510, %v541_v21  }
 0x977   :  { %573 = vperm.xlu2 %1508, %v541_v21   ;;  %1511 = vset.pattern.permute.xlu0 %v1670_v62 }
 0x97e   :  { %1512 = vset.pattern.permute.xlu1 %v1669_v61 }
 0x97f   :  { %1513 = vset.pattern.permute.xlu2 %v1671_v63 }
 0x9bf   :  { %v545_v22 = vpop.permute.xlu2 %544 }
 0x9c0   :  { %v547_v28 = vmul.f32 %v545_v22, %v1710_v16 }
 0x9c8   :  { %v562_v23 = vpop.permute.xlu2 %561 }
 0x9c9   :  { %v564_v35 = vmul.f32 %v562_v23, %v1718_v24 }
 0x9d1   :  { %v574_v38 = vpop.permute.xlu2 %573 }
 0x9d2   :  { %v576_v42 = vmul.f32 %v574_v38, %v1724_v31 }
 0x9d6   :  { %v556_v25 = vpop.permute.xlu1 %555  ;;  %v550_v26 = vpop.permute.xlu0 %549 }
 0x9d7   :  { %v552_v29 = vmul.f32 %v550_v26, %v1712_v17  ;;  %v558_v33 = vmul.f32 %v556_v25, %v1714_v19 }
 0x9d9   :  { %v553_v30 = vadd.f32 %v552_v29, %v547_v28 }
 0x9db   :  { %v559_v34 = vadd.f32 %v558_v33, %v553_v30 }
 0x9dd   :  { %v565_v39 = vadd.f32 %v564_v35, %v559_v34 }
 0x9df   :  { %v568_v37 = vpop.permute.xlu1 %567 }
 0x9e0   :  { %v570_v40 = vmul.f32 %v568_v37, %v1721_v27  ;;  %v580_v43 = vpop.permute.xlu0 %579 }
 0x9e1   :  { %v582_v45 = vmul.f32 %v580_v43, %v1726_v32 }
 0x9e2   :  { %v571_v41 = vadd.f32 %v570_v40, %v565_v39  ;;  %v95_v40 = vpop.f32.mrf.mxu3 }
 0x9e4   :  { %v577_v44 = vadd.f32 %v576_v42, %v571_v41 }
 0x9e6   :  { %v583_v47 = vadd.f32 %v582_v45, %v577_v44 }
 0x9e8   :  { %v586_v46 = vpop.permute.xlu1 %585 }
 0x9e9   :  { %v588_v49 = vmul.f32 %v586_v46, %v1729_v36 }
 0x9eb   :  { %v589_v51 = vadd.f32 %v588_v49, %v583_v47 }
 0x9ed   :  { %v590_v52 = vadd.f32 %v589_v51, %v92_v50 }
 0x9ef   :  { %v591_v53 = vmul.f32 %v590_v52, %v1734_v48 }
 0x9f1   :  { %1613 = vtanh.f32 %v591_v53 }
 0x9f7   :  { %v1614_v54 = vpop.eup %1613 }
 0x9f8   :  { %597 = vrot.lane.b32.xlu2 %v1614_v54, %s1667_s20  ;;  %v593_v55 = vmul.f32 0.5, %v1614_v54  ;;  %v18_v54 = vld [vmem:[%s2266_s0 + $0x38] sm:$0xff] }
 0x9f9   :  { %1422 = vmatmul.msk.f32.gmra.mxu3 %vm35_vm0, %v18_v54 }
 0x9fa   :  { %v594_v56 = vadd.f32 0.5, %v593_v55 }
 0x9fc   :  { %v595_v59 = vmul.f32 %v594_v56, %v535_v14 }
 0xa52   :  { %v598_v57 = vpop.permute.xlu2 %597 }
 0xa53   :  { %v600_v58 = vmul.f32 %v598_v57, %v594_v56 }
 0xa55   :  { %602 = vrot.lane.b32.xlu1 %v600_v58, %s1665_s17 }
 0xac7   :  { %v603_v60 = vpop.permute.xlu1 %602 }
 0xac8   :  { %v605_v0 = vadd.f32 %v603_v60, %v595_v59 }
 0xaca   :  { %1615 = vtanh.f32 %v605_v0 }
 0xad0   :  { %v1616_v1 = vpop.eup %1615 }
 0xad1   :  { %608 = vrot.lane.b32.xlu2 %v1616_v1, %s1668_s21 }
 0xb2b   :  { %v609_v8 = vpop.permute.xlu2 %608 }
 0xb2c   :  { %v611_v9 = vmul.f32 %v609_v8, %v594_v56 }
 0xb2e   :  { %625 = vperm.xlu2 %1513, %v611_v9   ;;  %619 = vperm.xlu1 %1512, %v611_v9  }
 0xb2f   :  { %614 = vperm.xlu0 %1511, %v611_v9  }
 0xb36   :  { %1515 = vset.pattern.permute.xlu2 %v1673_v4  ;;  %1514 = vset.pattern.permute.xlu1 %v1674_v5 }
 0xb37   :  { %1516 = vset.pattern.permute.xlu0 %v1676_v7  ;;  %637 = vperm.xlu2 %1515, %v611_v9  }
 0xb38   :  { %631 = vperm.xlu1 %1514, %v611_v9   ;;  %643 = vperm.xlu0 %1516, %v611_v9  }
 0xb3f   :  { %1518 = vset.pattern.permute.xlu2 %v1672_v3 }
 0xb40   :  { %1517 = vset.pattern.permute.xlu1 %v1675_v6  ;;  %655 = vperm.xlu2 %1518, %v611_v9  }
 0xb41   :  { %649 = vperm.xlu1 %1517, %v611_v9   ;;  %1521 = vset.pattern.permute.xlu0 %v1671_v63 }
 0xb48   :  { %1520 = vset.pattern.permute.xlu2 %v1669_v61 }
 0xb49   :  { %1519 = vset.pattern.permute.xlu1 %v1670_v62 }
 0xb88   :  { %v626_v10 = vpop.permute.xlu2 %625 }
 0xb89   :  { %v628_v18 = vmul.f32 %v626_v10, %v1714_v19 }
 0xb91   :  { %v638_v20 = vpop.permute.xlu2 %637 }
 0xb92   :  { %v640_v26 = vmul.f32 %v638_v20, %v1721_v27 }
 0xb9a   :  { %v656_v33 = vpop.permute.xlu2 %655 }
 0xb9b   :  { %v658_v38 = vmul.f32 %v656_v33, %v1729_v36 }
 0xba0   :  { %v620_v11 = vpop.permute.xlu1 %619 }
 0xba1   :  { %v615_v12 = vpop.permute.xlu0 %614  ;;  %v622_v13 = vmul.f32 %v620_v11, %v1712_v17 }
 0xba2   :  { %v617_v14 = vmul.f32 %v615_v12, %v1710_v16 }
 0xba4   :  { %v623_v15 = vadd.f32 %v622_v13, %v617_v14 }
 0xba6   :  { %v629_v22 = vadd.f32 %v628_v18, %v623_v15 }
 0xbaa   :  { %v632_v21 = vpop.permute.xlu1 %631  ;;  %v644_v28 = vpop.permute.xlu0 %643 }
 0xbab   :  { %v634_v23 = vmul.f32 %v632_v21, %v1718_v24  ;;  %v646_v30 = vmul.f32 %v644_v28, %v1724_v31 }
 0xbad   :  { %v635_v25 = vadd.f32 %v634_v23, %v629_v22 }
 0xbaf   :  { %v641_v29 = vadd.f32 %v640_v26, %v635_v25  ;;  %v98_v25 = vpop.f32.mrf.mxu3 }
 0xbb1   :  { %v647_v35 = vadd.f32 %v646_v30, %v641_v29 }
 0xbb3   :  { %v650_v34 = vpop.permute.xlu1 %649 }
 0xbb4   :  { %v652_v37 = vmul.f32 %v650_v34, %v1726_v32 }
 0xbb6   :  { %v653_v39 = vadd.f32 %v652_v37, %v647_v35  ;;  %v31_v35 = vld [vmem:[%s2267_s1 + $0x10] sm:$0xff]  ;;  %v19_v37 = vld [vmem:[%s2266_s0 + $0x40] sm:$0xff] }
 0xbb7   :  { %140 = vmatpush.msra.mxu1 %v31_v35  ;;  %1440 = vmatpush.msrb.mxu3 %v31_v35 }
 0xbb8   :  { %v659_v41 = vadd.f32 %v658_v38, %v653_v39  ;;  %1423 = vmatmul.msk.f32.vlgmr.msra.gmra.mxu1 %vm35_vm0, %v19_v37 }
 0xbba   :  { %v660_v42 = vadd.f32 %v659_v41, %v95_v40  ;;  %v32_v41 = vld [vmem:[%s2267_s1 + $0x18] sm:$0xff] }
 0xbbc   :  { %v661_v43 = vmul.f32 %v660_v42, %v1734_v48  ;;  %v1936_v42 = vperm.slane %v32_v41, 0 }
 0xbbe   :  { %1617 = vtanh.f32 %v661_v43  ;;  %v1938_v43 = vperm.slane %v32_v41, 1 }
 0xbc4   :  { %v1618_v44 = vpop.eup %1617 }
 0xbc5   :  { %667 = vrot.lane.b32.xlu1 %v1618_v44, %s1667_s20  ;;  %v663_v45 = vmul.f32 0.5, %v1618_v44 }
 0xbc7   :  { %v664_v46 = vadd.f32 0.5, %v663_v45  ;;  %v1940_v45 = vperm.slane %v32_v41, 2 }
 0xbc9   :  { %v665_v50 = vmul.f32 %v664_v46, %v605_v0 }
 0xc37   :  { %v668_v47 = vpop.permute.xlu1 %667 }
 0xc38   :  { %v670_v49 = vmul.f32 %v668_v47, %v664_v46 }
 0xc3a   :  { %672 = vrot.lane.b32.xlu2 %v670_v49, %s1665_s17 }
 0xc94   :  { %v673_v51 = vpop.permute.xlu2 %672 }
 0xc95   :  { %v675_v52 = vadd.f32 %v673_v51, %v665_v50 }
 0xc97   :  { %1619 = vtanh.f32 %v675_v52 }
 0xc9d   :  { %v1620_v53 = vpop.eup %1619 }
 0xc9e   :  { %678 = vrot.lane.b32.xlu0 %v1620_v53, %s1668_s21 }
 0xd10   :  { %v679_v55 = vpop.permute.xlu0 %678 }
 0xd11   :  { %v681_v56 = vmul.f32 %v679_v55, %v664_v46  ;;  %v1947_v55 = vperm.slane %v32_v41, 4 }
 0xd13   :  { %695 = vperm.xlu0 %1521, %v681_v56   ;;  %689 = vperm.xlu2 %1520, %v681_v56  }
 0xd14   :  { %684 = vperm.xlu1 %1519, %v681_v56  }
 0xd1b   :  { %1526 = vset.pattern.permute.xlu0 %v1672_v3  ;;  %1523 = vset.pattern.permute.xlu2 %v1673_v4 }
 0xd1c   :  { %1522 = vset.pattern.permute.xlu1 %v1674_v5  ;;  %725 = vperm.xlu0 %1526, %v681_v56  }
 0xd1d   :  { %707 = vperm.xlu2 %1523, %v681_v56   ;;  %701 = vperm.xlu1 %1522, %v681_v56  }
 0xd24   :  { %1528 = vset.pattern.permute.xlu0 %v1669_v61 }
 0xd25   :  { %1525 = vset.pattern.permute.xlu2 %v1675_v6  ;;  %1524 = vset.pattern.permute.xlu1 %v1676_v7 }
 0xd26   :  { %719 = vperm.xlu2 %1525, %v681_v56   ;;  %713 = vperm.xlu1 %1524, %v681_v56  }
 0xd2e   :  { %1527 = vset.pattern.permute.xlu2 %v1670_v62  ;;  %1529 = vset.pattern.permute.xlu1 %v1671_v63 }
 0xd6d   :  { %v690_v57 = vpop.permute.xlu2 %689 }
 0xd6e   :  { %v692_v60 = vmul.f32 %v690_v57, %v1712_v17  ;;  %v1950_v57 = vperm.slane %v32_v41, 5 }
 0xd77   :  { %v708_v0 = vpop.permute.xlu2 %707 }
 0xd78   :  { %v710_v13 = vmul.f32 %v708_v0, %v1721_v27 }
 0xd80   :  { %v720_v14 = vpop.permute.xlu2 %719 }
 0xd81   :  { %v722_v17 = vmul.f32 %v720_v14, %v1726_v32 }
 0xd85   :  { %v696_v1 = vpop.permute.xlu0 %695 }
 0xd86   :  { %v685_v58 = vpop.permute.xlu1 %684  ;;  %v698_v9 = vmul.f32 %v696_v1, %v1714_v19 }
 0xd87   :  { %v687_v59 = vmul.f32 %v685_v58, %v1710_v16 }
 0xd89   :  { %v693_v2 = vadd.f32 %v692_v60, %v687_v59 }
 0xd8b   :  { %v699_v11 = vadd.f32 %v698_v9, %v693_v2 }
 0xd8e   :  { %v726_v16 = vpop.permute.xlu0 %725 }
 0xd8f   :  { %v702_v8 = vpop.permute.xlu1 %701  ;;  %v728_v22 = vmul.f32 %v726_v16, %v1729_v36 }
 0xd90   :  { %v704_v10 = vmul.f32 %v702_v8, %v1718_v24  ;;  %v1954_v8 = vperm.slane %v32_v41, 6 }
 0xd92   :  { %v705_v12 = vadd.f32 %v704_v10, %v699_v11  ;;  %v1956_v11 = vperm.slane %v32_v41, 7 }
 0xd94   :  { %v711_v18 = vadd.f32 %v710_v13, %v705_v12 }
 0xd98   :  { %v714_v15 = vpop.permute.xlu1 %713 }
 0xd99   :  { %v716_v20 = vmul.f32 %v714_v15, %v1724_v31 }
 0xd9b   :  { %v717_v21 = vadd.f32 %v716_v20, %v711_v18  ;;  %v142_v18 = vpop.f32.mrf.mxu1 }
 0xd9d   :  { %v723_v23 = vadd.f32 %v722_v17, %v717_v21 }
 0xd9f   :  { %v729_v19 = vadd.f32 %v728_v22, %v723_v23 }
 0xda1   :  { %v730_v26 = vadd.f32 %v729_v19, %v98_v25 }
 0xda3   :  { %v731_v24 = vmul.f32 %v730_v26, %v1734_v48 }
 0xda5   :  { %1621 = vtanh.f32 %v731_v24 }
 0xdab   :  { %v1622_v28 = vpop.eup %1621 }
 0xdac   :  { %737 = vrot.lane.b32.xlu1 %v1622_v28, %s1667_s20  ;;  %v733_v27 = vmul.f32 0.5, %v1622_v28 }
 0xdae   :  { %v734_v29 = vadd.f32 0.5, %v733_v27 }
 0xdb0   :  { %v735_v32 = vmul.f32 %v734_v29, %v675_v52  ;;  %v1944_v52 = vperm.slane %v32_v41, 3 }
 0xe1e   :  { %v738_v30 = vpop.permute.xlu1 %737 }
 0xe1f   :  { %v740_v31 = vmul.f32 %v738_v30, %v734_v29 }
 0xe21   :  { %742 = vrot.lane.b32.xlu2 %v740_v31, %s1665_s17 }
 0xe7b   :  { %v743_v33 = vpop.permute.xlu2 %742 }
 0xe7c   :  { %v1914_v34 = vadd.f32 %v743_v33, %v735_v32 }
 0xe7e   :  { %1623 = vtanh.f32 %v1914_v34 }
 0xe84   :  { %v1624_v36 = vpop.eup %1623 }
 0xe85   :  { %748 = vrot.lane.b32.xlu1 %v1624_v36, %s1668_s21 }
 0xef7   :  { %v749_v38 = vpop.permute.xlu1 %748 }
 0xef8   :  { %v751_v39 = vmul.f32 %v749_v38, %v734_v29  ;;  %v20_v29 = vld [vmem:[%s2266_s0 + $0x48] sm:$0xff] }
 0xef9   :  { %1424 = vmatmul.msk.f32.gmra.mxu1 %vm35_vm0, %v20_v29 }
 0xefa   :  { %765 = vperm.xlu1 %1529, %v751_v39   ;;  %759 = vperm.xlu0 %1528, %v751_v39  }
 0xefb   :  { %754 = vperm.xlu2 %1527, %v751_v39  }
 0xf02   :  { %1531 = vset.pattern.permute.xlu1 %v1673_v4  ;;  %1533 = vset.pattern.permute.xlu0 %v1675_v6 }
 0xf03   :  { %1530 = vset.pattern.permute.xlu2 %v1674_v5  ;;  %777 = vperm.xlu1 %1531, %v751_v39  }
 0xf04   :  { %789 = vperm.xlu0 %1533, %v751_v39   ;;  %771 = vperm.xlu2 %1530, %v751_v39  }
 0xf0b   :  { %1534 = vset.pattern.permute.xlu1 %v1672_v3 }
 0xf0c   :  { %1532 = vset.pattern.permute.xlu2 %v1676_v7  ;;  %795 = vperm.xlu1 %1534, %v751_v39  }
 0xf0d   :  { %783 = vperm.xlu2 %1532, %v751_v39   ;;  %1535 = vset.pattern.permute.xlu0 %v1670_v62 }
 0xf14   :  { %1536 = vset.pattern.permute.xlu1 %v1669_v61 }
 0xf15   :  { %1537 = vset.pattern.permute.xlu2 %v1671_v63 }
 0xf55   :  { %v755_v40 = vpop.permute.xlu2 %754 }
 0xf56   :  { %v757_v49 = vmul.f32 %v755_v40, %v1936_v42 }
 0xf5e   :  { %v772_v44 = vpop.permute.xlu2 %771 }
 0xf5f   :  { %v774_v56 = vmul.f32 %v772_v44, %v1944_v52 }
 0xf67   :  { %v784_v59 = vpop.permute.xlu2 %783 }
 0xf68   :  { %v786_v2 = vmul.f32 %v784_v59, %v1950_v57 }
 0xf6c   :  { %v766_v46 = vpop.permute.xlu1 %765  ;;  %v760_v47 = vpop.permute.xlu0 %759 }
 0xf6d   :  { %v762_v50 = vmul.f32 %v760_v47, %v1938_v43  ;;  %v768_v53 = vmul.f32 %v766_v46, %v1940_v45 }
 0xf6f   :  { %v763_v51 = vadd.f32 %v762_v50, %v757_v49 }
 0xf71   :  { %v769_v54 = vadd.f32 %v768_v53, %v763_v51 }
 0xf73   :  { %v775_v60 = vadd.f32 %v774_v56, %v769_v54 }
 0xf75   :  { %v778_v58 = vpop.permute.xlu1 %777 }
 0xf76   :  { %v780_v0 = vmul.f32 %v778_v58, %v1947_v55  ;;  %v790_v9 = vpop.permute.xlu0 %789 }
 0xf77   :  { %v792_v12 = vmul.f32 %v790_v9, %v1954_v8 }
 0xf78   :  { %v781_v1 = vadd.f32 %v780_v0, %v775_v60  ;;  %v145_v0 = vpop.f32.mrf.mxu1 }
 0xf7a   :  { %v787_v10 = vadd.f32 %v786_v2, %v781_v1 }
 0xf7c   :  { %v793_v14 = vadd.f32 %v792_v12, %v787_v10 }
 0xf7e   :  { %v796_v13 = vpop.permute.xlu1 %795 }
 0xf7f   :  { %v798_v15 = vmul.f32 %v796_v13, %v1956_v11 }
 0xf81   :  { %v799_v20 = vadd.f32 %v798_v15, %v793_v14 }
 0xf83   :  { %v800_v16 = vadd.f32 %v799_v20, %v142_v18 }
 0xf85   :  { %v801_v17 = vmul.f32 %v800_v16, %v1734_v48 }
 0xf87   :  { %1625 = vtanh.f32 %v801_v17 }
 0xf8d   :  { %v1626_v21 = vpop.eup %1625 }
 0xf8e   :  { %807 = vrot.lane.b32.xlu2 %v1626_v21, %s1667_s20  ;;  %v803_v22 = vmul.f32 0.5, %v1626_v21  ;;  %v21_v21 = vld [vmem:[%s2266_s0 + $0x50] sm:$0xff] }
 0xf8f   :  { %1425 = vmatmul.msk.f32.gmra.mxu1 %vm35_vm0, %v21_v21 }
 0xf90   :  { %v804_v23 = vadd.f32 0.5, %v803_v22 }
 0xf92   :  { %v805_v26 = vmul.f32 %v804_v23, %v1914_v34 }
 0xfe8   :  { %v808_v25 = vpop.permute.xlu2 %807 }
 0xfe9   :  { %v810_v19 = vmul.f32 %v808_v25, %v804_v23 }
 0xfeb   :  { %812 = vrot.lane.b32.xlu1 %v810_v19, %s1665_s17 }
0x105d   :  { %v813_v24 = vpop.permute.xlu1 %812 }
0x105e   :  { %v815_v28 = vadd.f32 %v813_v24, %v805_v26 }
0x1060   :  { %1627 = vtanh.f32 %v815_v28 }
0x1066   :  { %v1628_v27 = vpop.eup %1627 }
0x1067   :  { %818 = vrot.lane.b32.xlu2 %v1628_v27, %s1668_s21 }
0x10c1   :  { %v819_v30 = vpop.permute.xlu2 %818 }
0x10c2   :  { %v1969_v31 = vmul.f32 %v819_v30, %v804_v23 }
0x10c4   :  { %835 = vperm.xlu2 %1537, %v1969_v31   ;;  %829 = vperm.xlu1 %1536, %v1969_v31  }
0x10c5   :  { %824 = vperm.xlu0 %1535, %v1969_v31  }
0x10cc   :  { %1539 = vset.pattern.permute.xlu2 %v1673_v4  ;;  %1538 = vset.pattern.permute.xlu1 %v1674_v5 }
0x10cd   :  { %1540 = vset.pattern.permute.xlu0 %v1676_v7  ;;  %847 = vperm.xlu2 %1539, %v1969_v31  }
0x10ce   :  { %841 = vperm.xlu1 %1538, %v1969_v31   ;;  %853 = vperm.xlu0 %1540, %v1969_v31  }
0x10d5   :  { %1542 = vset.pattern.permute.xlu2 %v1672_v3 }
0x10d6   :  { %1541 = vset.pattern.permute.xlu1 %v1675_v6  ;;  %865 = vperm.xlu2 %1542, %v1969_v31  }
0x10d7   :  { %859 = vperm.xlu1 %1541, %v1969_v31   ;;  %1545 = vset.pattern.permute.xlu0 %v1671_v63 }
0x10de   :  { %1544 = vset.pattern.permute.xlu2 %v1669_v61 }
0x10df   :  { %1543 = vset.pattern.permute.xlu1 %v1670_v62 }
0x111e   :  { %v836_v32 = vpop.permute.xlu2 %835 }
0x111f   :  { %v838_v38 = vmul.f32 %v836_v32, %v1940_v45 }
0x1127   :  { %v848_v39 = vpop.permute.xlu2 %847 }
0x1128   :  { %v850_v47 = vmul.f32 %v848_v39, %v1947_v55 }
0x1130   :  { %v866_v53 = vpop.permute.xlu2 %865 }
0x1131   :  { %v868_v59 = vmul.f32 %v866_v53, %v1956_v11 }
0x1136   :  { %v830_v33 = vpop.permute.xlu1 %829 }
0x1137   :  { %v825_v34 = vpop.permute.xlu0 %824  ;;  %v832_v36 = vmul.f32 %v830_v33, %v1938_v43 }
0x1138   :  { %v827_v35 = vmul.f32 %v825_v34, %v1936_v42 }
0x113a   :  { %v833_v37 = vadd.f32 %v832_v36, %v827_v35 }
0x113c   :  { %v839_v41 = vadd.f32 %v838_v38, %v833_v37 }
0x1140   :  { %v842_v40 = vpop.permute.xlu1 %841  ;;  %v854_v49 = vpop.permute.xlu0 %853 }
0x1141   :  { %v844_v44 = vmul.f32 %v842_v40, %v1944_v52  ;;  %v856_v51 = vmul.f32 %v854_v49, %v1950_v57 }
0x1143   :  { %v845_v46 = vadd.f32 %v844_v44, %v839_v41 }
0x1145   :  { %v851_v50 = vadd.f32 %v850_v47, %v845_v46 }
0x1147   :  { %v857_v56 = vadd.f32 %v856_v51, %v851_v50  ;;  %v148_v50 = vpop.f32.mrf.mxu1 }
0x1149   :  { %v860_v54 = vpop.permute.xlu1 %859 }
0x114a   :  { %v862_v58 = vmul.f32 %v860_v54, %v1954_v8 }
0x114c   :  { %v863_v60 = vadd.f32 %v862_v58, %v857_v56 }
0x114e   :  { %v869_v1 = vadd.f32 %v868_v59, %v863_v60 }
0x1150   :  { %v870_v2 = vadd.f32 %v869_v1, %v145_v0 }
0x1152   :  { %v871_v9 = vmul.f32 %v870_v2, %v1734_v48 }
0x1154   :  { %1629 = vtanh.f32 %v871_v9 }
0x115a   :  { %v1630_v10 = vpop.eup %1629 }
0x115b   :  { %877 = vrot.lane.b32.xlu1 %v1630_v10, %s1667_s20  ;;  %v873_v12 = vmul.f32 0.5, %v1630_v10 }
0x115d   :  { %v874_v13 = vadd.f32 0.5, %v873_v12  ;;  %v22_v12 = vld [vmem:[%s2266_s0 + $0x58] sm:$0xff] }
0x115e   :  { %1426 = vmatmul.msk.f32.gmra.mxu1 %vm35_vm0, %v22_v12 }
0x115f   :  { %v875_v18 = vmul.f32 %v874_v13, %v815_v28 }
0x11cd   :  { %v878_v14 = vpop.permute.xlu1 %877 }
0x11ce   :  { %v880_v15 = vmul.f32 %v878_v14, %v874_v13 }
0x11d0   :  { %882 = vrot.lane.b32.xlu2 %v880_v15, %s1665_s17 }
0x122a   :  { %v883_v20 = vpop.permute.xlu2 %882 }
0x122b   :  { %v885_v16 = vadd.f32 %v883_v20, %v875_v18 }
0x122d   :  { %1631 = vtanh.f32 %v885_v16 }
0x1233   :  { %v1632_v17 = vpop.eup %1631 }
0x1234   :  { %888 = vrot.lane.b32.xlu0 %v1632_v17, %s1668_s21 }
0x12a6   :  { %v889_v22 = vpop.permute.xlu0 %888 }
0x12a7   :  { %v2003_v23 = vmul.f32 %v889_v22, %v874_v13 }
0x12a9   :  { %905 = vperm.xlu0 %1545, %v2003_v23   ;;  %899 = vperm.xlu2 %1544, %v2003_v23  }
0x12aa   :  { %894 = vperm.xlu1 %1543, %v2003_v23  }
0x12b1   :  { %1550 = vset.pattern.permute.xlu0 %v1672_v3  ;;  %1547 = vset.pattern.permute.xlu2 %v1673_v4 }
0x12b2   :  { %1546 = vset.pattern.permute.xlu1 %v1674_v5  ;;  %935 = vperm.xlu0 %1550, %v2003_v23  }
0x12b3   :  { %917 = vperm.xlu2 %1547, %v2003_v23   ;;  %911 = vperm.xlu1 %1546, %v2003_v23  }
0x12ba   :  { %1552 = vset.pattern.permute.xlu0 %v1669_v61 }
0x12bb   :  { %1549 = vset.pattern.permute.xlu2 %v1675_v6  ;;  %1548 = vset.pattern.permute.xlu1 %v1676_v7 }
0x12bc   :  { %929 = vperm.xlu2 %1549, %v2003_v23   ;;  %923 = vperm.xlu1 %1548, %v2003_v23  }
0x12c4   :  { %1551 = vset.pattern.permute.xlu2 %v1670_v62  ;;  %1553 = vset.pattern.permute.xlu1 %v1671_v63 }
0x1303   :  { %v900_v25 = vpop.permute.xlu2 %899 }
0x1304   :  { %v902_v24 = vmul.f32 %v900_v25, %v1938_v43 }
0x130d   :  { %v918_v28 = vpop.permute.xlu2 %917 }
0x130e   :  { %v920_v35 = vmul.f32 %v918_v28, %v1947_v55 }
0x1316   :  { %v930_v37 = vpop.permute.xlu2 %929 }
0x1317   :  { %v932_v44 = vmul.f32 %v930_v37, %v1954_v8 }
0x131b   :  { %v906_v27 = vpop.permute.xlu0 %905 }
0x131c   :  { %v895_v19 = vpop.permute.xlu1 %894  ;;  %v908_v32 = vmul.f32 %v906_v27, %v1940_v45 }
0x131d   :  { %v897_v26 = vmul.f32 %v895_v19, %v1936_v42 }
0x131f   :  { %v903_v29 = vadd.f32 %v902_v24, %v897_v26 }
0x1321   :  { %v909_v34 = vadd.f32 %v908_v32, %v903_v29 }
0x1324   :  { %v936_v41 = vpop.permute.xlu0 %935 }
0x1325   :  { %v912_v30 = vpop.permute.xlu1 %911  ;;  %v938_v47 = vmul.f32 %v936_v41, %v1956_v11 }
0x1326   :  { %v914_v33 = vmul.f32 %v912_v30, %v1944_v52 }
0x1328   :  { %v915_v36 = vadd.f32 %v914_v33, %v909_v34 }
0x132a   :  { %v921_v39 = vadd.f32 %v920_v35, %v915_v36 }
0x132e   :  { %v924_v38 = vpop.permute.xlu1 %923 }
0x132f   :  { %v926_v40 = vmul.f32 %v924_v38, %v1950_v57 }
0x1331   :  { %v927_v46 = vadd.f32 %v926_v40, %v921_v39  ;;  %v151_v39 = vpop.f32.mrf.mxu1 }
0x1333   :  { %v933_v49 = vadd.f32 %v932_v44, %v927_v46 }
0x1335   :  { %v939_v51 = vadd.f32 %v938_v47, %v933_v49 }
0x1337   :  { %v940_v53 = vadd.f32 %v939_v51, %v148_v50 }
0x1339   :  { %v941_v54 = vmul.f32 %v940_v53, %v1734_v48 }
0x133b   :  { %1633 = vtanh.f32 %v941_v54 }
0x1341   :  { %v1634_v56 = vpop.eup %1633 }
0x1342   :  { %947 = vrot.lane.b32.xlu1 %v1634_v56, %s1667_s20  ;;  %v943_v58 = vmul.f32 0.5, %v1634_v56 }
0x1344   :  { %v944_v59 = vadd.f32 0.5, %v943_v58 }
0x1346   :  { %v945_v1 = vmul.f32 %v944_v59, %v885_v16 }
0x13b4   :  { %v948_v60 = vpop.permute.xlu1 %947 }
0x13b5   :  { %v950_v0 = vmul.f32 %v948_v60, %v944_v59 }
0x13b7   :  { %952 = vrot.lane.b32.xlu2 %v950_v0, %s1665_s17 }
0x1411   :  { %v953_v2 = vpop.permute.xlu2 %952 }
0x1412   :  { %v955_v9 = vadd.f32 %v953_v2, %v945_v1 }
0x1414   :  { %1635 = vtanh.f32 %v955_v9 }
0x141a   :  { %v1636_v10 = vpop.eup %1635 }
0x141b   :  { %958 = vrot.lane.b32.xlu1 %v1636_v10, %s1668_s21 }
0x148d   :  { %v959_v13 = vpop.permute.xlu1 %958 }
0x148e   :  { %v2037_v14 = vmul.f32 %v959_v13, %v944_v59  ;;  %v23_v59 = vld [vmem:[%s2266_s0 + $0x60] sm:$0xff] }
0x148f   :  { %1427 = vmatmul.msk.f32.gmra.mxu1 %vm35_vm0, %v23_v59 }
0x1490   :  { %975 = vperm.xlu1 %1553, %v2037_v14   ;;  %969 = vperm.xlu0 %1552, %v2037_v14  }
0x1491   :  { %964 = vperm.xlu2 %1551, %v2037_v14  }
0x1498   :  { %1555 = vset.pattern.permute.xlu1 %v1673_v4  ;;  %1557 = vset.pattern.permute.xlu0 %v1675_v6 }
0x1499   :  { %1554 = vset.pattern.permute.xlu2 %v1674_v5  ;;  %987 = vperm.xlu1 %1555, %v2037_v14  }
0x149a   :  { %999 = vperm.xlu0 %1557, %v2037_v14   ;;  %981 = vperm.xlu2 %1554, %v2037_v14  }
0x14a1   :  { %1558 = vset.pattern.permute.xlu1 %v1672_v3 }
0x14a2   :  { %1556 = vset.pattern.permute.xlu2 %v1676_v7  ;;  %1005 = vperm.xlu1 %1558, %v2037_v14  }
0x14a3   :  { %993 = vperm.xlu2 %1556, %v2037_v14   ;;  %1559 = vset.pattern.permute.xlu0 %v1670_v62 }
0x14aa   :  { %1560 = vset.pattern.permute.xlu1 %v1669_v61 }
0x14ab   :  { %1561 = vset.pattern.permute.xlu2 %v1671_v63 }
0x14eb   :  { %v965_v15 = vpop.permute.xlu2 %964 }
0x14ec   :  { %v967_v17 = vmul.f32 %v965_v15, %v1936_v42 }
0x14f4   :  { %v982_v18 = vpop.permute.xlu2 %981 }
0x14f5   :  { %v984_v26 = vmul.f32 %v982_v18, %v1944_v52 }
0x14fd   :  { %v994_v28 = vpop.permute.xlu2 %993 }
0x14fe   :  { %v996_v32 = vmul.f32 %v994_v28, %v1950_v57 }
0x1502   :  { %v976_v20 = vpop.permute.xlu1 %975  ;;  %v970_v16 = vpop.permute.xlu0 %969 }
0x1503   :  { %v972_v21 = vmul.f32 %v970_v16, %v1938_v43  ;;  %v978_v25 = vmul.f32 %v976_v20, %v1940_v45 }
0x1505   :  { %v973_v22 = vadd.f32 %v972_v21, %v967_v17 }
0x1507   :  { %v979_v19 = vadd.f32 %v978_v25, %v973_v22 }
0x1509   :  { %v985_v27 = vadd.f32 %v984_v26, %v979_v19 }
0x150b   :  { %v988_v24 = vpop.permute.xlu1 %987 }
0x150c   :  { %v990_v29 = vmul.f32 %v988_v24, %v1947_v55  ;;  %v1000_v33 = vpop.permute.xlu0 %999 }
0x150d   :  { %v1002_v36 = vmul.f32 %v1000_v33, %v1954_v8  ;;  %v154_v33 = vpop.f32.mrf.mxu1 }
0x150e   :  { %v991_v30 = vadd.f32 %v990_v29, %v985_v27 }
0x1510   :  { %v997_v34 = vadd.f32 %v996_v32, %v991_v30 }
0x1512   :  { %v1003_v37 = vadd.f32 %v1002_v36, %v997_v34 }
0x1514   :  { %v1006_v35 = vpop.permute.xlu1 %1005 }
0x1515   :  { %v1008_v38 = vmul.f32 %v1006_v35, %v1956_v11 }
0x1517   :  { %v1009_v40 = vadd.f32 %v1008_v38, %v1003_v37 }
0x1519   :  { %v1010_v41 = vadd.f32 %v1009_v40, %v151_v39 }
0x151b   :  { %v1011_v44 = vmul.f32 %v1010_v41, %v1734_v48 }
0x151d   :  { %1637 = vtanh.f32 %v1011_v44 }
0x1523   :  { %v1638_v46 = vpop.eup %1637 }
0x1524   :  { %1017 = vrot.lane.b32.xlu2 %v1638_v46, %s1667_s20  ;;  %v1013_v47 = vmul.f32 0.5, %v1638_v46 }
0x1526   :  { %v1014_v49 = vadd.f32 0.5, %v1013_v47 }
0x1528   :  { %v1015_v53 = vmul.f32 %v1014_v49, %v955_v9 }
0x157e   :  { %v1018_v50 = vpop.permute.xlu2 %1017 }
0x157f   :  { %v1020_v51 = vmul.f32 %v1018_v50, %v1014_v49  ;;  %v24_v50 = vld [vmem:[%s2266_s0 + $0x68] sm:$0xff] }
0x1580   :  { %1428 = vmatmul.msk.f32.gmra.mxu1 %vm35_vm0, %v24_v50 }
0x1581   :  { %1022 = vrot.lane.b32.xlu1 %v1020_v51, %s1665_s17 }
0x15f3   :  { %v1023_v54 = vpop.permute.xlu1 %1022 }
0x15f4   :  { %v1025_v56 = vadd.f32 %v1023_v54, %v1015_v53 }
0x15f6   :  { %1639 = vtanh.f32 %v1025_v56 }
0x15fc   :  { %v1640_v58 = vpop.eup %1639 }
0x15fd   :  { %1028 = vrot.lane.b32.xlu2 %v1640_v58, %s1668_s21 }
0x1657   :  { %v1029_v60 = vpop.permute.xlu2 %1028 }
0x1658   :  { %v2071_v0 = vmul.f32 %v1029_v60, %v1014_v49 }
0x165a   :  { %1045 = vperm.xlu2 %1561, %v2071_v0   ;;  %1039 = vperm.xlu1 %1560, %v2071_v0  }
0x165b   :  { %1034 = vperm.xlu0 %1559, %v2071_v0  }
0x1662   :  { %1563 = vset.pattern.permute.xlu2 %v1673_v4  ;;  %1562 = vset.pattern.permute.xlu1 %v1674_v5 }
0x1663   :  { %1564 = vset.pattern.permute.xlu0 %v1676_v7  ;;  %1057 = vperm.xlu2 %1563, %v2071_v0  }
0x1664   :  { %1051 = vperm.xlu1 %1562, %v2071_v0   ;;  %1063 = vperm.xlu0 %1564, %v2071_v0  }
0x166b   :  { %1566 = vset.pattern.permute.xlu2 %v1672_v3 }
0x166c   :  { %1565 = vset.pattern.permute.xlu1 %v1675_v6  ;;  %1075 = vperm.xlu2 %1566, %v2071_v0  }
0x166d   :  { %1069 = vperm.xlu1 %1565, %v2071_v0   ;;  %1569 = vset.pattern.permute.xlu0 %v1671_v63 }
0x1674   :  { %1568 = vset.pattern.permute.xlu2 %v1669_v61 }
0x1675   :  { %1567 = vset.pattern.permute.xlu1 %v1670_v62 }
0x16b4   :  { %v1046_v1 = vpop.permute.xlu2 %1045 }
0x16b5   :  { %v1048_v15 = vmul.f32 %v1046_v1, %v1940_v45 }
0x16bd   :  { %v1058_v18 = vpop.permute.xlu2 %1057 }
0x16be   :  { %v1060_v22 = vmul.f32 %v1058_v18, %v1947_v55 }
0x16c6   :  { %v1076_v24 = vpop.permute.xlu2 %1075 }
0x16c7   :  { %v1078_v30 = vmul.f32 %v1076_v24, %v1956_v11 }
0x16cc   :  { %v1040_v2 = vpop.permute.xlu1 %1039 }
0x16cd   :  { %v1035_v9 = vpop.permute.xlu0 %1034  ;;  %v1042_v10 = vmul.f32 %v1040_v2, %v1938_v43 }
0x16ce   :  { %v1037_v12 = vmul.f32 %v1035_v9, %v1936_v42 }
0x16d0   :  { %v1043_v13 = vadd.f32 %v1042_v10, %v1037_v12 }
0x16d2   :  { %v1049_v16 = vadd.f32 %v1048_v15, %v1043_v13 }
0x16d6   :  { %v1052_v20 = vpop.permute.xlu1 %1051  ;;  %v1064_v25 = vpop.permute.xlu0 %1063 }
0x16d7   :  { %v1054_v17 = vmul.f32 %v1052_v20, %v1944_v52  ;;  %v1066_v26 = vmul.f32 %v1064_v25, %v1950_v57 }
0x16d9   :  { %v1055_v21 = vadd.f32 %v1054_v17, %v1049_v16 }
0x16db   :  { %v1061_v19 = vadd.f32 %v1060_v22, %v1055_v21 }
0x16dd   :  { %v1067_v27 = vadd.f32 %v1066_v26, %v1061_v19 }
0x16df   :  { %v1070_v28 = vpop.permute.xlu1 %1069 }
0x16e0   :  { %v1072_v29 = vmul.f32 %v1070_v28, %v1954_v8  ;;  %v157_v28 = vpop.f32.mrf.mxu1 }
0x16e2   :  { %v1073_v32 = vadd.f32 %v1072_v29, %v1067_v27 }
0x16e4   :  { %v1079_v34 = vadd.f32 %v1078_v30, %v1073_v32 }
0x16e6   :  { %v1080_v36 = vadd.f32 %v1079_v34, %v154_v33 }
0x16e8   :  { %v1081_v35 = vmul.f32 %v1080_v36, %v1734_v48 }
0x16ea   :  { %1641 = vtanh.f32 %v1081_v35 }
0x16f0   :  { %v1642_v37 = vpop.eup %1641 }
0x16f1   :  { %1087 = vrot.lane.b32.xlu1 %v1642_v37, %s1667_s20  ;;  %v1083_v38 = vmul.f32 0.5, %v1642_v37 }
0x16f3   :  { %v1084_v39 = vadd.f32 0.5, %v1083_v38 }
0x16f5   :  { %v1085_v44 = vmul.f32 %v1084_v39, %v1025_v56 }
0x1763   :  { %v1088_v40 = vpop.permute.xlu1 %1087 }
0x1764   :  { %v1090_v41 = vmul.f32 %v1088_v40, %v1084_v39 }
0x1766   :  { %1092 = vrot.lane.b32.xlu2 %v1090_v41, %s1665_s17  ;;  %v25_v41 = vld [vmem:[%s2266_s0 + $0x70] sm:$0xff] }
0x1767   :  { %1429 = vmatmul.msk.f32.vlgmr.msrb.gmra.mxu3 %vm35_vm0, %v25_v41 }
0x17c0   :  { %v1093_v46 = vpop.permute.xlu2 %1092 }
0x17c1   :  { %v1095_v47 = vadd.f32 %v1093_v46, %v1085_v44 }
0x17c3   :  { %1643 = vtanh.f32 %v1095_v47 }
0x17c9   :  { %v1644_v49 = vpop.eup %1643 }
0x17ca   :  { %1098 = vrot.lane.b32.xlu0 %v1644_v49, %s1668_s21 }
0x183c   :  { %v1099_v51 = vpop.permute.xlu0 %1098 }
0x183d   :  { %v2105_v53 = vmul.f32 %v1099_v51, %v1084_v39 }
0x183f   :  { %1115 = vperm.xlu0 %1569, %v2105_v53   ;;  %1109 = vperm.xlu2 %1568, %v2105_v53  }
0x1840   :  { %1104 = vperm.xlu1 %1567, %v2105_v53  }
0x1847   :  { %1574 = vset.pattern.permute.xlu0 %v1672_v3  ;;  %1571 = vset.pattern.permute.xlu2 %v1673_v4 }
0x1848   :  { %1570 = vset.pattern.permute.xlu1 %v1674_v5  ;;  %1145 = vperm.xlu0 %1574, %v2105_v53  }
0x1849   :  { %1127 = vperm.xlu2 %1571, %v2105_v53   ;;  %1121 = vperm.xlu1 %1570, %v2105_v53  }
0x1850   :  { %1576 = vset.pattern.permute.xlu0 %v1669_v61 }
0x1851   :  { %1573 = vset.pattern.permute.xlu2 %v1675_v6  ;;  %1572 = vset.pattern.permute.xlu1 %v1676_v7 }
0x1852   :  { %1139 = vperm.xlu2 %1573, %v2105_v53   ;;  %1133 = vperm.xlu1 %1572, %v2105_v53  }
0x185a   :  { %1575 = vset.pattern.permute.xlu2 %v1670_v62  ;;  %1577 = vset.pattern.permute.xlu1 %v1671_v63 }
0x1899   :  { %v1110_v54 = vpop.permute.xlu2 %1109 }
0x189a   :  { %v1112_v59 = vmul.f32 %v1110_v54, %v1938_v43 }
0x18a3   :  { %v1128_v60 = vpop.permute.xlu2 %1127 }
0x18a4   :  { %v1130_v18 = vmul.f32 %v1128_v60, %v1947_v55 }
0x18ac   :  { %v1140_v20 = vpop.permute.xlu2 %1139 }
0x18ad   :  { %v1142_v25 = vmul.f32 %v1140_v20, %v1954_v8 }
0x18b1   :  { %v1116_v1 = vpop.permute.xlu0 %1115 }
0x18b2   :  { %v1105_v56 = vpop.permute.xlu1 %1104  ;;  %v1118_v10 = vmul.f32 %v1116_v1, %v1940_v45 }
0x18b3   :  { %v1107_v58 = vmul.f32 %v1105_v56, %v1936_v42 }
0x18b5   :  { %v1113_v2 = vadd.f32 %v1112_v59, %v1107_v58 }
0x18b7   :  { %v1119_v13 = vadd.f32 %v1118_v10, %v1113_v2 }
0x18ba   :  { %v1146_v22 = vpop.permute.xlu0 %1145 }
0x18bb   :  { %v1122_v9 = vpop.permute.xlu1 %1121  ;;  %v1148_v26 = vmul.f32 %v1146_v22, %v1956_v11 }
0x18bc   :  { %v1124_v12 = vmul.f32 %v1122_v9, %v1944_v52 }
0x18be   :  { %v1125_v15 = vadd.f32 %v1124_v12, %v1119_v13 }
0x18c0   :  { %v1131_v17 = vadd.f32 %v1130_v18, %v1125_v15 }
0x18c4   :  { %v1134_v16 = vpop.permute.xlu1 %1133 }
0x18c5   :  { %v1136_v21 = vmul.f32 %v1134_v16, %v1950_v57 }
0x18c7   :  { %v1137_v19 = vadd.f32 %v1136_v21, %v1131_v17  ;;  %v160_v17 = vpop.f32.mrf.mxu3 }
0x18c9   :  { %v1143_v24 = vadd.f32 %v1142_v25, %v1137_v19 }
0x18cb   :  { %v1149_v27 = vadd.f32 %v1148_v26, %v1143_v24 }
0x18cd   :  { %v1150_v29 = vadd.f32 %v1149_v27, %v157_v28 }
0x18cf   :  { %v1151_v30 = vmul.f32 %v1150_v29, %v1734_v48 }
0x18d1   :  { %1645 = vtanh.f32 %v1151_v30 }
0x18d7   :  { %v1646_v32 = vpop.eup %1645 }
0x18d8   :  { %1157 = vrot.lane.b32.xlu1 %v1646_v32, %s1667_s20  ;;  %v1153_v33 = vmul.f32 0.5, %v1646_v32 }
0x18da   :  { %v1154_v34 = vadd.f32 0.5, %v1153_v33 }
0x18dc   :  { %v1155_v37 = vmul.f32 %v1154_v34, %v1095_v47 }
0x194a   :  { %v1158_v36 = vpop.permute.xlu1 %1157 }
0x194b   :  { %v1160_v35 = vmul.f32 %v1158_v36, %v1154_v34 }
0x194d   :  { %1162 = vrot.lane.b32.xlu2 %v1160_v35, %s1665_s17 }
0x19a7   :  { %v1163_v38 = vpop.permute.xlu2 %1162 }
0x19a8   :  { %v1165_v39 = vadd.f32 %v1163_v38, %v1155_v37 }
0x19aa   :  { %1647 = vtanh.f32 %v1165_v39 }
0x19b0   :  { %v1648_v40 = vpop.eup %1647 }
0x19b1   :  { %1168 = vrot.lane.b32.xlu1 %v1648_v40, %s1668_s21 }
0x1a23   :  { %v1169_v44 = vpop.permute.xlu1 %1168 }
0x1a24   :  { %v2139_v46 = vmul.f32 %v1169_v44, %v1154_v34  ;;  %v26_v34 = vld [vmem:[%s2266_s0 + $0x78] sm:$0xff]  ;;  %s1677_s0 = smov 104  }
0x1a25   :  { %1430 = vmatmul.msk.f32.gmra.mxu3 %vm35_vm0, %v26_v34 }
0x1a26   :  { %1185 = vperm.xlu1 %1577, %v2139_v46   ;;  %1179 = vperm.xlu0 %1576, %v2139_v46  }
0x1a27   :  { %1174 = vperm.xlu2 %1575, %v2139_v46  }
0x1a2e   :  { %1579 = vset.pattern.permute.xlu1 %v1673_v4  ;;  %1581 = vset.pattern.permute.xlu0 %v1675_v6 }
0x1a2f   :  { %1578 = vset.pattern.permute.xlu2 %v1674_v5  ;;  %1197 = vperm.xlu1 %1579, %v2139_v46  }
0x1a30   :  { %1209 = vperm.xlu0 %1581, %v2139_v46   ;;  %1191 = vperm.xlu2 %1578, %v2139_v46  }
0x1a37   :  { %1582 = vset.pattern.permute.xlu1 %v1672_v3 }
0x1a38   :  { %1580 = vset.pattern.permute.xlu2 %v1676_v7  ;;  %1215 = vperm.xlu1 %1582, %v2139_v46  }
0x1a39   :  { %1203 = vperm.xlu2 %1580, %v2139_v46   ;;  %1583 = vset.pattern.permute.xlu0 %v1670_v62 }
0x1a40   :  { %1584 = vset.pattern.permute.xlu1 %v1669_v61 }
0x1a41   :  { %1585 = vset.pattern.permute.xlu2 %v1671_v63 }
0x1a81   :  { %v1175_v47 = vpop.permute.xlu2 %1174 }
0x1a82   :  { %v1177_v54 = vmul.f32 %v1175_v47, %v1936_v42 }
0x1a8a   :  { %v1192_v49 = vpop.permute.xlu2 %1191 }
0x1a8b   :  { %v1194_v1 = vmul.f32 %v1192_v49, %v1944_v52 }
0x1a93   :  { %v1204_v62 = vpop.permute.xlu2 %1203 }
0x1a94   :  { %v1206_v10 = vmul.f32 %v1204_v62, %v1950_v57 }
0x1a98   :  { %v1186_v50 = vpop.permute.xlu1 %1185  ;;  %v1180_v51 = vpop.permute.xlu0 %1179 }
0x1a99   :  { %v1182_v56 = vmul.f32 %v1180_v51, %v1938_v43  ;;  %v1188_v59 = vmul.f32 %v1186_v50, %v1940_v45 }
0x1a9b   :  { %v1183_v58 = vadd.f32 %v1182_v56, %v1177_v54 }
0x1a9d   :  { %v1189_v60 = vadd.f32 %v1188_v59, %v1183_v58 }
0x1a9f   :  { %v1195_v9 = vadd.f32 %v1194_v1, %v1189_v60 }
0x1aa1   :  { %v1198_v2 = vpop.permute.xlu1 %1197 }
0x1aa2   :  { %v1200_v61 = vmul.f32 %v1198_v2, %v1947_v55  ;;  %v1210_v12 = vpop.permute.xlu0 %1209 }
0x1aa3   :  { %v1212_v15 = vmul.f32 %v1210_v12, %v1954_v8 }
0x1aa4   :  { %v1201_v63 = vadd.f32 %v1200_v61, %v1195_v9 }
0x1aa6   :  { %v1207_v13 = vadd.f32 %v1206_v10, %v1201_v63 }
0x1aa8   :  { %v1213_v20 = vadd.f32 %v1212_v15, %v1207_v13  ;;  %v163_v60 = vpop.f32.mrf.mxu3 }
0x1aaa   :  { %v1216_v18 = vpop.permute.xlu1 %1215 }
0x1aab   :  { %v1218_v16 = vmul.f32 %v1216_v18, %v1956_v11 }
0x1aad   :  { %v1219_v21 = vadd.f32 %v1218_v16, %v1213_v20  ;;  %v1314_v20 = vmax.f32 %v2037_v14, 0.0 }
0x1aaf   :  { %v1220_v22 = vadd.f32 %v1219_v21, %v160_v17 }
0x1ab1   :  { %v1221_v25 = vmul.f32 %v1220_v22, %v1734_v48 }
0x1ab3   :  { %1649 = vtanh.f32 %v1221_v25 }
0x1ab9   :  { %v1650_v19 = vpop.eup %1649 }
0x1aba   :  { %1227 = vrot.lane.b32.xlu2 %v1650_v19, %s1667_s20  ;;  %v1223_v26 = vmul.f32 0.5, %v1650_v19 }
0x1abc   :  { %v1224_v24 = vadd.f32 0.5, %v1223_v26 }
0x1abe   :  { %v1225_v29 = vmul.f32 %v1224_v24, %v1165_v39 }
0x1b14   :  { %v1228_v28 = vpop.permute.xlu2 %1227 }
0x1b15   :  { %v1230_v27 = vmul.f32 %v1228_v28, %v1224_v24 }
0x1b17   :  { %1232 = vrot.lane.b32.xlu1 %v1230_v27, %s1665_s17 }
0x1b89   :  { %v1233_v30 = vpop.permute.xlu1 %1232 }
0x1b8a   :  { %v2168_v32 = vadd.f32 %v1233_v30, %v1225_v29 }
0x1b8c   :  { %1651 = vtanh.f32 %v2168_v32 }
0x1b92   :  { %v1652_v33 = vpop.eup %1651 }
0x1b93   :  { %1238 = vrot.lane.b32.xlu2 %v1652_v33, %s1668_s21 }
0x1bed   :  { %v1239_v36 = vpop.permute.xlu2 %1238 }
0x1bee   :  { %v2176_v35 = vmul.f32 %v1239_v36, %v1224_v24 }
0x1bf0   :  { %1255 = vperm.xlu2 %1585, %v2176_v35   ;;  %1249 = vperm.xlu1 %1584, %v2176_v35  }
0x1bf1   :  { %1244 = vperm.xlu0 %1583, %v2176_v35  }
0x1bf8   :  { %1587 = vset.pattern.permute.xlu2 %v1673_v4  ;;  %1586 = vset.pattern.permute.xlu1 %v1674_v5 }
0x1bf9   :  { %1588 = vset.pattern.permute.xlu0 %v1676_v7  ;;  %1267 = vperm.xlu2 %1587, %v2176_v35  }
0x1bfa   :  { %1261 = vperm.xlu1 %1586, %v2176_v35   ;;  %1273 = vperm.xlu0 %1588, %v2176_v35  }
0x1c01   :  { %1590 = vset.pattern.permute.xlu2 %v1672_v3 }
0x1c02   :  { %1589 = vset.pattern.permute.xlu1 %v1675_v6  ;;  %1285 = vperm.xlu2 %1590, %v2176_v35  }
0x1c03   :  { %1279 = vperm.xlu1 %1589, %v2176_v35   ;;  %1591 = vset.pattern.permute.xlu0 %v1672_v3 }
0x1c4a   :  { %v1256_v4 = vpop.permute.xlu2 %1255 }
0x1c4b   :  { %v1258_v40 = vmul.f32 %v1256_v4, %v1940_v45 }
0x1c53   :  { %v1268_v41 = vpop.permute.xlu2 %1267 }
0x1c54   :  { %v1270_v50 = vmul.f32 %v1268_v41, %v1947_v55  ;;  %v1312_v55 = vmax.f32 %v1969_v31, 0.0 }
0x1c5c   :  { %v1286_v56 = vpop.permute.xlu2 %1285 }
0x1c5d   :  { %v1288_v59 = vmul.f32 %v1286_v56, %v1956_v11 }
0x1c62   :  { %v1250_v5 = vpop.permute.xlu1 %1249 }
0x1c63   :  { %v1245_v37 = vpop.permute.xlu0 %1244  ;;  %v1252_v7 = vmul.f32 %v1250_v5, %v1938_v43 }
0x1c64   :  { %v1247_v38 = vmul.f32 %v1245_v37, %v1936_v42 }
0x1c66   :  { %v1253_v39 = vadd.f32 %v1252_v7, %v1247_v38 }
0x1c68   :  { %v1259_v47 = vadd.f32 %v1258_v40, %v1253_v39 }
0x1c6c   :  { %v1262_v44 = vpop.permute.xlu1 %1261  ;;  %v1274_v51 = vpop.permute.xlu0 %1273 }
0x1c6d   :  { %v1264_v6 = vmul.f32 %v1262_v44, %v1944_v52  ;;  %v1276_v54 = vmul.f32 %v1274_v51, %v1950_v57  ;;  %v1315_v57 = vmax.f32 %v2071_v0, 0.0  ;;  %v1313_v0 = vmax.f32 %v2003_v23, 0.0 }
0x1c6e   :  { %v1318_v23 = vmax.f32 %v2176_v35, 0.0 }
0x1c6f   :  { %v1265_v49 = vadd.f32 %v1264_v6, %v1259_v47 }
0x1c71   :  { %v1271_v3 = vadd.f32 %v1270_v50, %v1265_v49 }
0x1c73   :  { %v1277_v43 = vadd.f32 %v1276_v54, %v1271_v3 }
0x1c75   :  { %v1280_v58 = vpop.permute.xlu1 %1279 }
0x1c76   :  { %v1282_v42 = vmul.f32 %v1280_v58, %v1954_v8  ;;  %v1317_v8 = vmax.f32 %v2139_v46, 0.0  ;;  %v1316_v46 = vmax.f32 %v2105_v53, 0.0  ;;  %v1592_v53 = vld [vmem:[%s2267_s1 + $0x28] ss:$0 sm:$0xff] }
0x1c78   :  { %v1283_v45 = vadd.f32 %v1282_v42, %v1277_v43 }
0x1c7a   :  { %v1289_v1 = vadd.f32 %v1288_v59, %v1283_v45 }
0x1c7c   :  { %v1290_v2 = vadd.f32 %v1289_v1, %v163_v60 }
0x1c7e   :  { %v1291_v52 = vmul.f32 %v1290_v2, %v1734_v48  ;;  %v33_v48 = vld [vmem:[%s2267_s1 + $0x20] sm:$0xff] }
0x1c7f   :  { %1376 = vmatpush.msra.mxu2 %v33_v48  ;;  %1441 = vmatpush.msra.mxu3 %v33_v48 }
0x1c80   :  { %1653 = vtanh.f32 %v1291_v52 }
0x1c86   :  { %v1654_v62 = vpop.eup %1653 }
0x1c87   :  { %1297 = vrot.lane.b32.xlu1 %v1654_v62, %s1667_s20  ;;  %v1293_v11 = vmul.f32 0.5, %v1654_v62 }
0x1c89   :  { %v1294_v9 = vadd.f32 0.5, %v1293_v11 }
0x1c8b   :  { %v1295_v10 = vmul.f32 %v1294_v9, %v2168_v32 }
0x1c8f   :  { %1329 = vrot.lane.b32.xlu1 %v1312_v55, %s1677_s0 }
0x1c97   :  { %1335 = vrot.lane.b32.xlu1 %v1315_v57, %s1677_s0 }
0x1c9f   :  { %1339 = vrot.lane.b32.xlu1 %v1317_v8, %s1677_s0 }
0x1cf9   :  { %v1298_v31 = vpop.permute.xlu1 %1297 }
0x1cfa   :  { %v1300_v61 = vmul.f32 %v1298_v31, %v1294_v9 }
0x1cfc   :  { %1302 = vrot.lane.b32.xlu2 %v1300_v61, %s1665_s17 }
0x1d01   :  { %v1330_v63 = vpop.permute.xlu1 %1329 }
0x1d02   :  { %1431 = vmatmul.msk.f32.vlgmr.msra.gmra.mxu2 %vm35_vm0, %v1330_v63 }
0x1d04   :  { %1331 = vrot.lane.b32.xlu2 %v1313_v0, %s1677_s0 }
0x1d09   :  { %v1336_v19 = vpop.permute.xlu1 %1335 }
0x1d0c   :  { %1337 = vrot.lane.b32.xlu2 %v1316_v46, %s1677_s0 }
0x1d11   :  { %v1340_v29 = vpop.permute.xlu1 %1339 }
0x1d56   :  { %v1303_v12 = vpop.permute.xlu2 %1302 }
0x1d57   :  { %v1305_v13 = vadd.f32 %v1303_v12, %v1295_v10 }
0x1d59   :  { %1655 = vtanh.f32 %v1305_v13 }
0x1d5e   :  { %v1332_v15 = vpop.permute.xlu2 %1331 }
0x1d5f   :  { %v1656_v18 = vpop.eup %1655  ;;  %1432 = vmatmul.msk.f32.gmra.mxu2 %vm35_vm0, %v1332_v15 }
0x1d60   :  { %1308 = vrot.lane.b32.xlu0 %v1656_v18, %s1668_s21 }
0x1d66   :  { %v1338_v27 = vpop.permute.xlu2 %1337 }
0x1d68   :  { %1333 = vrot.lane.b32.xlu0 %v1314_v20, %s1677_s0 }
0x1d70   :  { %1341 = vrot.lane.b32.xlu0 %v1318_v23, %s1677_s0 }
0x1d85   :  { %v1378_v16 = vpop.f32.mrf.mxu2 }
0x1d86   :  { %v1379_v17 = vadd.f32 %v1592_v53, %v1378_v16 }
0x1d88   :  { %1403 = vst.msk [vmem:[%s2268_s2] sm:$0xff] %vm1402_vm4, %v1379_v17 }
0x1dd2   :  { %v1309_v21 = vpop.permute.xlu0 %1308 }
0x1dd3   :  { %v1311_v14 = vmul.f32 %v1309_v21, %v1294_v9 }
0x1dd5   :  { %v1319_v22 = vmax.f32 %v1311_v14, 0.0 }
0x1dd7   :  { %1343 = vrot.lane.b32.xlu2 %v1319_v22, %s1677_s0 }
0x1dda   :  { %v1334_v25 = vpop.permute.xlu0 %1333 }
0x1ddb   :  { %1433 = vmatmul.msk.f32.gmra.mxu2 %vm35_vm0, %v1334_v25 }
0x1de2   :  { %v1342_v26 = vpop.permute.xlu0 %1341  ;;  %v1381_v24 = vpop.f32.mrf.mxu2 }
0x1de3   :  { %v1382_v28 = vadd.f32 %v1592_v53, %v1381_v24  ;;  %1434 = vmatmul.msk.f32.gmra.mxu2 %vm35_vm0, %v1336_v19  ;;  %1437 = vmatmul.msk.f32.vlgmr.msra.gmra.mxu3 %vm35_vm0, %v1342_v26 }
0x1de5   :  { %1404 = vst.msk [vmem:[%s2268_s2 + $0x8] sm:$0xff] %vm1402_vm4, %v1382_v28 }
0x1deb   :  { %1435 = vmatmul.msk.f32.gmra.mxu2 %vm35_vm0, %v1338_v27 }
0x1df3   :  { %1436 = vmatmul.msk.f32.gmra.mxu2 %vm35_vm0, %v1340_v29 }
0x1e31   :  { %v1344_v30 = vpop.permute.xlu2 %1343 }
0x1e32   :  { %1438 = vmatmul.msk.f32.gmra.mxu3 %vm35_vm0, %v1344_v30 }
0x1e5e   :  { %v1384_v32 = vpop.f32.mrf.mxu2 }
0x1e5f   :  { %v1385_v33 = vadd.f32 %v1592_v53, %v1384_v32 }
0x1e61   :  { %1405 = vst.msk [vmem:[%s2268_s2 + $0x10] sm:$0xff] %vm1402_vm4, %v1385_v33 }
0x1e66   :  { %v1387_v34 = vpop.f32.mrf.mxu2  ;;  %v1396_v36 = vpop.f32.mrf.mxu3 }
0x1e67   :  { %v1388_v35 = vadd.f32 %v1592_v53, %v1387_v34  ;;  %v1397_v4 = vadd.f32 %v1592_v53, %v1396_v36 }
0x1e69   :  { %1406 = vst.msk [vmem:[%s2268_s2 + $0x18] sm:$0xff] %vm1402_vm4, %v1388_v35 }
0x1e6a   :  { %1409 = vst.msk [vmem:[%s2268_s2 + $0x30] sm:$0xff] %vm1402_vm4, %v1397_v4 }
0x1e6e   :  { %v1390_v5 = vpop.f32.mrf.mxu2 }
0x1e6f   :  { %v1391_v37 = vadd.f32 %v1592_v53, %v1390_v5 }
0x1e71   :  { %1407 = vst.msk [vmem:[%s2268_s2 + $0x20] sm:$0xff] %vm1402_vm4, %v1391_v37 }
0x1e76   :  { %v1393_v7 = vpop.f32.mrf.mxu2 }
0x1e77   :  { %v1394_v38 = vadd.f32 %v1592_v53, %v1393_v7 }
0x1e79   :  { %1408 = vst.msk [vmem:[%s2268_s2 + $0x28] sm:$0xff] %vm1402_vm4, %v1394_v38 }
0x1eb5   :  { %v1399_v39 = vpop.f32.mrf.mxu3 }
0x1eb6   :  { %v1400_v40 = vadd.f32 %v1592_v53, %v1399_v39 }
0x1eb8   :  { %1410 = vst.msk [vmem:[%s2268_s2 + $0x38] sm:$0xff] %vm1402_vm4, %v1400_v40 }

</bundles_post_ra>
